<compile_context>
chip_gen: v6e
topology: v6e:2x2x1
jax: 0.10.0
libtpu: 0.0.40
codegen_flags: <defaults>
</compile_context>

<pallas_src>
import math
import numpy as np
import jax
import jax.numpy as jnp
from jax import lax
from jax.experimental import pallas as pl
from jax.experimental.pallas import tpu as pltpu

NHEAD = 8
LN_EPS = 1e-5          # PyTorch LayerNorm default
NEG_BIAS = -1e9        # finite "masked key" bias (avoids -inf -> NaN on all-masked rows)
FF_CHUNK = 2048        # FFN tiled over dim_feedforward in chunks of this size


def _make_encoder_kernel(tn, L, E, H, F):
    dh = E // H
    R = tn * L
    ff_chunk = min(F, FF_CHUNK)
    n_ff = (F + ff_chunk - 1) // ff_chunk

    def layer_norm(v, g, b):
        mu = jnp.mean(v, axis=-1, keepdims=True)
        d = v - mu
        var = jnp.mean(d * d, axis=-1, keepdims=True)
        return d * lax.rsqrt(var + LN_EPS) * g + b

    def kernel(x_ref, bias_ref, wqkv_ref, bqkv_ref, wo_ref, w1_ref, b1_ref,
               w2_ref, vec_ref, out_ref, ctx_ref):
        x = x_ref[...].astype(jnp.float32)            # (R, E) — LN/residual math in f32
        xb = x.astype(jnp.bfloat16)
        bias_b = bias_ref[...][:, None, :]            # (tn, 1, L) additive key bias

        vec = vec_ref[...]                            # (6, E) f32
        bo, g1, beta1, b2, g2, beta2 = (vec[i:i + 1, :] for i in range(6))

        # Fused QKV projection.  The 1/sqrt(dh) query scale is pre-folded into the
        # Q columns of wqkv/bqkv on the host, so no per-head scaling happens here.
        qkv = jnp.dot(xb, wqkv_ref[...],
                      preferred_element_type=jnp.float32) + bqkv_ref[...]   # (R, 3E)
        qkvb = qkv.astype(jnp.bfloat16)               # single bf16 cast of qkv

        # Per-head scores / softmax / context, batched over the tn chunks via 3-D
        # einsums (single batch dim).  Head outputs are written lane-wise into a
        # (R, E) scratch so the output projection is ONE K=E matmul (not 8 K=dh).
        for h in range(H):
            qh = qkvb[:, h * dh:(h + 1) * dh].reshape(tn, L, dh)
            kh = qkvb[:, E + h * dh:E + (h + 1) * dh].reshape(tn, L, dh)
            vh = qkvb[:, 2 * E + h * dh:2 * E + (h + 1) * dh].reshape(tn, L, dh)

            s = jnp.einsum('nqd,nkd->nqk', qh, kh,
                           preferred_element_type=jnp.float32)             # (tn, L, L)
            s = s + bias_b                                                  # key mask
            s = s - jnp.max(s, axis=-1, keepdims=True)
            p = jnp.exp(s)
            # exact reciprocal (EUP) — softmax error stays dominated by bf16 matmuls
            p = p * pl.reciprocal(jnp.sum(p, axis=-1, keepdims=True))

            ctx = jnp.einsum('nqk,nkd->nqd', p.astype(jnp.bfloat16), vh,
                             preferred_element_type=jnp.float32)            # (tn, L, dh)
            ctx_ref[:, h * dh:(h + 1) * dh] = ctx.reshape(R, dh)

        attn = jnp.dot(ctx_ref[...].astype(jnp.bfloat16), wo_ref[...],
                       preferred_element_type=jnp.float32) + bo             # (R, E)

        # residual + LayerNorm 1 (post-norm: PyTorch default norm_first=False)
        y = layer_norm(x + attn, g1, beta1)
        yb = y.astype(jnp.bfloat16)

        # feed-forward: relu(y @ W1 + b1) @ W2 + b2, tiled over F so the (R, F)
        # intermediate and both weight tiles never have to be resident at once.
        ff = jnp.zeros((R, E), jnp.float32)
        for c in range(n_ff):
            lo = c * ff_chunk
            hi = min(F, lo + ff_chunk)
            h1 = jnp.maximum(
                jnp.dot(yb, w1_ref[:, lo:hi],
                        preferred_element_type=jnp.float32) + b1_ref[:, lo:hi], 0.0)
            ff = ff + jnp.dot(h1.astype(jnp.bfloat16), w2_ref[lo:hi, :],
                              preferred_element_type=jnp.float32)
        ff = ff + b2

        # residual + LayerNorm 2
        z = layer_norm(y + ff, g2, beta2)
        out_ref[...] = z.astype(out_ref.dtype)

    return kernel


def _vmem_capacity_bytes():
    try:
        info = pltpu.get_tpu_info()
        cap = getattr(info, "vmem_capacity_bytes", None)
        if cap:
            return int(cap)
    except Exception:
        pass
    return 64 * 1024 * 1024        # conservative fallback (v7x per-TensorCore)


def transformer_encoder_layer(x, key_bias, params, tn=None, io_dtype=None):
    """x: (N, L, E); key_bias: (N, L) f32 additive key bias (NEG_BIAS == masked key)."""
    N, L, E = x.shape
    F = params["w1_t"].shape[1]
    if io_dtype is None:
        io_dtype = x.dtype          # pass bf16 activations on v5e to halve HBM traffic

    vmem_cap = _vmem_capacity_bytes()
    # Generation-aware: bigger row slab on 128 MiB-VMEM parts (v5e/v6e), smaller on
    # v7x (64 MiB/TC); scoped-VMEM limit at ~75% of capacity for compiler headroom.
    rows_target = 512 if vmem_cap >= (96 << 20) else 256
    vmem_limit = int(min(vmem_cap * 3 // 4, 112 * 1024 * 1024))

    if tn is None:
        tn = max(1, rows_target // max(L, 1))
        if N >= 16:
            tn = min(tn, (N + 1) // 2)   # >=2 grid blocks -> both v7x TensorCores busy
        if tn >= N:
            tn = N                       # single full-extent block (tiny problems)
        else:
            tn = max(8, (tn // 8) * 8)   # multi-block: keep (tn, L) bias blocks 8-aligned

    n_blocks = pl.cdiv(N, tn)
    n_pad = n_blocks * tn
    if n_pad != N:
        x = jnp.pad(x, ((0, n_pad - N), (0, 0), (0, 0)))
        key_bias = jnp.pad(key_bias, ((0, n_pad - N), (0, 0)))

    x2 = x.reshape(n_pad * L, E).astype(io_dtype)

    weight_names = ("wqkv_t", "bqkv", "wo_t", "w1_t", "b1", "w2_t", "vec_e")
    weights = [params[n] for n in weight_names]
    weight_bytes = sum(int(np.prod(w.shape)) * jnp.dtype(w.dtype).itemsize
                       for w in weights)
    single_buffer_weights = weight_bytes >= (8 << 20)

    def weight_spec(a):
        nd = a.ndim
        idx = lambda i, _nd=nd: (0,) * _nd
        if single_buffer_weights:
            # Constant-index weights: single-buffer to halve their VMEM residency
            # at production sizes (critical on v7x's 64 MiB/TC VMEM).
            return pl.BlockSpec(a.shape, idx, pipeline_mode=pl.Buffered(1))
        return pl.BlockSpec(a.shape, idx)

    in_specs = [
        pl.BlockSpec((tn * L, E), lambda i: (i, 0)),   # x slab (lane-dense when E%128==0)
        pl.BlockSpec((tn, L), lambda i: (i, 0)),       # additive key bias
    ] + [weight_spec(w) for w in weights]

    kernel = _make_encoder_kernel(tn, L, E, NHEAD, F)

    out = pl.pallas_call(
        kernel,
        out_shape=jax.ShapeDtypeStruct((n_pad * L, E), io_dtype),
        grid=(n_blocks,),
        in_specs=in_specs,
        out_specs=pl.BlockSpec((tn * L, E), lambda i: (i, 0)),
        scratch_shapes=[pltpu.VMEM((tn * L, E), jnp.float32)],   # per-head ctx assembly
        compiler_params=pltpu.CompilerParams(
            dimension_semantics=("parallel",),
            vmem_limit_bytes=vmem_limit,
        ),
    )(x2, key_bias, *weights)

    return out.reshape(n_pad, L, E)[:N].astype(jnp.float32)


def init_params(key, hidden, dim_ff):
    ks = jax.random.split(key, 12)
    std = 0.02

    def w(k, shape):
        return jax.random.normal(k, shape, jnp.float32) * std

    # Matmul weights stored pre-transposed as (in_features, out_features), bf16.
    # The PyTorch-MHA 1/sqrt(head_dim) query scaling is folded into Wq / bq here so
    # the kernel never multiplies by it.
    scale = 1.0 / math.sqrt(hidden // NHEAD)
    wq = w(ks[0], (hidden, hidden)) * scale
    wk = w(ks[1], (hidden, hidden))
    wv = w(ks[2], (hidden, hidden))
    wqkv = jnp.concatenate([wq, wk, wv], axis=1)                       # (E, 3E)
    bqkv = jnp.concatenate([w(ks[6], (1, hidden)) * scale,
                            w(ks[7], (1, hidden)),
                            w(ks[8], (1, hidden))], axis=1)            # (1, 3E)
    bo = w(ks[9], (1, hidden))
    b2 = w(ks[11], (1, hidden))
    g1 = jnp.ones((1, hidden), jnp.float32)
    beta1 = jnp.zeros((1, hidden), jnp.float32)
    g2 = jnp.ones((1, hidden), jnp.float32)
    beta2 = jnp.zeros((1, hidden), jnp.float32)
    vec_e = jnp.concatenate([bo, g1, beta1, b2, g2, beta2], axis=0)    # (6, E)

    return {
        "wqkv_t": wqkv.astype(jnp.bfloat16),
        "bqkv": bqkv.astype(jnp.float32),
        "wo_t": w(ks[3], (hidden, hidden)).astype(jnp.bfloat16),
        "w1_t": w(ks[4], (hidden, dim_ff)).astype(jnp.bfloat16),
        "b1": w(ks[10], (1, dim_ff)).astype(jnp.float32),
        "w2_t": w(ks[5], (dim_ff, hidden)).astype(jnp.bfloat16),
        "vec_e": vec_e.astype(jnp.float32),
    }


def chunk_level_feature_encoder_attention(token_level_features, chunk_lens, params,
                                          max_chunk_number, max_chunk_len):
    B, P, E = token_level_features.shape
    C, L = max_chunk_number, max_chunk_len

    # Host-side reproduction of the reference Python double loop: build the
    # token -> (chunk, slot) gather indices and the inverse scatter indices.
    gather_idx = np.zeros((B, C, L), dtype=np.int32)
    chunk_valid = np.zeros((B, C, L), dtype=np.float32)
    inv_c = np.zeros((B, P), dtype=np.int32)
    inv_i = np.zeros((B, P), dtype=np.int32)
    inv_valid = np.zeros((B, P), dtype=np.float32)
    for b, lens in enumerate(chunk_lens):
        wp = 0
        for c, ln in enumerate(lens):
            t = min(ln, L)   # truncate_len
            for i in range(t):
                gather_idx[b, c, i] = wp + i
                chunk_valid[b, c, i] = 1.0
                inv_c[b, wp + i] = c
                inv_i[b, wp + i] = i
                inv_valid[b, wp + i] = 1.0
            wp += ln

    gi = jnp.asarray(gather_idx)
    cv = jnp.asarray(chunk_valid)
    b_idx = jnp.arange(B)[:, None, None]
    feat = jnp.where(cv[..., None] > 0, token_level_features[b_idx, gi], 0.0)  # (B,C,L,E)

    x = feat.reshape(B * C, L, E).astype(jnp.float32)
    # The reference sets src_key_padding_mask=True on VALID positions; under PyTorch
    # semantics (True == ignore key) that masks the valid keys out.  Reproduced with a
    # large finite negative additive bias on valid keys: for fully-valid chunks the
    # uniform bias cancels in softmax (no NaN rows, unlike strict PyTorch).
    key_bias = (cv * NEG_BIAS).reshape(B * C, L)

    enc = transformer_encoder_layer(x, key_bias, params)   # (B*C, L, E)
    enc = enc.reshape(B, C, L, E)

    ic = jnp.asarray(inv_c)
    ii = jnp.asarray(inv_i)
    iv = jnp.asarray(inv_valid)
    span = jnp.where(iv[..., None] > 0,
                     enc[jnp.arange(B)[:, None], ic, ii], 0.0)   # (B, P, E)
    return span


if __name__ == "__main__":
    # Small config: hidden_size=32 (divisible by nhead=8), dim_feedforward=64,
    # max_chunk_number=4, max_chunk_len=8, batch=2, max_piece_len=16.
    B, P, E = 2, 16, 32
    C, L = 4, 8
    DIM_FF = 64

    key = jax.random.PRNGKey(0)
    kx, kp = jax.random.split(key)
    token_feats = jax.random.normal(kx, (B, P, E), jnp.float32)
    chunk_lens = [[3, 5, 2, 0], [6, 4, 3, 2]]

    params = init_params(kp, E, DIM_FF)
    out = chunk_level_feature_encoder_attention(token_feats, chunk_lens, params, C, L)
    out = jax.block_until_ready(out)
    assert out.shape == (B, P, E)
    assert bool(jnp.all(jnp.isfinite(out)))
    print("KERNEL_OK")
</pallas_src>

<mosaic_0001>
module attributes {stable_mosaic.version = 11 : i64} {
  func.func @kernel(%arg0: i32, %arg1: memref<64x32xf32, #tpu.memory_space<vmem>>, %arg2: memref<8x8xf32, #tpu.memory_space<vmem>>, %arg3: memref<32x96xbf16, #tpu.memory_space<vmem>>, %arg4: memref<1x96xf32, #tpu.memory_space<vmem>>, %arg5: memref<32x32xbf16, #tpu.memory_space<vmem>>, %arg6: memref<32x64xbf16, #tpu.memory_space<vmem>>, %arg7: memref<1x64xf32, #tpu.memory_space<vmem>>, %arg8: memref<64x32xbf16, #tpu.memory_space<vmem>>, %arg9: memref<6x32xf32, #tpu.memory_space<vmem>>, %arg10: memref<64x32xf32, #tpu.memory_space<vmem>>, %arg11: memref<64x32xf32, #tpu.memory_space<vmem>>) attributes {dimension_semantics = [#tpu.dimension_semantics<parallel>], iteration_bounds = array<i64: 1>, scalar_prefetch = 0 : i64, scratch_operands = 1 : i64, tpu.core_type = #tpu.core_type<tc>, window_params = [{transform_indices = @transform_0, window_bounds = array<i64: 64, 32>}, {transform_indices = @transform_1, window_bounds = array<i64: 8, 8>}, {pipeline_mode = #tpu.pipeline_mode<synchronous>, transform_indices = @transform_2, window_bounds = array<i64: 32, 96>}, {pipeline_mode = #tpu.pipeline_mode<synchronous>, transform_indices = @transform_3, window_bounds = array<i64: 1, 96>}, {pipeline_mode = #tpu.pipeline_mode<synchronous>, transform_indices = @transform_4, window_bounds = array<i64: 32, 32>}, {pipeline_mode = #tpu.pipeline_mode<synchronous>, transform_indices = @transform_5, window_bounds = array<i64: 32, 64>}, {pipeline_mode = #tpu.pipeline_mode<synchronous>, transform_indices = @transform_6, window_bounds = array<i64: 1, 64>}, {pipeline_mode = #tpu.pipeline_mode<synchronous>, transform_indices = @transform_7, window_bounds = array<i64: 64, 32>}, {pipeline_mode = #tpu.pipeline_mode<synchronous>, transform_indices = @transform_8, window_bounds = array<i64: 6, 32>}, {transform_indices = @transform_9, window_bounds = array<i64: 64, 32>}]} {
    %c0 = arith.constant 0 : index
    %c0_0 = arith.constant 0 : index
    %0 = vector.load %arg1[%c0, %c0_0] : memref<64x32xf32, #tpu.memory_space<vmem>>, vector<64x32xf32>
    %1 = arith.truncf %0 : vector<64x32xf32> to vector<64x32xbf16>
    %c0_1 = arith.constant 0 : index
    %c0_2 = arith.constant 0 : index
    %2 = vector.load %arg2[%c0_1, %c0_2] : memref<8x8xf32, #tpu.memory_space<vmem>>, vector<8x8xf32>
    %3 = vector.shape_cast %2 : vector<8x8xf32> to vector<8x1x8xf32>
    %c0_3 = arith.constant 0 : index
    %c0_4 = arith.constant 0 : index
    %4 = vector.load %arg9[%c0_3, %c0_4] : memref<6x32xf32, #tpu.memory_space<vmem>>, vector<6x32xf32>
    %5 = vector.extract_strided_slice %4 {offsets = [0, 0], sizes = [1, 32], strides = [1, 1]} : vector<6x32xf32> to vector<1x32xf32>
    %6 = vector.extract_strided_slice %4 {offsets = [1, 0], sizes = [1, 32], strides = [1, 1]} : vector<6x32xf32> to vector<1x32xf32>
    %7 = vector.extract_strided_slice %4 {offsets = [2, 0], sizes = [1, 32], strides = [1, 1]} : vector<6x32xf32> to vector<1x32xf32>
    %8 = vector.extract_strided_slice %4 {offsets = [3, 0], sizes = [1, 32], strides = [1, 1]} : vector<6x32xf32> to vector<1x32xf32>
    %9 = vector.extract_strided_slice %4 {offsets = [4, 0], sizes = [1, 32], strides = [1, 1]} : vector<6x32xf32> to vector<1x32xf32>
    %10 = vector.extract_strided_slice %4 {offsets = [5, 0], sizes = [1, 32], strides = [1, 1]} : vector<6x32xf32> to vector<1x32xf32>
    %c0_5 = arith.constant 0 : index
    %c0_6 = arith.constant 0 : index
    %11 = vector.load %arg3[%c0_5, %c0_6] : memref<32x96xbf16, #tpu.memory_space<vmem>>, vector<32x96xbf16>
    %cst = arith.constant dense<0.000000e+00> : vector<64x96xf32>
    %12 = tpu.matmul %1, %11, %cst {dimension_numbers = #tpu.dot_dimension_numbers<[1], [0], [0], [1], [0, 0, 1, 1], [], []>} : vector<64x32xbf16>, vector<32x96xbf16>, vector<64x96xf32> -> vector<64x96xf32>
    %c0_7 = arith.constant 0 : index
    %c0_8 = arith.constant 0 : index
    %13 = vector.load %arg4[%c0_7, %c0_8] : memref<1x96xf32, #tpu.memory_space<vmem>>, vector<1x96xf32>
    %14 = vector.broadcast %13 : vector<1x96xf32> to vector<64x96xf32>
    %15 = arith.addf %12, %14 : vector<64x96xf32>
    %16 = arith.truncf %15 : vector<64x96xf32> to vector<64x96xbf16>
    %17 = vector.extract_strided_slice %16 {offsets = [0, 0], sizes = [64, 4], strides = [1, 1]} : vector<64x96xbf16> to vector<64x4xbf16>
    %18 = vector.shape_cast %17 : vector<64x4xbf16> to vector<8x8x4xbf16>
    %19 = vector.extract_strided_slice %16 {offsets = [0, 32], sizes = [64, 4], strides = [1, 1]} : vector<64x96xbf16> to vector<64x4xbf16>
    %20 = vector.shape_cast %19 : vector<64x4xbf16> to vector<8x8x4xbf16>
    %21 = vector.extract_strided_slice %16 {offsets = [0, 64], sizes = [64, 4], strides = [1, 1]} : vector<64x96xbf16> to vector<64x4xbf16>
    %22 = vector.shape_cast %21 : vector<64x4xbf16> to vector<8x8x4xbf16>
    "tpu.trace_start"() <{level = 10 : i32, message = "nqd,nkd->nqk"}> : () -> ()
    %cst_9 = arith.constant dense<0.000000e+00> : vector<8x8x8xf32>
    %23 = tpu.matmul %18, %20, %cst_9 {dimension_numbers = #tpu.dot_dimension_numbers<[2], [2], [1], [1], [0, 0, 0, 1, 1, 1], [0], [0]>} : vector<8x8x4xbf16>, vector<8x8x4xbf16>, vector<8x8x8xf32> -> vector<8x8x8xf32>
    "tpu.trace_stop"() : () -> ()
    %24 = vector.broadcast %3 : vector<8x1x8xf32> to vector<8x8x8xf32>
    %25 = arith.addf %23, %24 : vector<8x8x8xf32>
    %cst_10 = arith.constant dense<0xFF800000> : vector<8x8xf32>
    %26 = vector.multi_reduction <maximumf>, %25, %cst_10 [2] : vector<8x8x8xf32> to vector<8x8xf32>
    %27 = vector.shape_cast %26 : vector<8x8xf32> to vector<8x8x1xf32>
    %28 = vector.broadcast %27 : vector<8x8x1xf32> to vector<8x8x8xf32>
    %29 = arith.subf %25, %28 : vector<8x8x8xf32>
    %30 = math.exp %29 : vector<8x8x8xf32>
    %cst_11 = arith.constant dense<0.000000e+00> : vector<8x8xf32>
    %31 = vector.multi_reduction <add>, %30, %cst_11 [2] : vector<8x8x8xf32> to vector<8x8xf32>
    %32 = vector.shape_cast %31 : vector<8x8xf32> to vector<8x8x1xf32>
    %33 = tpu.reciprocal %32 : vector<8x8x1xf32> -> vector<8x8x1xf32>
    %34 = vector.broadcast %33 : vector<8x8x1xf32> to vector<8x8x8xf32>
    %35 = arith.mulf %30, %34 : vector<8x8x8xf32>
    %36 = arith.truncf %35 : vector<8x8x8xf32> to vector<8x8x8xbf16>
    "tpu.trace_start"() <{level = 10 : i32, message = "nqk,nkd->nqd"}> : () -> ()
    %cst_12 = arith.constant dense<0.000000e+00> : vector<8x8x4xf32>
    %37 = tpu.matmul %36, %22, %cst_12 {dimension_numbers = #tpu.dot_dimension_numbers<[2], [1], [1], [2], [0, 0, 0, 1, 1, 2], [0], [0]>} : vector<8x8x8xbf16>, vector<8x8x4xbf16>, vector<8x8x4xf32> -> vector<8x8x4xf32>
    "tpu.trace_stop"() : () -> ()
    %38 = vector.shape_cast %37 : vector<8x8x4xf32> to vector<64x4xf32>
    %c0_13 = arith.constant 0 : index
    %c0_14 = arith.constant 0 : index
    %39 = vector.load %arg11[%c0_13, %c0_14] : memref<64x32xf32, #tpu.memory_space<vmem>>, vector<64x4xf32>
    tpu.vector_store %arg11[%c0_13, %c0_14], %38 {strides = array<i32>} : memref<64x32xf32, #tpu.memory_space<vmem>>, vector<64x4xf32>,
    %40 = vector.extract_strided_slice %16 {offsets = [0, 4], sizes = [64, 4], strides = [1, 1]} : vector<64x96xbf16> to vector<64x4xbf16>
    %41 = vector.shape_cast %40 : vector<64x4xbf16> to vector<8x8x4xbf16>
    %42 = vector.extract_strided_slice %16 {offsets = [0, 36], sizes = [64, 4], strides = [1, 1]} : vector<64x96xbf16> to vector<64x4xbf16>
    %43 = vector.shape_cast %42 : vector<64x4xbf16> to vector<8x8x4xbf16>
    %44 = vector.extract_strided_slice %16 {offsets = [0, 68], sizes = [64, 4], strides = [1, 1]} : vector<64x96xbf16> to vector<64x4xbf16>
    %45 = vector.shape_cast %44 : vector<64x4xbf16> to vector<8x8x4xbf16>
    "tpu.trace_start"() <{level = 10 : i32, message = "nqd,nkd->nqk"}> : () -> ()
    %cst_15 = arith.constant dense<0.000000e+00> : vector<8x8x8xf32>
    %46 = tpu.matmul %41, %43, %cst_15 {dimension_numbers = #tpu.dot_dimension_numbers<[2], [2], [1], [1], [0, 0, 0, 1, 1, 1], [0], [0]>} : vector<8x8x4xbf16>, vector<8x8x4xbf16>, vector<8x8x8xf32> -> vector<8x8x8xf32>
    "tpu.trace_stop"() : () -> ()
    %47 = vector.broadcast %3 : vector<8x1x8xf32> to vector<8x8x8xf32>
    %48 = arith.addf %46, %47 : vector<8x8x8xf32>
    %cst_16 = arith.constant dense<0xFF800000> : vector<8x8xf32>
    %49 = vector.multi_reduction <maximumf>, %48, %cst_16 [2] : vector<8x8x8xf32> to vector<8x8xf32>
    %50 = vector.shape_cast %49 : vector<8x8xf32> to vector<8x8x1xf32>
    %51 = vector.broadcast %50 : vector<8x8x1xf32> to vector<8x8x8xf32>
    %52 = arith.subf %48, %51 : vector<8x8x8xf32>
    %53 = math.exp %52 : vector<8x8x8xf32>
    %cst_17 = arith.constant dense<0.000000e+00> : vector<8x8xf32>
    %54 = vector.multi_reduction <add>, %53, %cst_17 [2] : vector<8x8x8xf32> to vector<8x8xf32>
    %55 = vector.shape_cast %54 : vector<8x8xf32> to vector<8x8x1xf32>
    %56 = tpu.reciprocal %55 : vector<8x8x1xf32> -> vector<8x8x1xf32>
    %57 = vector.broadcast %56 : vector<8x8x1xf32> to vector<8x8x8xf32>
    %58 = arith.mulf %53, %57 : vector<8x8x8xf32>
    %59 = arith.truncf %58 : vector<8x8x8xf32> to vector<8x8x8xbf16>
    "tpu.trace_start"() <{level = 10 : i32, message = "nqk,nkd->nqd"}> : () -> ()
    %cst_18 = arith.constant dense<0.000000e+00> : vector<8x8x4xf32>
    %60 = tpu.matmul %59, %45, %cst_18 {dimension_numbers = #tpu.dot_dimension_numbers<[2], [1], [1], [2], [0, 0, 0, 1, 1, 2], [0], [0]>} : vector<8x8x8xbf16>, vector<8x8x4xbf16>, vector<8x8x4xf32> -> vector<8x8x4xf32>
    "tpu.trace_stop"() : () -> ()
    %61 = vector.shape_cast %60 : vector<8x8x4xf32> to vector<64x4xf32>
    %c0_19 = arith.constant 0 : index
    %c4 = arith.constant 4 : index
    %62 = vector.load %arg11[%c0_19, %c4] : memref<64x32xf32, #tpu.memory_space<vmem>>, vector<64x4xf32>
    tpu.vector_store %arg11[%c0_19, %c4], %61 {strides = array<i32>} : memref<64x32xf32, #tpu.memory_space<vmem>>, vector<64x4xf32>,
    %63 = vector.extract_strided_slice %16 {offsets = [0, 8], sizes = [64, 4], strides = [1, 1]} : vector<64x96xbf16> to vector<64x4xbf16>
    %64 = vector.shape_cast %63 : vector<64x4xbf16> to vector<8x8x4xbf16>
    %65 = vector.extract_strided_slice %16 {offsets = [0, 40], sizes = [64, 4], strides = [1, 1]} : vector<64x96xbf16> to vector<64x4xbf16>
    %66 = vector.shape_cast %65 : vector<64x4xbf16> to vector<8x8x4xbf16>
    %67 = vector.extract_strided_slice %16 {offsets = [0, 72], sizes = [64, 4], strides = [1, 1]} : vector<64x96xbf16> to vector<64x4xbf16>
    %68 = vector.shape_cast %67 : vector<64x4xbf16> to vector<8x8x4xbf16>
    "tpu.trace_start"() <{level = 10 : i32, message = "nqd,nkd->nqk"}> : () -> ()
    %cst_20 = arith.constant dense<0.000000e+00> : vector<8x8x8xf32>
    %69 = tpu.matmul %64, %66, %cst_20 {dimension_numbers = #tpu.dot_dimension_numbers<[2], [2], [1], [1], [0, 0, 0, 1, 1, 1], [0], [0]>} : vector<8x8x4xbf16>, vector<8x8x4xbf16>, vector<8x8x8xf32> -> vector<8x8x8xf32>
    "tpu.trace_stop"() : () -> ()
    %70 = vector.broadcast %3 : vector<8x1x8xf32> to vector<8x8x8xf32>
    %71 = arith.addf %69, %70 : vector<8x8x8xf32>
    %cst_21 = arith.constant dense<0xFF800000> : vector<8x8xf32>
    %72 = vector.multi_reduction <maximumf>, %71, %cst_21 [2] : vector<8x8x8xf32> to vector<8x8xf32>
    %73 = vector.shape_cast %72 : vector<8x8xf32> to vector<8x8x1xf32>
    %74 = vector.broadcast %73 : vector<8x8x1xf32> to vector<8x8x8xf32>
    %75 = arith.subf %71, %74 : vector<8x8x8xf32>
    %76 = math.exp %75 : vector<8x8x8xf32>
    %cst_22 = arith.constant dense<0.000000e+00> : vector<8x8xf32>
    %77 = vector.multi_reduction <add>, %76, %cst_22 [2] : vector<8x8x8xf32> to vector<8x8xf32>
    %78 = vector.shape_cast %77 : vector<8x8xf32> to vector<8x8x1xf32>
    %79 = tpu.reciprocal %78 : vector<8x8x1xf32> -> vector<8x8x1xf32>
    %80 = vector.broadcast %79 : vector<8x8x1xf32> to vector<8x8x8xf32>
    %81 = arith.mulf %76, %80 : vector<8x8x8xf32>
    %82 = arith.truncf %81 : vector<8x8x8xf32> to vector<8x8x8xbf16>
    "tpu.trace_start"() <{level = 10 : i32, message = "nqk,nkd->nqd"}> : () -> ()
    %cst_23 = arith.constant dense<0.000000e+00> : vector<8x8x4xf32>
    %83 = tpu.matmul %82, %68, %cst_23 {dimension_numbers = #tpu.dot_dimension_numbers<[2], [1], [1], [2], [0, 0, 0, 1, 1, 2], [0], [0]>} : vector<8x8x8xbf16>, vector<8x8x4xbf16>, vector<8x8x4xf32> -> vector<8x8x4xf32>
    "tpu.trace_stop"() : () -> ()
    %84 = vector.shape_cast %83 : vector<8x8x4xf32> to vector<64x4xf32>
    %c0_24 = arith.constant 0 : index
    %c8 = arith.constant 8 : index
    %85 = vector.load %arg11[%c0_24, %c8] : memref<64x32xf32, #tpu.memory_space<vmem>>, vector<64x4xf32>
    tpu.vector_store %arg11[%c0_24, %c8], %84 {strides = array<i32>} : memref<64x32xf32, #tpu.memory_space<vmem>>, vector<64x4xf32>,
    %86 = vector.extract_strided_slice %16 {offsets = [0, 12], sizes = [64, 4], strides = [1, 1]} : vector<64x96xbf16> to vector<64x4xbf16>
    %87 = vector.shape_cast %86 : vector<64x4xbf16> to vector<8x8x4xbf16>
    %88 = vector.extract_strided_slice %16 {offsets = [0, 44], sizes = [64, 4], strides = [1, 1]} : vector<64x96xbf16> to vector<64x4xbf16>
    %89 = vector.shape_cast %88 : vector<64x4xbf16> to vector<8x8x4xbf16>
    %90 = vector.extract_strided_slice %16 {offsets = [0, 76], sizes = [64, 4], strides = [1, 1]} : vector<64x96xbf16> to vector<64x4xbf16>
    %91 = vector.shape_cast %90 : vector<64x4xbf16> to vector<8x8x4xbf16>
    "tpu.trace_start"() <{level = 10 : i32, message = "nqd,nkd->nqk"}> : () -> ()
    %cst_25 = arith.constant dense<0.000000e+00> : vector<8x8x8xf32>
    %92 = tpu.matmul %87, %89, %cst_25 {dimension_numbers = #tpu.dot_dimension_numbers<[2], [2], [1], [1], [0, 0, 0, 1, 1, 1], [0], [0]>} : vector<8x8x4xbf16>, vector<8x8x4xbf16>, vector<8x8x8xf32> -> vector<8x8x8xf32>
    "tpu.trace_stop"() : () -> ()
    %93 = vector.broadcast %3 : vector<8x1x8xf32> to vector<8x8x8xf32>
    %94 = arith.addf %92, %93 : vector<8x8x8xf32>
    %cst_26 = arith.constant dense<0xFF800000> : vector<8x8xf32>
    %95 = vector.multi_reduction <maximumf>, %94, %cst_26 [2] : vector<8x8x8xf32> to vector<8x8xf32>
    %96 = vector.shape_cast %95 : vector<8x8xf32> to vector<8x8x1xf32>
    %97 = vector.broadcast %96 : vector<8x8x1xf32> to vector<8x8x8xf32>
    %98 = arith.subf %94, %97 : vector<8x8x8xf32>
    %99 = math.exp %98 : vector<8x8x8xf32>
    %cst_27 = arith.constant dense<0.000000e+00> : vector<8x8xf32>
    %100 = vector.multi_reduction <add>, %99, %cst_27 [2] : vector<8x8x8xf32> to vector<8x8xf32>
    %101 = vector.shape_cast %100 : vector<8x8xf32> to vector<8x8x1xf32>
    %102 = tpu.reciprocal %101 : vector<8x8x1xf32> -> vector<8x8x1xf32>
    %103 = vector.broadcast %102 : vector<8x8x1xf32> to vector<8x8x8xf32>
    %104 = arith.mulf %99, %103 : vector<8x8x8xf32>
    %105 = arith.truncf %104 : vector<8x8x8xf32> to vector<8x8x8xbf16>
    "tpu.trace_start"() <{level = 10 : i32, message = "nqk,nkd->nqd"}> : () -> ()
    %cst_28 = arith.constant dense<0.000000e+00> : vector<8x8x4xf32>
    %106 = tpu.matmul %105, %91, %cst_28 {dimension_numbers = #tpu.dot_dimension_numbers<[2], [1], [1], [2], [0, 0, 0, 1, 1, 2], [0], [0]>} : vector<8x8x8xbf16>, vector<8x8x4xbf16>, vector<8x8x4xf32> -> vector<8x8x4xf32>
    "tpu.trace_stop"() : () -> ()
    %107 = vector.shape_cast %106 : vector<8x8x4xf32> to vector<64x4xf32>
    %c0_29 = arith.constant 0 : index
    %c12 = arith.constant 12 : index
    %108 = vector.load %arg11[%c0_29, %c12] : memref<64x32xf32, #tpu.memory_space<vmem>>, vector<64x4xf32>
    tpu.vector_store %arg11[%c0_29, %c12], %107 {strides = array<i32>} : memref<64x32xf32, #tpu.memory_space<vmem>>, vector<64x4xf32>,
    %109 = vector.extract_strided_slice %16 {offsets = [0, 16], sizes = [64, 4], strides = [1, 1]} : vector<64x96xbf16> to vector<64x4xbf16>
    %110 = vector.shape_cast %109 : vector<64x4xbf16> to vector<8x8x4xbf16>
    %111 = vector.extract_strided_slice %16 {offsets = [0, 48], sizes = [64, 4], strides = [1, 1]} : vector<64x96xbf16> to vector<64x4xbf16>
    %112 = vector.shape_cast %111 : vector<64x4xbf16> to vector<8x8x4xbf16>
    %113 = vector.extract_strided_slice %16 {offsets = [0, 80], sizes = [64, 4], strides = [1, 1]} : vector<64x96xbf16> to vector<64x4xbf16>
    %114 = vector.shape_cast %113 : vector<64x4xbf16> to vector<8x8x4xbf16>
    "tpu.trace_start"() <{level = 10 : i32, message = "nqd,nkd->nqk"}> : () -> ()
    %cst_30 = arith.constant dense<0.000000e+00> : vector<8x8x8xf32>
    %115 = tpu.matmul %110, %112, %cst_30 {dimension_numbers = #tpu.dot_dimension_numbers<[2], [2], [1], [1], [0, 0, 0, 1, 1, 1], [0], [0]>} : vector<8x8x4xbf16>, vector<8x8x4xbf16>, vector<8x8x8xf32> -> vector<8x8x8xf32>
    "tpu.trace_stop"() : () -> ()
    %116 = vector.broadcast %3 : vector<8x1x8xf32> to vector<8x8x8xf32>
    %117 = arith.addf %115, %116 : vector<8x8x8xf32>
    %cst_31 = arith.constant dense<0xFF800000> : vector<8x8xf32>
    %118 = vector.multi_reduction <maximumf>, %117, %cst_31 [2] : vector<8x8x8xf32> to vector<8x8xf32>
    %119 = vector.shape_cast %118 : vector<8x8xf32> to vector<8x8x1xf32>
    %120 = vector.broadcast %119 : vector<8x8x1xf32> to vector<8x8x8xf32>
    %121 = arith.subf %117, %120 : vector<8x8x8xf32>
    %122 = math.exp %121 : vector<8x8x8xf32>
    %cst_32 = arith.constant dense<0.000000e+00> : vector<8x8xf32>
    %123 = vector.multi_reduction <add>, %122, %cst_32 [2] : vector<8x8x8xf32> to vector<8x8xf32>
    %124 = vector.shape_cast %123 : vector<8x8xf32> to vector<8x8x1xf32>
    %125 = tpu.reciprocal %124 : vector<8x8x1xf32> -> vector<8x8x1xf32>
    %126 = vector.broadcast %125 : vector<8x8x1xf32> to vector<8x8x8xf32>
    %127 = arith.mulf %122, %126 : vector<8x8x8xf32>
    %128 = arith.truncf %127 : vector<8x8x8xf32> to vector<8x8x8xbf16>
    "tpu.trace_start"() <{level = 10 : i32, message = "nqk,nkd->nqd"}> : () -> ()
    %cst_33 = arith.constant dense<0.000000e+00> : vector<8x8x4xf32>
    %129 = tpu.matmul %128, %114, %cst_33 {dimension_numbers = #tpu.dot_dimension_numbers<[2], [1], [1], [2], [0, 0, 0, 1, 1, 2], [0], [0]>} : vector<8x8x8xbf16>, vector<8x8x4xbf16>, vector<8x8x4xf32> -> vector<8x8x4xf32>
    "tpu.trace_stop"() : () -> ()
    %130 = vector.shape_cast %129 : vector<8x8x4xf32> to vector<64x4xf32>
    %c0_34 = arith.constant 0 : index
    %c16 = arith.constant 16 : index
    %131 = vector.load %arg11[%c0_34, %c16] : memref<64x32xf32, #tpu.memory_space<vmem>>, vector<64x4xf32>
    tpu.vector_store %arg11[%c0_34, %c16], %130 {strides = array<i32>} : memref<64x32xf32, #tpu.memory_space<vmem>>, vector<64x4xf32>,
    %132 = vector.extract_strided_slice %16 {offsets = [0, 20], sizes = [64, 4], strides = [1, 1]} : vector<64x96xbf16> to vector<64x4xbf16>
    %133 = vector.shape_cast %132 : vector<64x4xbf16> to vector<8x8x4xbf16>
    %134 = vector.extract_strided_slice %16 {offsets = [0, 52], sizes = [64, 4], strides = [1, 1]} : vector<64x96xbf16> to vector<64x4xbf16>
    %135 = vector.shape_cast %134 : vector<64x4xbf16> to vector<8x8x4xbf16>
    %136 = vector.extract_strided_slice %16 {offsets = [0, 84], sizes = [64, 4], strides = [1, 1]} : vector<64x96xbf16> to vector<64x4xbf16>
    %137 = vector.shape_cast %136 : vector<64x4xbf16> to vector<8x8x4xbf16>
    "tpu.trace_start"() <{level = 10 : i32, message = "nqd,nkd->nqk"}> : () -> ()
    %cst_35 = arith.constant dense<0.000000e+00> : vector<8x8x8xf32>
    %138 = tpu.matmul %133, %135, %cst_35 {dimension_numbers = #tpu.dot_dimension_numbers<[2], [2], [1], [1], [0, 0, 0, 1, 1, 1], [0], [0]>} : vector<8x8x4xbf16>, vector<8x8x4xbf16>, vector<8x8x8xf32> -> vector<8x8x8xf32>
    "tpu.trace_stop"() : () -> ()
    %139 = vector.broadcast %3 : vector<8x1x8xf32> to vector<8x8x8xf32>
    %140 = arith.addf %138, %139 : vector<8x8x8xf32>
    %cst_36 = arith.constant dense<0xFF800000> : vector<8x8xf32>
    %141 = vector.multi_reduction <maximumf>, %140, %cst_36 [2] : vector<8x8x8xf32> to vector<8x8xf32>
    %142 = vector.shape_cast %141 : vector<8x8xf32> to vector<8x8x1xf32>
    %143 = vector.broadcast %142 : vector<8x8x1xf32> to vector<8x8x8xf32>
    %144 = arith.subf %140, %143 : vector<8x8x8xf32>
    %145 = math.exp %144 : vector<8x8x8xf32>
    %cst_37 = arith.constant dense<0.000000e+00> : vector<8x8xf32>
    %146 = vector.multi_reduction <add>, %145, %cst_37 [2] : vector<8x8x8xf32> to vector<8x8xf32>
    %147 = vector.shape_cast %146 : vector<8x8xf32> to vector<8x8x1xf32>
    %148 = tpu.reciprocal %147 : vector<8x8x1xf32> -> vector<8x8x1xf32>
    %149 = vector.broadcast %148 : vector<8x8x1xf32> to vector<8x8x8xf32>
    %150 = arith.mulf %145, %149 : vector<8x8x8xf32>
    %151 = arith.truncf %150 : vector<8x8x8xf32> to vector<8x8x8xbf16>
    "tpu.trace_start"() <{level = 10 : i32, message = "nqk,nkd->nqd"}> : () -> ()
    %cst_38 = arith.constant dense<0.000000e+00> : vector<8x8x4xf32>
    %152 = tpu.matmul %151, %137, %cst_38 {dimension_numbers = #tpu.dot_dimension_numbers<[2], [1], [1], [2], [0, 0, 0, 1, 1, 2], [0], [0]>} : vector<8x8x8xbf16>, vector<8x8x4xbf16>, vector<8x8x4xf32> -> vector<8x8x4xf32>
    "tpu.trace_stop"() : () -> ()
    %153 = vector.shape_cast %152 : vector<8x8x4xf32> to vector<64x4xf32>
    %c0_39 = arith.constant 0 : index
    %c20 = arith.constant 20 : index
    %154 = vector.load %arg11[%c0_39, %c20] : memref<64x32xf32, #tpu.memory_space<vmem>>, vector<64x4xf32>
    tpu.vector_store %arg11[%c0_39, %c20], %153 {strides = array<i32>} : memref<64x32xf32, #tpu.memory_space<vmem>>, vector<64x4xf32>,
    %155 = vector.extract_strided_slice %16 {offsets = [0, 24], sizes = [64, 4], strides = [1, 1]} : vector<64x96xbf16> to vector<64x4xbf16>
    %156 = vector.shape_cast %155 : vector<64x4xbf16> to vector<8x8x4xbf16>
    %157 = vector.extract_strided_slice %16 {offsets = [0, 56], sizes = [64, 4], strides = [1, 1]} : vector<64x96xbf16> to vector<64x4xbf16>
    %158 = vector.shape_cast %157 : vector<64x4xbf16> to vector<8x8x4xbf16>
    %159 = vector.extract_strided_slice %16 {offsets = [0, 88], sizes = [64, 4], strides = [1, 1]} : vector<64x96xbf16> to vector<64x4xbf16>
    %160 = vector.shape_cast %159 : vector<64x4xbf16> to vector<8x8x4xbf16>
    "tpu.trace_start"() <{level = 10 : i32, message = "nqd,nkd->nqk"}> : () -> ()
    %cst_40 = arith.constant dense<0.000000e+00> : vector<8x8x8xf32>
    %161 = tpu.matmul %156, %158, %cst_40 {dimension_numbers = #tpu.dot_dimension_numbers<[2], [2], [1], [1], [0, 0, 0, 1, 1, 1], [0], [0]>} : vector<8x8x4xbf16>, vector<8x8x4xbf16>, vector<8x8x8xf32> -> vector<8x8x8xf32>
    "tpu.trace_stop"() : () -> ()
    %162 = vector.broadcast %3 : vector<8x1x8xf32> to vector<8x8x8xf32>
    %163 = arith.addf %161, %162 : vector<8x8x8xf32>
    %cst_41 = arith.constant dense<0xFF800000> : vector<8x8xf32>
    %164 = vector.multi_reduction <maximumf>, %163, %cst_41 [2] : vector<8x8x8xf32> to vector<8x8xf32>
    %165 = vector.shape_cast %164 : vector<8x8xf32> to vector<8x8x1xf32>
    %166 = vector.broadcast %165 : vector<8x8x1xf32> to vector<8x8x8xf32>
    %167 = arith.subf %163, %166 : vector<8x8x8xf32>
    %168 = math.exp %167 : vector<8x8x8xf32>
    %cst_42 = arith.constant dense<0.000000e+00> : vector<8x8xf32>
    %169 = vector.multi_reduction <add>, %168, %cst_42 [2] : vector<8x8x8xf32> to vector<8x8xf32>
    %170 = vector.shape_cast %169 : vector<8x8xf32> to vector<8x8x1xf32>
    %171 = tpu.reciprocal %170 : vector<8x8x1xf32> -> vector<8x8x1xf32>
    %172 = vector.broadcast %171 : vector<8x8x1xf32> to vector<8x8x8xf32>
    %173 = arith.mulf %168, %172 : vector<8x8x8xf32>
    %174 = arith.truncf %173 : vector<8x8x8xf32> to vector<8x8x8xbf16>
    "tpu.trace_start"() <{level = 10 : i32, message = "nqk,nkd->nqd"}> : () -> ()
    %cst_43 = arith.constant dense<0.000000e+00> : vector<8x8x4xf32>
    %175 = tpu.matmul %174, %160, %cst_43 {dimension_numbers = #tpu.dot_dimension_numbers<[2], [1], [1], [2], [0, 0, 0, 1, 1, 2], [0], [0]>} : vector<8x8x8xbf16>, vector<8x8x4xbf16>, vector<8x8x4xf32> -> vector<8x8x4xf32>
    "tpu.trace_stop"() : () -> ()
    %176 = vector.shape_cast %175 : vector<8x8x4xf32> to vector<64x4xf32>
    %c0_44 = arith.constant 0 : index
    %c24 = arith.constant 24 : index
    %177 = vector.load %arg11[%c0_44, %c24] : memref<64x32xf32, #tpu.memory_space<vmem>>, vector<64x4xf32>
    tpu.vector_store %arg11[%c0_44, %c24], %176 {strides = array<i32>} : memref<64x32xf32, #tpu.memory_space<vmem>>, vector<64x4xf32>,
    %178 = vector.extract_strided_slice %16 {offsets = [0, 28], sizes = [64, 4], strides = [1, 1]} : vector<64x96xbf16> to vector<64x4xbf16>
    %179 = vector.shape_cast %178 : vector<64x4xbf16> to vector<8x8x4xbf16>
    %180 = vector.extract_strided_slice %16 {offsets = [0, 60], sizes = [64, 4], strides = [1, 1]} : vector<64x96xbf16> to vector<64x4xbf16>
    %181 = vector.shape_cast %180 : vector<64x4xbf16> to vector<8x8x4xbf16>
    %182 = vector.extract_strided_slice %16 {offsets = [0, 92], sizes = [64, 4], strides = [1, 1]} : vector<64x96xbf16> to vector<64x4xbf16>
    %183 = vector.shape_cast %182 : vector<64x4xbf16> to vector<8x8x4xbf16>
    "tpu.trace_start"() <{level = 10 : i32, message = "nqd,nkd->nqk"}> : () -> ()
    %cst_45 = arith.constant dense<0.000000e+00> : vector<8x8x8xf32>
    %184 = tpu.matmul %179, %181, %cst_45 {dimension_numbers = #tpu.dot_dimension_numbers<[2], [2], [1], [1], [0, 0, 0, 1, 1, 1], [0], [0]>} : vector<8x8x4xbf16>, vector<8x8x4xbf16>, vector<8x8x8xf32> -> vector<8x8x8xf32>
    "tpu.trace_stop"() : () -> ()
    %185 = vector.broadcast %3 : vector<8x1x8xf32> to vector<8x8x8xf32>
    %186 = arith.addf %184, %185 : vector<8x8x8xf32>
    %cst_46 = arith.constant dense<0xFF800000> : vector<8x8xf32>
    %187 = vector.multi_reduction <maximumf>, %186, %cst_46 [2] : vector<8x8x8xf32> to vector<8x8xf32>
    %188 = vector.shape_cast %187 : vector<8x8xf32> to vector<8x8x1xf32>
    %189 = vector.broadcast %188 : vector<8x8x1xf32> to vector<8x8x8xf32>
    %190 = arith.subf %186, %189 : vector<8x8x8xf32>
    %191 = math.exp %190 : vector<8x8x8xf32>
    %cst_47 = arith.constant dense<0.000000e+00> : vector<8x8xf32>
    %192 = vector.multi_reduction <add>, %191, %cst_47 [2] : vector<8x8x8xf32> to vector<8x8xf32>
    %193 = vector.shape_cast %192 : vector<8x8xf32> to vector<8x8x1xf32>
    %194 = tpu.reciprocal %193 : vector<8x8x1xf32> -> vector<8x8x1xf32>
    %195 = vector.broadcast %194 : vector<8x8x1xf32> to vector<8x8x8xf32>
    %196 = arith.mulf %191, %195 : vector<8x8x8xf32>
    %197 = arith.truncf %196 : vector<8x8x8xf32> to vector<8x8x8xbf16>
    "tpu.trace_start"() <{level = 10 : i32, message = "nqk,nkd->nqd"}> : () -> ()
    %cst_48 = arith.constant dense<0.000000e+00> : vector<8x8x4xf32>
    %198 = tpu.matmul %197, %183, %cst_48 {dimension_numbers = #tpu.dot_dimension_numbers<[2], [1], [1], [2], [0, 0, 0, 1, 1, 2], [0], [0]>} : vector<8x8x8xbf16>, vector<8x8x4xbf16>, vector<8x8x4xf32> -> vector<8x8x4xf32>
    "tpu.trace_stop"() : () -> ()
    %199 = vector.shape_cast %198 : vector<8x8x4xf32> to vector<64x4xf32>
    %c0_49 = arith.constant 0 : index
    %c28 = arith.constant 28 : index
    %200 = vector.load %arg11[%c0_49, %c28] : memref<64x32xf32, #tpu.memory_space<vmem>>, vector<64x4xf32>
    tpu.vector_store %arg11[%c0_49, %c28], %199 {strides = array<i32>} : memref<64x32xf32, #tpu.memory_space<vmem>>, vector<64x4xf32>,
    %c0_50 = arith.constant 0 : index
    %c0_51 = arith.constant 0 : index
    %201 = vector.load %arg11[%c0_50, %c0_51] : memref<64x32xf32, #tpu.memory_space<vmem>>, vector<64x32xf32>
    %202 = arith.truncf %201 : vector<64x32xf32> to vector<64x32xbf16>
    %c0_52 = arith.constant 0 : index
    %c0_53 = arith.constant 0 : index
    %203 = vector.load %arg5[%c0_52, %c0_53] : memref<32x32xbf16, #tpu.memory_space<vmem>>, vector<32x32xbf16>
    %cst_54 = arith.constant dense<0.000000e+00> : vector<64x32xf32>
    %204 = tpu.matmul %202, %203, %cst_54 {dimension_numbers = #tpu.dot_dimension_numbers<[1], [0], [0], [1], [0, 0, 1, 1], [], []>} : vector<64x32xbf16>, vector<32x32xbf16>, vector<64x32xf32> -> vector<64x32xf32>
    %205 = vector.broadcast %5 : vector<1x32xf32> to vector<64x32xf32>
    %206 = arith.addf %204, %205 : vector<64x32xf32>
    %207 = arith.addf %0, %206 : vector<64x32xf32>
    %cst_55 = arith.constant dense<0.000000e+00> : vector<64xf32>
    %208 = vector.multi_reduction <add>, %207, %cst_55 [1] : vector<64x32xf32> to vector<64xf32>
    %209 = vector.shape_cast %208 : vector<64xf32> to vector<64x1xf32>
    %cst_56 = arith.constant 3.200000e+01 : f32
    %210 = vector.broadcast %cst_56 : f32 to vector<64x1xf32>
    %211 = arith.divf %209, %210 : vector<64x1xf32>
    %212 = vector.broadcast %211 : vector<64x1xf32> to vector<64x32xf32>
    %213 = arith.subf %207, %212 : vector<64x32xf32>
    %214 = arith.mulf %213, %213 : vector<64x32xf32>
    %cst_57 = arith.constant dense<0.000000e+00> : vector<64xf32>
    %215 = vector.multi_reduction <add>, %214, %cst_57 [1] : vector<64x32xf32> to vector<64xf32>
    %216 = vector.shape_cast %215 : vector<64xf32> to vector<64x1xf32>
    %cst_58 = arith.constant 3.200000e+01 : f32
    %217 = vector.broadcast %cst_58 : f32 to vector<64x1xf32>
    %218 = arith.divf %216, %217 : vector<64x1xf32>
    %cst_59 = arith.constant 9.99999974E-6 : f32
    %219 = vector.broadcast %cst_59 : f32 to vector<64x1xf32>
    %220 = arith.addf %218, %219 : vector<64x1xf32>
    %221 = math.rsqrt %220 : vector<64x1xf32>
    %222 = vector.broadcast %221 : vector<64x1xf32> to vector<64x32xf32>
    %223 = arith.mulf %213, %222 : vector<64x32xf32>
    %224 = vector.broadcast %6 : vector<1x32xf32> to vector<64x32xf32>
    %225 = arith.mulf %223, %224 : vector<64x32xf32>
    %226 = vector.broadcast %7 : vector<1x32xf32> to vector<64x32xf32>
    %227 = arith.addf %225, %226 : vector<64x32xf32>
    %228 = arith.truncf %227 : vector<64x32xf32> to vector<64x32xbf16>
    %cst_60 = arith.constant 0.000000e+00 : f32
    %229 = vector.broadcast %cst_60 : f32 to vector<64x32xf32>
    %c0_61 = arith.constant 0 : index
    %c0_62 = arith.constant 0 : index
    %230 = vector.load %arg6[%c0_61, %c0_62] : memref<32x64xbf16, #tpu.memory_space<vmem>>, vector<32x64xbf16>
    %cst_63 = arith.constant dense<0.000000e+00> : vector<64x64xf32>
    %231 = tpu.matmul %228, %230, %cst_63 {dimension_numbers = #tpu.dot_dimension_numbers<[1], [0], [0], [1], [0, 0, 1, 1], [], []>} : vector<64x32xbf16>, vector<32x64xbf16>, vector<64x64xf32> -> vector<64x64xf32>
    %c0_64 = arith.constant 0 : index
    %c0_65 = arith.constant 0 : index
    %232 = vector.load %arg7[%c0_64, %c0_65] : memref<1x64xf32, #tpu.memory_space<vmem>>, vector<1x64xf32>
    %233 = vector.broadcast %232 : vector<1x64xf32> to vector<64x64xf32>
    %234 = arith.addf %231, %233 : vector<64x64xf32>
    %cst_66 = arith.constant 0.000000e+00 : f32
    %235 = vector.broadcast %cst_66 : f32 to vector<64x64xf32>
    %236 = arith.maximumf %234, %235 : vector<64x64xf32>
    %237 = arith.truncf %236 : vector<64x64xf32> to vector<64x64xbf16>
    %c0_67 = arith.constant 0 : index
    %c0_68 = arith.constant 0 : index
    %238 = vector.load %arg8[%c0_67, %c0_68] : memref<64x32xbf16, #tpu.memory_space<vmem>>, vector<64x32xbf16>
    %cst_69 = arith.constant dense<0.000000e+00> : vector<64x32xf32>
    %239 = tpu.matmul %237, %238, %cst_69 {dimension_numbers = #tpu.dot_dimension_numbers<[1], [0], [0], [1], [0, 0, 1, 1], [], []>} : vector<64x64xbf16>, vector<64x32xbf16>, vector<64x32xf32> -> vector<64x32xf32>
    %240 = arith.addf %229, %239 : vector<64x32xf32>
    %241 = vector.broadcast %8 : vector<1x32xf32> to vector<64x32xf32>
    %242 = arith.addf %240, %241 : vector<64x32xf32>
    %243 = arith.addf %227, %242 : vector<64x32xf32>
    %cst_70 = arith.constant dense<0.000000e+00> : vector<64xf32>
    %244 = vector.multi_reduction <add>, %243, %cst_70 [1] : vector<64x32xf32> to vector<64xf32>
    %245 = vector.shape_cast %244 : vector<64xf32> to vector<64x1xf32>
    %cst_71 = arith.constant 3.200000e+01 : f32
    %246 = vector.broadcast %cst_71 : f32 to vector<64x1xf32>
    %247 = arith.divf %245, %246 : vector<64x1xf32>
    %248 = vector.broadcast %247 : vector<64x1xf32> to vector<64x32xf32>
    %249 = arith.subf %243, %248 : vector<64x32xf32>
    %250 = arith.mulf %249, %249 : vector<64x32xf32>
    %cst_72 = arith.constant dense<0.000000e+00> : vector<64xf32>
    %251 = vector.multi_reduction <add>, %250, %cst_72 [1] : vector<64x32xf32> to vector<64xf32>
    %252 = vector.shape_cast %251 : vector<64xf32> to vector<64x1xf32>
    %cst_73 = arith.constant 3.200000e+01 : f32
    %253 = vector.broadcast %cst_73 : f32 to vector<64x1xf32>
    %254 = arith.divf %252, %253 : vector<64x1xf32>
    %cst_74 = arith.constant 9.99999974E-6 : f32
    %255 = vector.broadcast %cst_74 : f32 to vector<64x1xf32>
    %256 = arith.addf %254, %255 : vector<64x1xf32>
    %257 = math.rsqrt %256 : vector<64x1xf32>
    %258 = vector.broadcast %257 : vector<64x1xf32> to vector<64x32xf32>
    %259 = arith.mulf %249, %258 : vector<64x32xf32>
    %260 = vector.broadcast %9 : vector<1x32xf32> to vector<64x32xf32>
    %261 = arith.mulf %259, %260 : vector<64x32xf32>
    %262 = vector.broadcast %10 : vector<1x32xf32> to vector<64x32xf32>
    %263 = arith.addf %261, %262 : vector<64x32xf32>
    %c0_75 = arith.constant 0 : index
    %c0_76 = arith.constant 0 : index
    %264 = vector.load %arg10[%c0_75, %c0_76] : memref<64x32xf32, #tpu.memory_space<vmem>>, vector<64x32xf32>
    tpu.vector_store %arg10[%c0_75, %c0_76], %263 {strides = array<i32>} : memref<64x32xf32, #tpu.memory_space<vmem>>, vector<64x32xf32>,
    return
  }
  func.func @transform_0(%arg0: i32) -> (i32, i32) {
    %c0_i32 = arith.constant 0 : i32
    %c0_i32_0 = arith.constant 0 : i32
    return %arg0, %c0_i32 : i32, i32
  }
  func.func @transform_1(%arg0: i32) -> (i32, i32) {
    %c0_i32 = arith.constant 0 : i32
    %c0_i32_0 = arith.constant 0 : i32
    return %arg0, %c0_i32 : i32, i32
  }
  func.func @transform_2(%arg0: i32) -> (i32, i32) {
    %c0_i32 = arith.constant 0 : i32
    %c0_i32_0 = arith.constant 0 : i32
    %c0_i32_1 = arith.constant 0 : i32
    return %c0_i32, %c0_i32_0 : i32, i32
  }
  func.func @transform_3(%arg0: i32) -> (i32, i32) {
    %c0_i32 = arith.constant 0 : i32
    %c0_i32_0 = arith.constant 0 : i32
    %c0_i32_1 = arith.constant 0 : i32
    return %c0_i32, %c0_i32_0 : i32, i32
  }
  func.func @transform_4(%arg0: i32) -> (i32, i32) {
    %c0_i32 = arith.constant 0 : i32
    %c0_i32_0 = arith.constant 0 : i32
    %c0_i32_1 = arith.constant 0 : i32
    return %c0_i32, %c0_i32_0 : i32, i32
  }
  func.func @transform_5(%arg0: i32) -> (i32, i32) {
    %c0_i32 = arith.constant 0 : i32
    %c0_i32_0 = arith.constant 0 : i32
    %c0_i32_1 = arith.constant 0 : i32
    return %c0_i32, %c0_i32_0 : i32, i32
  }
  func.func @transform_6(%arg0: i32) -> (i32, i32) {
    %c0_i32 = arith.constant 0 : i32
    %c0_i32_0 = arith.constant 0 : i32
    %c0_i32_1 = arith.constant 0 : i32
    return %c0_i32, %c0_i32_0 : i32, i32
  }
  func.func @transform_7(%arg0: i32) -> (i32, i32) {
    %c0_i32 = arith.constant 0 : i32
    %c0_i32_0 = arith.constant 0 : i32
    %c0_i32_1 = arith.constant 0 : i32
    return %c0_i32, %c0_i32_0 : i32, i32
  }
  func.func @transform_8(%arg0: i32) -> (i32, i32) {
    %c0_i32 = arith.constant 0 : i32
    %c0_i32_0 = arith.constant 0 : i32
    %c0_i32_1 = arith.constant 0 : i32
    return %c0_i32, %c0_i32_0 : i32, i32
  }
  func.func @transform_9(%arg0: i32) -> (i32, i32) {
    %c0_i32 = arith.constant 0 : i32
    %c0_i32_0 = arith.constant 0 : i32
    return %arg0, %c0_i32 : i32, i32
  }
}

</mosaic_0001>

<bundles_post_ra>
// kernel: tpu_custom_call.1
= control target key start
LH: loop header
LB: loop body
LE: loop exit
PB: predicated region body
PF: predicated region fallthrough
CT: control target
= control target key end

     0   :  { %vm120_vm0 = vcmask 261120   ;;  %v11984_v14 = vmov 0.0   ;;  %vm9827_vm1 = vmmov 0   ;;  %s9829_s30 = smov 64   ;;  %vm264_vm2 = vcmask 31744   ;;  %s9832_s12 = smov 124   ;;  %s11974_s2 = inlined_call_operand.vmem [shape: bf16[32,96], index: 2, kind: input, shape index: {}]   ;;  %s11975_s0 = inlined_call_operand.vmem [shape: f32[64,32], index: 0, kind: input, shape index: {}]   ;;  %s11976_s3 = inlined_call_operand.vmem [shape: f32[1,96], index: 3, kind: input, shape index: {}]   ;;  %s11977_s1 = inlined_call_operand.vmem [shape: f32[8,8], index: 1, kind: input, shape index: {}]   ;;  %s11978_s4 = inlined_call_operand.vmem [shape: bf16[32,32], index: 4, kind: input, shape index: {}]   ;;  %s11979_s8 = inlined_call_operand.vmem [shape: f32[6,32], index: 8, kind: input, shape index: {}]   ;;  %s11980_s5 = inlined_call_operand.vmem [shape: bf16[32,64], index: 5, kind: input, shape index: {}]   ;;  %s11981_s7 = inlined_call_operand.vmem [shape: bf16[64,32], index: 7, kind: input, shape index: {}]   ;;  %s11982_s6 = inlined_call_operand.vmem [shape: f32[1,64], index: 6, kind: input, shape index: {}]   ;;  %s11983_s9 = inlined_call_operand.vmem [shape: f32[64,32], index: 9, kind: output, shape index: {}]  }
   0x1   :  { %v9519_v0 = vld [vmem:[%s11974_s2 + $0x8] sm:$0xff]   ;;  %v9520_v1 = vld [vmem:[%s11974_s2] sm:$0xff]   ;;  %v35_v4 = vld [vmem:[%s11975_s0 + $0x10] sm:$0xff]  ;;  %vm749_vm3 = vcmask 1043456   ;;  %v9830_v60 = vmov 1966171168   ;;  %v51_v62 = vlaneseq }
   0x2   :  { %8662 = vmatprep.subr.bf16.mxu0 %v9519_v0  ;;  %9482 = vmatprep.subr.bf16.mxu1 %v9519_v0  ;;  %v33_v2 = vld [vmem:[%s11975_s0] sm:$0xff]  ;;  %v34_v3 = vld [vmem:[%s11975_s0 + $0x8] sm:$0xff]  ;;  %v36_v6 = vld [vmem:[%s11975_s0 + $0x18] sm:$0xff]  ;;  %v49_v61 = vunpack.c.l.s4 %v9830_v60  ;;  %vm647_vm4 = vcmask 64512   ;;  %s9833_s13 = smov 60   ;;  %s9834_s14 = smov 88  }
   0x3   :  { %8663 = vmatpush3.bf16.msra.mxu0 %v9519_v0  ;;  %9484 = vmatpush3.bf16.msra.mxu1 %v9519_v0  ;;  %v41_v5 = vpack.c.bf16 %v34_v3, %v33_v2  ;;  %v37_v7 = vld [vmem:[%s11975_s0 + $0x20] sm:$0xff]  ;;  %v38_v8 = vld [vmem:[%s11975_s0 + $0x28] sm:$0xff]  ;;  %v39_v10 = vld [vmem:[%s11975_s0 + $0x30] sm:$0xff]  ;;  %v42_v12 = vpack.c.bf16 %v36_v6, %v35_v4  ;;  %v10034_v0 = vshrl.u32 %v51_v62, 7  ;;  %s9835_s15 = smov 120   ;;  %s9836_s16 = smov 56  }
   0x4   :  { %8664 = vmatprep.subr.bf16.mxu0 %v9520_v1  ;;  %9483 = vmatprep.subr.bf16.mxu1 %v9520_v1  ;;  %v43_v9 = vpack.c.bf16 %v38_v8, %v37_v7  ;;  %v40_v11 = vld [vmem:[%s11975_s0 + $0x38] sm:$0xff]  ;;  %v8208_v15 = vld [vmem:[%s11976_s3] ss:$0 sm:$0xff]  ;;  %s9828_s3 = smov 96   ;;  %v50_v63 = vunpack.c.0.s8 %v49_v61  ;;  %s9837_s17 = smov 84   ;;  %vm2049_vm5 = vcmask 64544  }
   0x5   :  { %8666 = vmatprep.mubr.msk.bf16.mxu0 %vm120_vm0, %v41_v5  ;;  %v44_v13 = vpack.c.bf16 %v40_v11, %v39_v10  ;;  %11989 = vst [vmem:[#allocation3_spill] sm:$0xff] %v10034_v0  ;;  %v45_v2 = vld [vmem:[%s11977_s1] sm:$0xff]  ;;  %v10041_v6 = vsub.s32 0, %v10034_v0  ;;  %s9831_s1 = smov 92   ;;  %s9838_s18 = smov 116   ;;  %vm2970_vm6 = vcmask 97344  }
   0x6   :  { %8670 = vmatprep.mubr.msk.bf16.mxu1 %vm120_vm0, %v43_v9  ;;  %v47_v7 = vcombine.high %v45_v2, %v45_v2  ;;  %s9839_s19 = smov 52   ;;  %s9840_s2 = smov 80   ;;  %vm3891_vm7 = vcmask 130144   ;;  %vm4812_vm8 = vcmask 162944   ;;  %vm5733_vm9 = vcmask 195744  }
   0x7   :  { %8665 = vmatpush3.bf16.msra.mxu0 %v9520_v1  ;;  %9485 = vmatpush3.bf16.msra.mxu1 %v9520_v1  ;;  %v53_v1 = vsub.s32 %v50_v63, %v10034_v0  ;;  %11990 = vst [vmem:[#allocation4_spill] sm:$0xff] %v10041_v6  ;;  %s9841_s20 = smov 112   ;;  %s9842_s21 = smov 48   ;;  %vm6654_vm10 = vcmask 228544   ;;  %vm7575_vm11 = vcmask 261344   ;;  %vm7982_vm12 = vcmask 523264  }
   0x8   :  { %8686 = vmatprep.subr.bf16.mxu0 %v11984_v14  ;;  %8674 = vmatprep.subr.bf16.mxu1 %v11984_v14  ;;  %s9843_s22 = smov 76   ;;  %s9844_s23 = smov 108  }
   0x9   :  { %v54_v3 = vrot.slane %v45_v2, %v53_v1  ;;  %v61_v10 = vrot.slane %v47_v7, %v53_v1  ;;  %s9845_s24 = smov 44   ;;  %s9846_s25 = smov 72  }
   0xa   :  { %8667 = vmatmul.mubr.msk.bf16.vlgmr.msra.gmra.mxu0 %vm120_vm0, %v42_v12  ;;  %8671 = vmatmul.mubr.msk.bf16.vlgmr.msra.gmra.mxu1 %vm120_vm0, %v44_v13  ;;  %s9847_s26 = smov 104   ;;  %s9848_s27 = smov 40  }
   0xb   :  { %8688 = vmatprep.mubr.msk.bf16.mxu0 %vm9827_vm1, %v11984_v14  ;;  %8676 = vmatprep.mubr.msk.bf16.mxu1 %vm9827_vm1, %v11984_v14  ;;  %v70_v4 = vrot.slane %v54_v3, %v53_v1  ;;  %v62_v13 = vcombine.high %v54_v3, %v54_v3  ;;  %s9849_s28 = smov 68   ;;  %s9850_s29 = smov 100  }
   0xc   :  { %s9853_s10 = smov 8   ;;  %s9854_s11 = smov 12  }
   0xd   :  { %v92_v5 = vcombine.high %v70_v4, %v70_v4  ;;  %v10047_v9 = vrot.slane %v70_v4, %v10041_v6 }
   0xf   :  { %v10044_v8 = vrot.slane %v92_v5, %v10041_v6 }
  0xca   :  { %v8668_v16 = vpop.f32.mrf.mxu0  ;;  %v8672_v17 = vpop.f32.mrf.mxu1 }
  0xcb   :  { %v176_v18 = vadd.f32 %v8668_v16, %v8208_v15  ;;  %v192_v37 = vadd.f32 %v8672_v17, %v8208_v15 }
  0xcc   :  { %v167_v19 = vpop.f32.mrf.mxu0  ;;  %v183_v20 = vpop.f32.mrf.mxu1 }
  0xcd   :  { %v9952_v21 = vpack.c.bf16 %v176_v18, %v176_v18  ;;  %v168_v22 = vadd.f32 %v8208_v15, %v167_v19  ;;  %v184_v30 = vadd.f32 %v8208_v15, %v183_v20  ;;  %v9972_v39 = vpack.c.bf16 %v192_v37, %v192_v37 }
  0xce   :  { %v8669_v23 = vpop.f32.mrf.mxu0  ;;  %v8673_v24 = vpop.f32.mrf.mxu1  ;;  %v77_v19 = vrot.slane %v61_v10, %v53_v1 }
  0xcf   :  { %v9954_v25 = vpack.c.bf16 %v168_v22, %v168_v22  ;;  %v179_v26 = vadd.f32 %v8669_v23, %v8208_v15  ;;  %359 = vrot.lane.b32.xlu1 %v9952_v21, %s9828_s3  ;;  %v195_v34 = vadd.f32 %v8673_v24, %v8208_v15  ;;  %v9965_v36 = vpack.c.bf16 %v184_v30, %v184_v30 }
  0xd0   :  { %v170_v27 = vpop.f32.mrf.mxu0  ;;  %v186_v28 = vpop.f32.mrf.mxu1  ;;  %v84_v23 = vrot.slane %v62_v13, %v53_v1 }
  0xd1   :  { %v9957_v29 = vpack.c.bf16 %v179_v26, %v179_v26  ;;  %v171_v31 = vadd.f32 %v8208_v15, %v170_v27  ;;  %262 = vrot.lane.b32.xlu0 %v9954_v25, %s9828_s3  ;;  %v187_v32 = vadd.f32 %v8208_v15, %v186_v28  ;;  %v9968_v38 = vpack.c.bf16 %v195_v34, %v195_v34 }
  0xd2   :  { %v10060_v28 = vrot.slane %v77_v19, %v10041_v6 }
  0xd3   :  { %v9960_v33 = vpack.c.bf16 %v171_v31, %v171_v31  ;;  %v9962_v35 = vpack.c.bf16 %v187_v32, %v187_v32  ;;  %407 = vrot.lane.b32.xlu1 %v9957_v29, %s9828_s3  ;;  %v10063_v31 = vrot.slane %v84_v23, %v10041_v6 }
  0xd5   :  { %311 = vrot.lane.b32.xlu0 %v9960_v33, %s9828_s3 }
  0xd7   :  { %503 = vrot.lane.b32.xlu1 %v9962_v35, %s9828_s3 }
  0xd9   :  { %455 = vrot.lane.b32.xlu0 %v9965_v36, %s9828_s3 }
  0xdb   :  { %599 = vrot.lane.b32.xlu1 %v9968_v38, %s9828_s3 }
  0xdd   :  { %551 = vrot.lane.b32.xlu0 %v9972_v39, %s9828_s3  ;;  %s9851_s3 = smov 36  }
  0xdf   :  { %744 = vrot.lane.b32.xlu1 %v9954_v25, %s9829_s30 }
  0xe1   :  { %793 = vrot.lane.b32.xlu0 %v9960_v33, %s9829_s30 }
  0xe3   :  { %841 = vrot.lane.b32.xlu1 %v9952_v21, %s9829_s30 }
 0x141   :  { %v360_v40 = vpop.permute.xlu1 %359 }
 0x142   :  { %v365_v41 = vsel %vm264_vm2, %v360_v40, 0  ;;  %v94_v40 = vcombine.high %v84_v23, %v84_v23 }
 0x143   :  { %8687 = vmatpush3.bf16.xpose.msra.mxu0 %v365_v41  ;;  %v263_v42 = vpop.permute.xlu0 %262  ;;  %v93_v41 = vcombine.high %v77_v19, %v77_v19 }
 0x144   :  { %v269_v43 = vsel %vm264_vm2, %v263_v42, 0  ;;  %8698 = vmatprep.subr.bf16.mxu0 %v11984_v14 }
 0x145   :  { %8675 = vmatpush3.bf16.xpose.msra.mxu1 %v269_v43  ;;  %v408_v44 = vpop.permute.xlu1 %407 }
 0x146   :  { %8680 = vmatprep.subr.bf16.mxu1 %v11984_v14  ;;  %v413_v52 = vsel %vm264_vm2, %v408_v44, 0 }
 0x147   :  { %v312_v45 = vpop.permute.xlu0 %311 }
 0x148   :  { %v317_v47 = vsel %vm264_vm2, %v312_v45, 0 }
 0x149   :  { %v504_v49 = vpop.permute.xlu1 %503 }
 0x14a   :  { %8689 = vmatmul.mubr.msk.bf16.vlgmr.msra.gmra.mxu0 %vm264_vm2, %v9952_v21  ;;  %v509_v55 = vsel %vm264_vm2, %v504_v49, 0  ;;  %v10075_v49 = vrot.slane %v93_v41, %v10041_v6 }
 0x14b   :  { %v456_v46 = vpop.permute.xlu0 %455  ;;  %8700 = vmatprep.mubr.msk.bf16.mxu0 %vm9827_vm1, %v11984_v14 }
 0x14c   :  { %v461_v48 = vsel %vm264_vm2, %v456_v46, 0  ;;  %8677 = vmatmul.mubr.msk.bf16.vlgmr.msra.gmra.mxu1 %vm264_vm2, %v9954_v25 }
 0x14d   :  { %8681 = vmatpush3.bf16.xpose.msra.mxu1 %v317_v47  ;;  %8699 = vmatpush3.bf16.xpose.msra.mxu0 %v461_v48  ;;  %v600_v51 = vpop.permute.xlu1 %599  ;;  %v10072_v48 = vrot.slane %v94_v40, %v10041_v6 }
 0x14e   :  { %8682 = vmatprep.mubr.msk.bf16.mxu1 %vm9827_vm1, %v11984_v14  ;;  %8692 = vmatprep.subr.bf16.mxu1 %v11984_v14  ;;  %v605_v57 = vsel %vm264_vm2, %v600_v51, 0 }
 0x14f   :  { %8710 = vmatprep.subr.bf16.mxu0 %v11984_v14  ;;  %v552_v50 = vpop.permute.xlu0 %551 }
 0x150   :  { %v557_v53 = vsel %vm264_vm2, %v552_v50, 0  ;;  %v63_v50 = vcombine.high %v61_v10, %v61_v10 }
 0x151   :  { %v745_v54 = vpop.permute.xlu1 %744 }
 0x152   :  { %v751_v56 = vsel %vm749_vm3, %v745_v54, 0 }
 0x153   :  { %v794_v58 = vpop.permute.xlu0 %793 }
 0x154   :  { %8683 = vmatmul.mubr.msk.bf16.vlgmr.msra.gmra.mxu1 %vm264_vm2, %v9960_v33  ;;  %8701 = vmatmul.mubr.msk.bf16.vlgmr.msra.gmra.mxu0 %vm264_vm2, %v9965_v36  ;;  %v799_v59 = vsel %vm749_vm3, %v794_v58, 0  ;;  %v91_v58 = vrot.slane %v63_v50, %v53_v1 }
 0x155   :  { %8693 = vmatpush3.bf16.xpose.msra.mxu1 %v413_v52  ;;  %8711 = vmatpush3.bf16.xpose.msra.mxu0 %v557_v53  ;;  %v10101_v41 = vpop.permute.xlu1 %841 }
 0x156   :  { %8694 = vmatprep.mubr.msk.bf16.mxu1 %vm9827_vm1, %v11984_v14  ;;  %8712 = vmatprep.mubr.msk.bf16.mxu0 %vm9827_vm1, %v11984_v14  ;;  %v10086_v3 = vrot.slane %v91_v58, %v10041_v6  ;;  %v95_v1 = vcombine.high %v91_v58, %v91_v58 }
 0x157   :  { %8704 = vmatprep.subr.bf16.mxu1 %v11984_v14  ;;  %8722 = vmatprep.subr.bf16.mxu0 %v11984_v14 }
 0x15c   :  { %8695 = vmatmul.mubr.msk.bf16.vlgmr.msra.gmra.mxu1 %vm264_vm2, %v9957_v29  ;;  %8713 = vmatmul.mubr.msk.bf16.vlgmr.msra.gmra.mxu0 %vm264_vm2, %v9972_v39 }
 0x15d   :  { %8705 = vmatpush3.bf16.xpose.msra.mxu1 %v509_v55  ;;  %8723 = vmatpush3.bf16.msra.mxu0 %v751_v56 }
 0x15e   :  { %8706 = vmatprep.mubr.msk.bf16.mxu1 %vm9827_vm1, %v11984_v14  ;;  %8716 = vmatprep.subr.bf16.mxu1 %v11984_v14 }
 0x15f   :  { %8724 = vmatprep.mubr.msk.bf16.mxu0 %vm9827_vm1, %v11984_v14  ;;  %8734 = vmatprep.subr.bf16.mxu0 %v11984_v14 }
 0x164   :  { %8707 = vmatmul.mubr.msk.bf16.vlgmr.msra.gmra.mxu1 %vm264_vm2, %v9962_v35 }
 0x165   :  { %8717 = vmatpush3.bf16.xpose.msra.mxu1 %v605_v57  ;;  %8718 = vmatprep.mubr.msk.bf16.mxu1 %vm9827_vm1, %v11984_v14 }
 0x166   :  { %8728 = vmatprep.subr.bf16.mxu1 %v11984_v14 }
 0x16c   :  { %8719 = vmatmul.mubr.msk.bf16.vlgmr.msra.gmra.mxu1 %vm264_vm2, %v9968_v38 }
 0x16d   :  { %8729 = vmatpush3.bf16.msra.mxu1 %v799_v59  ;;  %8730 = vmatprep.mubr.msk.bf16.mxu1 %vm9827_vm1, %v11984_v14 }
 0x16e   :  { %8740 = vmatprep.subr.bf16.mxu1 %v11984_v14 }
 0x20a   :  { %v401_v11 = vpop.f32.mrf.mxu0 }
 0x20b   :  { %v10050_v12 = vadd.f32 %v401_v11, %v10044_v8 }
 0x20c   :  { %v305_v15 = vpop.f32.mrf.mxu1  ;;  %v8690_v16 = vpop.f32.mrf.mxu0 }
 0x20d   :  { %v10053_v17 = vadd.f32 %v305_v15, %v10047_v9  ;;  %v654_v18 = vsel %vm647_vm4, %v10050_v12, -inf  ;;  %v10091_v16 = vrot.slane %v95_v1, %v10041_v6 }
 0x20e   :  { %v404_v20 = vpop.f32.mrf.mxu0  ;;  %655 = vmax.xlane.f32.xlu0 %v654_v18  ;;  %v8678_v22 = vpop.f32.mrf.mxu1 }
 0x20f   :  { %v648_v27 = vsel %vm647_vm4, %v10053_v17, -inf }
 0x210   :  { %v308_v24 = vpop.f32.mrf.mxu1  ;;  %v8691_v26 = vpop.f32.mrf.mxu0 }
 0x212   :  { %649 = vmax.xlane.f32.xlu0 %v648_v27  ;;  %v8679_v30 = vpop.f32.mrf.mxu1 }
 0x214   :  { %v353_v32 = vpop.f32.mrf.mxu1  ;;  %v497_v34 = vpop.f32.mrf.mxu0 }
 0x215   :  { %v10066_v37 = vadd.f32 %v497_v34, %v10060_v28  ;;  %v354_v44 = vadd.f32 %v353_v32, %v10063_v31 }
 0x216   :  { %v8684_v42 = vpop.f32.mrf.mxu1  ;;  %v8702_v43 = vpop.f32.mrf.mxu0 }
 0x217   :  { %v660_v45 = vsel %vm647_vm4, %v10066_v37, -inf  ;;  %v651_v53 = vsel %vm647_vm4, %v354_v44, -inf }
 0x218   :  { %v356_v46 = vpop.f32.mrf.mxu1  ;;  %661 = vmax.xlane.f32.xlu1 %v660_v45  ;;  %v500_v47 = vpop.f32.mrf.mxu0 }
 0x21a   :  { %v8685_v51 = vpop.f32.mrf.mxu1  ;;  %v8703_v52 = vpop.f32.mrf.mxu0 }
 0x21c   :  { %v449_v54 = vpop.f32.mrf.mxu1  ;;  %652 = vmax.xlane.f32.xlu1 %v651_v53  ;;  %v593_v55 = vpop.f32.mrf.mxu0 }
 0x21d   :  { %v450_v56 = vadd.f32 %v449_v54, %v10072_v48  ;;  %v10080_v57 = vadd.f32 %v593_v55, %v10075_v49 }
 0x21e   :  { %v8696_v59 = vpop.f32.mrf.mxu1  ;;  %v8714_v60 = vpop.f32.mrf.mxu0 }
 0x21f   :  { %v657_v61 = vsel %vm647_vm4, %v450_v56, -inf  ;;  %v666_v62 = vsel %vm647_vm4, %v10080_v57, -inf }
 0x220   :  { %658 = vmax.xlane.f32.xlu0 %v657_v61  ;;  %v452_v63 = vpop.f32.mrf.mxu1  ;;  %667 = vmax.xlane.f32.xlu1 %v666_v62  ;;  %v596_v2 = vpop.f32.mrf.mxu0 }
 0x222   :  { %v8697_v4 = vpop.f32.mrf.mxu1  ;;  %v8715_v5 = vpop.f32.mrf.mxu0 }
 0x224   :  { %v545_v7 = vpop.f32.mrf.mxu1 }
 0x225   :  { %v546_v10 = vadd.f32 %v545_v7, %v10086_v3 }
 0x226   :  { %v8708_v11 = vpop.f32.mrf.mxu1 }
 0x227   :  { %v663_v13 = vsel %vm647_vm4, %v546_v10, -inf }
 0x228   :  { %664 = vmax.xlane.f32.xlu0 %v663_v13  ;;  %v548_v15 = vpop.f32.mrf.mxu1 }
 0x22a   :  { %v8709_v18 = vpop.f32.mrf.mxu1 }
 0x22c   :  { %v641_v19 = vpop.f32.mrf.mxu1 }
 0x22d   :  { %v642_v20 = vadd.f32 %v641_v19, %v10091_v16 }
 0x22e   :  { %v8720_v22 = vpop.f32.mrf.mxu1 }
 0x22f   :  { %v669_v23 = vsel %vm647_vm4, %v642_v20, -inf }
 0x230   :  { %670 = vmax.xlane.f32.xlu0 %v669_v23  ;;  %v644_v24 = vpop.f32.mrf.mxu1 }
 0x231   :  { %889 = vrot.lane.b32.xlu1 %v9957_v29, %s9829_s30 }
 0x232   :  { %v8721_v26 = vpop.f32.mrf.mxu1 }
 0x246   :  { %937 = vrot.lane.b32.xlu0 %v9965_v36, %s9829_s30 }
 0x297   :  { %v656_v27 = vpop.xlane.xlu0 %655 }
 0x298   :  { %v674_v30 = vsub.f32 %v10050_v12, %v656_v27 }
 0x29a   :  { %v684_v32 = vmul.f32 1.442695, %v674_v30 }
 0x29b   :  { %v650_v34 = vpop.xlane.xlu0 %649 }
 0x29c   :  { %9530 = vpow2.f32 %v684_v32  ;;  %v672_v40 = vsub.f32 %v10053_v17, %v650_v34 }
 0x29e   :  { %v680_v42 = vmul.f32 1.442695, %v672_v40 }
 0x2a0   :  { %9532 = vpow2.f32 %v680_v42 }
 0x2a1   :  { %v662_v43 = vpop.xlane.xlu1 %661 }
 0x2a2   :  { %v676_v2 = vsub.f32 %v10066_v37, %v662_v43  ;;  %v847_v43 = vsel %vm749_vm3, %v10101_v41, 0 }
 0x2a4   :  { %v688_v5 = vmul.f32 1.442695, %v676_v2 }
 0x2a5   :  { %v653_v45 = vpop.xlane.xlu1 %652 }
 0x2a6   :  { %v673_v46 = vsub.f32 %v354_v44, %v653_v45 }
 0x2a8   :  { %v682_v47 = vmul.f32 1.442695, %v673_v46 }
 0x2a9   :  { %v10103_v50 = vpop.eup %9530  ;;  %v659_v51 = vpop.xlane.xlu0 %658 }
 0x2aa   :  { %9534 = vpow2.f32 %v682_v47  ;;  %v675_v52 = vsub.f32 %v450_v56, %v659_v51  ;;  %v702_v12 = vsel %vm647_vm4, %v10103_v50, 0.0  ;;  %v668_v4 = vpop.xlane.xlu1 %667 }
 0x2ab   :  { %703 = vadd.xlane.f32.xlu1 %v702_v12  ;;  %v678_v7 = vsub.f32 %v10080_v57, %v668_v4 }
 0x2ac   :  { %v686_v53 = vmul.f32 1.442695, %v675_v52 }
 0x2ad   :  { %v10107_v54 = vpop.eup %9532 }
 0x2ae   :  { %v696_v17 = vsel %vm647_vm4, %v10107_v54, 0.0  ;;  %9536 = vpow2.f32 %v686_v53  ;;  %v890_v22 = vpop.permute.xlu1 %889 }
 0x2af   :  { %697 = vadd.xlane.f32.xlu1 %v696_v17 }
 0x2b1   :  { %v665_v55 = vpop.xlane.xlu0 %664 }
 0x2b2   :  { %v677_v44 = vsub.f32 %v546_v10, %v665_v55  ;;  %v692_v10 = vmul.f32 1.442695, %v678_v7 }
 0x2b4   :  { %v690_v58 = vmul.f32 1.442695, %v677_v44 }
 0x2b6   :  { %9538 = vpow2.f32 %v690_v58 }
 0x2b7   :  { %v10111_v59 = vpop.eup %9534  ;;  %9540 = vpow2.f32 %v688_v5 }
 0x2b8   :  { %v699_v56 = vsel %vm647_vm4, %v10111_v59, 0.0  ;;  %9542 = vpow2.f32 %v692_v10 }
 0x2b9   :  { %700 = vadd.xlane.f32.xlu0 %v699_v56  ;;  %v671_v1 = vpop.xlane.xlu0 %670 }
 0x2ba   :  { %v679_v13 = vsub.f32 %v642_v20, %v671_v1 }
 0x2bb   :  { %v10115_v60 = vpop.eup %9536 }
 0x2bc   :  { %v705_v61 = vsel %vm647_vm4, %v10115_v60, 0.0  ;;  %v694_v37 = vmul.f32 1.442695, %v679_v13 }
 0x2bd   :  { %706 = vadd.xlane.f32.xlu0 %v705_v61  ;;  %v938_v26 = vpop.permute.xlu0 %937 }
 0x2be   :  { %9544 = vpow2.f32 %v694_v37  ;;  %v943_v12 = vsel %vm749_vm3, %v938_v26, 0 }
 0x2c0   :  { %985 = vrot.lane.b32.xlu1 %v9962_v35, %s9829_s30 }
 0x2c3   :  { %v10121_v62 = vpop.eup %9538 }
 0x2c4   :  { %v711_v63 = vsel %vm647_vm4, %v10121_v62, 0.0  ;;  %v10129_v11 = vpop.eup %9540 }
 0x2c5   :  { %712 = vadd.xlane.f32.xlu0 %v711_v63  ;;  %v708_v15 = vsel %vm647_vm4, %v10129_v11, 0.0  ;;  %v10133_v18 = vpop.eup %9542 }
 0x2c6   :  { %v714_v57 = vsel %vm647_vm4, %v10133_v18, 0.0 }
 0x2cb   :  { %v10137_v19 = vpop.eup %9544 }
 0x2cc   :  { %v717_v20 = vsel %vm647_vm4, %v10137_v19, 0.0 }
 0x2db   :  { %1033 = vrot.lane.b32.xlu0 %v9972_v39, %s9829_s30 }
 0x2e4   :  { %709 = vadd.xlane.f32.xlu1 %v708_v15 }
 0x2e8   :  { %715 = vadd.xlane.f32.xlu1 %v714_v57 }
 0x2f9   :  { %1081 = vrot.lane.b32.xlu1 %v9968_v38, %s9829_s30  ;;  %s9852_s30 = smov 4  }
 0x2fa   :  { %718 = vadd.xlane.f32.xlu0 %v717_v20 }
 0x2fd   :  { %1189 = vrot.lane.b32.xlu1 %v9960_v33, %s9831_s1 }
 0x301   :  { %1187 = vrot.lane.b32.xlu1 %v9960_v33, %s9832_s12 }
 0x305   :  { %1289 = vrot.lane.b32.xlu1 %v9957_v29, %s9831_s1 }
 0x309   :  { %1287 = vrot.lane.b32.xlu1 %v9957_v29, %s9832_s12 }
 0x30d   :  { %1389 = vrot.lane.b32.xlu1 %v9962_v35, %s9831_s1 }
 0x310   :  { %1139 = vrot.lane.b32.xlu0 %v9954_v25, %s9831_s1 }
 0x311   :  { %1387 = vrot.lane.b32.xlu1 %v9962_v35, %s9832_s12 }
 0x314   :  { %1137 = vrot.lane.b32.xlu0 %v9954_v25, %s9832_s12 }
 0x315   :  { %1489 = vrot.lane.b32.xlu1 %v9968_v38, %s9831_s1 }
 0x318   :  { %1239 = vrot.lane.b32.xlu0 %v9952_v21, %s9831_s1 }
 0x319   :  { %1487 = vrot.lane.b32.xlu1 %v9968_v38, %s9832_s12 }
 0x31c   :  { %1237 = vrot.lane.b32.xlu0 %v9952_v21, %s9832_s12 }
 0x31d   :  { %1633 = vrot.lane.b32.xlu1 %v9954_v25, %s9833_s13 }
 0x320   :  { %1339 = vrot.lane.b32.xlu0 %v9965_v36, %s9831_s1 }
 0x321   :  { %1729 = vrot.lane.b32.xlu1 %v9952_v21, %s9833_s13 }
 0x324   :  { %1337 = vrot.lane.b32.xlu0 %v9965_v36, %s9832_s12 }
 0x325   :  { %1777 = vrot.lane.b32.xlu1 %v9957_v29, %s9833_s13 }
 0x328   :  { %1439 = vrot.lane.b32.xlu0 %v9972_v39, %s9831_s1  ;;  %s9855_s1 = smov 16  }
 0x32c   :  { %1437 = vrot.lane.b32.xlu0 %v9972_v39, %s9832_s12  ;;  %s9856_s12 = smov 20  }
 0x330   :  { %1681 = vrot.lane.b32.xlu0 %v9960_v33, %s9833_s13 }
 0x334   :  { %v704_v23 = vpop.xlane.xlu1 %703 }
 0x338   :  { %v698_v24 = vpop.xlane.xlu1 %697 }
 0x339   :  { %9546 = vrcp.f32 %v698_v24 }
 0x33a   :  { %9548 = vrcp.f32 %v704_v23 }
 0x33c   :  { %v986_v17 = vpop.permute.xlu1 %985 }
 0x33d   :  { %v991_v58 = vsel %vm749_vm3, %v986_v17, 0 }
 0x342   :  { %v701_v27 = vpop.xlane.xlu0 %700 }
 0x343   :  { %9550 = vrcp.f32 %v701_v27 }
 0x346   :  { %v9547_v30 = vpop.eup %9546  ;;  %v707_v32 = vpop.xlane.xlu0 %706 }
 0x347   :  { %v728_v34 = vmul.f32 %v9547_v30, %v10107_v54  ;;  %9552 = vrcp.f32 %v707_v32  ;;  %v9549_v42 = vpop.eup %9548  ;;  %v895_v54 = vsel %vm749_vm3, %v890_v22, 0 }
 0x348   :  { %v730_v45 = vmul.f32 %v9549_v42, %v10103_v50 }
 0x349   :  { %v736_v40 = vpack.c.bf16 %v728_v34, %v728_v34 }
 0x34a   :  { %v738_v51 = vpack.c.bf16 %v730_v45, %v730_v45 }
 0x34b   :  { %8725 = vmatmul.mubr.msk.bf16.vlgmr.msra.gmra.mxu0 %vm647_vm4, %v736_v40 }
 0x34c   :  { %8735 = vmatpush3.bf16.msra.mxu0 %v847_v43  ;;  %8736 = vmatprep.mubr.msk.bf16.mxu0 %vm9827_vm1, %v11984_v14 }
 0x34d   :  { %8746 = vmatprep.subr.bf16.mxu0 %v11984_v14 }
 0x34e   :  { %v713_v46 = vpop.xlane.xlu0 %712 }
 0x34f   :  { %9554 = vrcp.f32 %v713_v46 }
 0x350   :  { %v9551_v47 = vpop.eup %9550 }
 0x351   :  { %v729_v52 = vmul.f32 %v9551_v47, %v10111_v59 }
 0x352   :  { %v1034_v7 = vpop.permute.xlu0 %1033 }
 0x353   :  { %8737 = vmatmul.mubr.msk.bf16.vlgmr.msra.gmra.mxu0 %vm647_vm4, %v738_v51  ;;  %v737_v41 = vpack.c.bf16 %v729_v52, %v729_v52  ;;  %v1039_v15 = vsel %vm749_vm3, %v1034_v7, 0 }
 0x354   :  { %8747 = vmatpush3.bf16.msra.mxu0 %v943_v12  ;;  %8748 = vmatprep.mubr.msk.bf16.mxu0 %vm9827_vm1, %v11984_v14  ;;  %v9553_v53 = vpop.eup %9552 }
 0x355   :  { %8731 = vmatmul.mubr.msk.bf16.vlgmr.msra.gmra.mxu1 %vm647_vm4, %v737_v41  ;;  %8758 = vmatprep.subr.bf16.mxu0 %v11984_v14  ;;  %v731_v50 = vmul.f32 %v9553_v53, %v10115_v60 }
 0x356   :  { %8741 = vmatpush3.bf16.msra.mxu1 %v895_v54  ;;  %8742 = vmatprep.mubr.msk.bf16.mxu1 %vm9827_vm1, %v11984_v14 }
 0x357   :  { %8752 = vmatprep.subr.bf16.mxu1 %v11984_v14  ;;  %v739_v55 = vpack.c.bf16 %v731_v50, %v731_v50 }
 0x35c   :  { %v9555_v44 = vpop.eup %9554 }
 0x35d   :  { %8743 = vmatmul.mubr.msk.bf16.vlgmr.msra.gmra.mxu1 %vm647_vm4, %v739_v55  ;;  %v733_v59 = vmul.f32 %v9555_v44, %v10121_v62 }
 0x35e   :  { %8753 = vmatpush3.bf16.msra.mxu1 %v991_v58  ;;  %8754 = vmatprep.mubr.msk.bf16.mxu1 %vm9827_vm1, %v11984_v14 }
 0x35f   :  { %8764 = vmatprep.subr.bf16.mxu1 %v11984_v14  ;;  %v741_v56 = vpack.c.bf16 %v733_v59, %v733_v59 }
 0x365   :  { %8755 = vmatmul.mubr.msk.bf16.vlgmr.msra.gmra.mxu1 %vm647_vm4, %v741_v56 }
 0x366   :  { %8766 = vmatprep.mubr.msk.bf16.mxu1 %vm9827_vm1, %v11984_v14 }
 0x36d   :  { %v710_v60 = vpop.xlane.xlu1 %709 }
 0x36e   :  { %9556 = vrcp.f32 %v710_v60 }
 0x371   :  { %v716_v61 = vpop.xlane.xlu1 %715 }
 0x372   :  { %9558 = vrcp.f32 %v716_v61 }
 0x375   :  { %v1082_v63 = vpop.permute.xlu1 %1081 }
 0x376   :  { %v1087_v2 = vsel %vm749_vm3, %v1082_v63, 0 }
 0x377   :  { %8765 = vmatpush3.bf16.msra.mxu1 %v1087_v2 }
 0x378   :  { %8776 = vmatprep.subr.bf16.mxu1 %v11984_v14 }
 0x379   :  { %v1190_v4 = vpop.permute.xlu1 %1189 }
 0x37a   :  { %v1195_v45 = vsel %vm264_vm2, %v1190_v4, 0 }
 0x37b   :  { %v9557_v62 = vpop.eup %9556 }
 0x37c   :  { %v732_v5 = vmul.f32 %v9557_v62, %v10129_v11 }
 0x37d   :  { %v1188_v10 = vpop.permute.xlu1 %1187 }
 0x37e   :  { %v740_v1 = vpack.c.bf16 %v732_v5, %v732_v5 }
 0x37f   :  { %v9559_v13 = vpop.eup %9558 }
 0x380   :  { %8749 = vmatmul.mubr.msk.bf16.vlgmr.msra.gmra.mxu0 %vm647_vm4, %v740_v1  ;;  %v734_v57 = vmul.f32 %v9559_v13, %v10133_v18 }
 0x381   :  { %8759 = vmatpush3.bf16.msra.mxu0 %v1039_v15  ;;  %v1290_v37 = vpop.permute.xlu1 %1289  ;;  %8760 = vmatprep.mubr.msk.bf16.mxu0 %vm9827_vm1, %v11984_v14 }
 0x382   :  { %8770 = vmatprep.subr.bf16.mxu0 %v11984_v14  ;;  %v742_v11 = vpack.c.bf16 %v734_v57, %v734_v57  ;;  %v1295_v52 = vsel %vm264_vm2, %v1290_v37, 0 }
 0x383   :  { %v719_v20 = vpop.xlane.xlu0 %718 }
 0x384   :  { %9560 = vrcp.f32 %v719_v20 }
 0x385   :  { %v1288_v22 = vpop.permute.xlu1 %1287 }
 0x387   :  { %v1140_v23 = vpop.permute.xlu0 %1139 }
 0x388   :  { %v1145_v24 = vsel %vm264_vm2, %v1140_v23, 0  ;;  %8761 = vmatmul.mubr.msk.bf16.vlgmr.msra.gmra.mxu0 %vm647_vm4, %v742_v11 }
 0x389   :  { %8771 = vmatpush3.bf16.xpose.msra.mxu0 %v1145_v24  ;;  %8772 = vmatprep.mubr.msk.bf16.mxu0 %vm9827_vm1, %v11984_v14  ;;  %v1390_v27 = vpop.permute.xlu1 %1389 }
 0x38a   :  { %8782 = vmatprep.subr.bf16.mxu0 %v11984_v14  ;;  %v1395_v50 = vsel %vm264_vm2, %v1390_v27, 0 }
 0x38b   :  { %v1138_v26 = vpop.permute.xlu0 %1137 }
 0x38d   :  { %v1388_v40 = vpop.permute.xlu1 %1387 }
 0x38f   :  { %v1240_v18 = vpop.permute.xlu0 %1239 }
 0x390   :  { %v1245_v30 = vsel %vm264_vm2, %v1240_v18, 0  ;;  %8773 = vmatmul.mubr.msk.bf16.vlgmr.msra.gmra.mxu0 %vm264_vm2, %v1138_v26 }
 0x391   :  { %v9561_v32 = vpop.eup %9560  ;;  %8783 = vmatpush3.bf16.xpose.msra.mxu0 %v1245_v30  ;;  %8784 = vmatprep.mubr.msk.bf16.mxu0 %vm9827_vm1, %v11984_v14 }
 0x392   :  { %v735_v34 = vmul.f32 %v9561_v32, %v10137_v19  ;;  %8794 = vmatprep.subr.bf16.mxu0 %v11984_v14  ;;  %v1490_v19 = vpop.permute.xlu1 %1489 }
 0x393   :  { %v1238_v42 = vpop.permute.xlu0 %1237  ;;  %v1495_v44 = vsel %vm264_vm2, %v1490_v19, 0 }
 0x394   :  { %v743_v43 = vpack.c.bf16 %v735_v34, %v735_v34 }
 0x396   :  { %8767 = vmatmul.mubr.msk.bf16.vlgmr.msra.gmra.mxu1 %vm647_vm4, %v743_v43  ;;  %v1488_v12 = vpop.permute.xlu1 %1487 }
 0x397   :  { %8777 = vmatpush3.bf16.xpose.msra.mxu1 %v1195_v45  ;;  %v1340_v46 = vpop.permute.xlu0 %1339  ;;  %8778 = vmatprep.mubr.msk.bf16.mxu1 %vm9827_vm1, %v11984_v14 }
 0x398   :  { %v1345_v47 = vsel %vm264_vm2, %v1340_v46, 0  ;;  %8785 = vmatmul.mubr.msk.bf16.vlgmr.msra.gmra.mxu0 %vm264_vm2, %v1238_v42  ;;  %8788 = vmatprep.subr.bf16.mxu1 %v11984_v14 }
 0x399   :  { %8795 = vmatpush3.bf16.xpose.msra.mxu0 %v1345_v47  ;;  %8796 = vmatprep.mubr.msk.bf16.mxu0 %vm9827_vm1, %v11984_v14 }
 0x39a   :  { %8806 = vmatprep.subr.bf16.mxu0 %v11984_v14  ;;  %v1634_v54 = vpop.permute.xlu1 %1633 }
 0x39b   :  { %v1338_v51 = vpop.permute.xlu0 %1337  ;;  %v1639_v55 = vsel %vm749_vm3, %v1634_v54, 0 }
 0x39e   :  { %8779 = vmatmul.mubr.msk.bf16.vlgmr.msra.gmra.mxu1 %vm264_vm2, %v1188_v10 }
 0x39f   :  { %8789 = vmatpush3.bf16.xpose.msra.mxu1 %v1295_v52  ;;  %v1440_v41 = vpop.permute.xlu0 %1439  ;;  %8790 = vmatprep.mubr.msk.bf16.mxu1 %vm9827_vm1, %v11984_v14 }
 0x3a0   :  { %v1445_v53 = vsel %vm264_vm2, %v1440_v41, 0  ;;  %8797 = vmatmul.mubr.msk.bf16.vlgmr.msra.gmra.mxu0 %vm264_vm2, %v1338_v51  ;;  %8800 = vmatprep.subr.bf16.mxu1 %v11984_v14 }
 0x3a1   :  { %8807 = vmatpush3.bf16.xpose.msra.mxu0 %v1445_v53  ;;  %8808 = vmatprep.mubr.msk.bf16.mxu0 %vm9827_vm1, %v11984_v14 }
 0x3a2   :  { %8818 = vmatprep.subr.bf16.mxu0 %v11984_v14 }
 0x3a3   :  { %v1438_v17 = vpop.permute.xlu0 %1437 }
 0x3a6   :  { %8791 = vmatmul.mubr.msk.bf16.vlgmr.msra.gmra.mxu1 %vm264_vm2, %v1288_v22 }
 0x3a7   :  { %8801 = vmatpush3.bf16.xpose.msra.mxu1 %v1395_v50  ;;  %8802 = vmatprep.mubr.msk.bf16.mxu1 %vm9827_vm1, %v11984_v14  ;;  %v1682_v58 = vpop.permute.xlu0 %1681 }
 0x3a8   :  { %8809 = vmatmul.mubr.msk.bf16.vlgmr.msra.gmra.mxu0 %vm264_vm2, %v1438_v17  ;;  %8812 = vmatprep.subr.bf16.mxu1 %v11984_v14  ;;  %v1687_v59 = vsel %vm749_vm3, %v1682_v58, 0 }
 0x3a9   :  { %8819 = vmatpush3.bf16.msra.mxu0 %v1639_v55  ;;  %8820 = vmatprep.mubr.msk.bf16.mxu0 %vm9827_vm1, %v11984_v14 }
 0x3aa   :  { %8830 = vmatprep.subr.bf16.mxu0 %v11984_v14 }
 0x3ae   :  { %8803 = vmatmul.mubr.msk.bf16.vlgmr.msra.gmra.mxu1 %vm264_vm2, %v1388_v40 }
 0x3af   :  { %8813 = vmatpush3.bf16.xpose.msra.mxu1 %v1495_v44  ;;  %8814 = vmatprep.mubr.msk.bf16.mxu1 %vm9827_vm1, %v11984_v14 }
 0x3b0   :  { %8824 = vmatprep.subr.bf16.mxu1 %v11984_v14 }
 0x3b6   :  { %8815 = vmatmul.mubr.msk.bf16.vlgmr.msra.gmra.mxu1 %vm264_vm2, %v1488_v12 }
 0x3b7   :  { %8825 = vmatpush3.bf16.msra.mxu1 %v1687_v59  ;;  %8826 = vmatprep.mubr.msk.bf16.mxu1 %vm9827_vm1, %v11984_v14 }
 0x3b8   :  { %8836 = vmatprep.subr.bf16.mxu1 %v11984_v14 }
 0x40b   :  { %v787_v56 = vpop.f32.mrf.mxu0 }
 0x40c   :  { %1129 = vst.msk [vmem:[#allocation2] sm:$0xff] %vm264_vm2, %v787_v56 }
 0x40d   :  { %v8726_v60 = vpop.f32.mrf.mxu0 }
 0x40f   :  { %v790_v61 = vpop.f32.mrf.mxu0 }
 0x411   :  { %v8727_v63 = vpop.f32.mrf.mxu0 }
 0x413   :  { %v883_v2 = vpop.f32.mrf.mxu0 }
 0x414   :  { %1131 = vst.msk [vmem:[#allocation2 + $0x10] sm:$0xff] %vm264_vm2, %v883_v2 }
 0x415   :  { %v835_v4 = vpop.f32.mrf.mxu1  ;;  %v8738_v62 = vpop.f32.mrf.mxu0 }
 0x416   :  { %1130 = vst.msk [vmem:[#allocation2 + $0x8] sm:$0xff] %vm264_vm2, %v835_v4 }
 0x417   :  { %v8732_v5 = vpop.f32.mrf.mxu1  ;;  %v886_v7 = vpop.f32.mrf.mxu0 }
 0x419   :  { %v838_v10 = vpop.f32.mrf.mxu1  ;;  %v8739_v1 = vpop.f32.mrf.mxu0 }
 0x41b   :  { %v8733_v13 = vpop.f32.mrf.mxu1 }
 0x41d   :  { %v931_v15 = vpop.f32.mrf.mxu1 }
 0x41e   :  { %1132 = vst.msk [vmem:[#allocation2 + $0x18] sm:$0xff] %vm264_vm2, %v931_v15 }
 0x41f   :  { %v8744_v37 = vpop.f32.mrf.mxu1 }
 0x421   :  { %v934_v57 = vpop.f32.mrf.mxu1 }
 0x423   :  { %v8745_v20 = vpop.f32.mrf.mxu1 }
 0x425   :  { %v1027_v11 = vpop.f32.mrf.mxu1 }
 0x426   :  { %1134 = vst.msk [vmem:[#allocation2 + $0x28] sm:$0xff] %vm264_vm2, %v1027_v11 }
 0x427   :  { %v8756_v22 = vpop.f32.mrf.mxu1 }
 0x429   :  { %v1030_v23 = vpop.f32.mrf.mxu1 }
 0x42b   :  { %v8757_v24 = vpop.f32.mrf.mxu1 }
 0x440   :  { %v979_v26 = vpop.f32.mrf.mxu0 }
 0x441   :  { %1133 = vst.msk [vmem:[#allocation2 + $0x20] sm:$0xff] %vm264_vm2, %v979_v26 }
 0x442   :  { %v8750_v27 = vpop.f32.mrf.mxu0 }
 0x444   :  { %v982_v18 = vpop.f32.mrf.mxu0 }
 0x446   :  { %v8751_v30 = vpop.f32.mrf.mxu0 }
 0x448   :  { %v1075_v32 = vpop.f32.mrf.mxu0 }
 0x449   :  { %1135 = vst.msk [vmem:[#allocation2 + $0x30] sm:$0xff] %vm264_vm2, %v1075_v32 }
 0x44a   :  { %v8762_v34 = vpop.f32.mrf.mxu0 }
 0x44c   :  { %v1078_v40 = vpop.f32.mrf.mxu0 }
 0x44e   :  { %v8763_v42 = vpop.f32.mrf.mxu0 }
 0x450   :  { %v1181_v43 = vpop.f32.mrf.mxu0 }
 0x451   :  { %v10264_v45 = vadd.f32 %v1181_v43, %v10047_v9 }
 0x452   :  { %v8774_v46 = vpop.f32.mrf.mxu0 }
 0x453   :  { %v1537_v47 = vsel %vm647_vm4, %v10264_v45, -inf }
 0x454   :  { %1538 = vmax.xlane.f32.xlu0 %v1537_v47  ;;  %v1184_v19 = vpop.f32.mrf.mxu0 }
 0x456   :  { %v1123_v51 = vpop.f32.mrf.mxu1  ;;  %v8775_v52 = vpop.f32.mrf.mxu0 }
 0x457   :  { %1136 = vst.msk [vmem:[#allocation2 + $0x38] sm:$0xff] %vm264_vm2, %v1123_v51 }
 0x458   :  { %v8768_v12 = vpop.f32.mrf.mxu1  ;;  %v1281_v41 = vpop.f32.mrf.mxu0 }
 0x459   :  { %v1282_v53 = vadd.f32 %v1281_v41, %v10044_v8 }
 0x45a   :  { %v1126_v54 = vpop.f32.mrf.mxu1  ;;  %v8786_v50 = vpop.f32.mrf.mxu0 }
 0x45b   :  { %v1543_v17 = vsel %vm647_vm4, %v1282_v53, -inf }
 0x45c   :  { %v8769_v55 = vpop.f32.mrf.mxu1  ;;  %1544 = vmax.xlane.f32.xlu0 %v1543_v17  ;;  %v1284_v44 = vpop.f32.mrf.mxu0 }
 0x45d   :  { %v10291_v17 = vpop.permute.xlu1 %1729 }
 0x45e   :  { %v1231_v58 = vpop.f32.mrf.mxu1  ;;  %v8787_v59 = vpop.f32.mrf.mxu0 }
 0x45f   :  { %v1232_v56 = vadd.f32 %v1231_v58, %v10063_v31 }
 0x460   :  { %v8780_v60 = vpop.f32.mrf.mxu1  ;;  %v1381_v61 = vpop.f32.mrf.mxu0 }
 0x461   :  { %v1382_v63 = vadd.f32 %v1381_v61, %v10060_v28  ;;  %v1540_v2 = vsel %vm647_vm4, %v1232_v56, -inf  ;;  %v10293_v58 = vpop.permute.xlu1 %1777 }
 0x462   :  { %1541 = vmax.xlane.f32.xlu1 %v1540_v2  ;;  %v1234_v4 = vpop.f32.mrf.mxu1  ;;  %v8798_v62 = vpop.f32.mrf.mxu0 }
 0x463   :  { %v1549_v10 = vsel %vm647_vm4, %v1382_v63, -inf }
 0x464   :  { %v8781_v5 = vpop.f32.mrf.mxu1  ;;  %v1384_v7 = vpop.f32.mrf.mxu0 }
 0x466   :  { %v1331_v1 = vpop.f32.mrf.mxu1  ;;  %1550 = vmax.xlane.f32.xlu1 %v1549_v10  ;;  %v8799_v13 = vpop.f32.mrf.mxu0 }
 0x467   :  { %v1332_v15 = vadd.f32 %v1331_v1, %v10072_v48 }
 0x468   :  { %v8792_v37 = vpop.f32.mrf.mxu1  ;;  %v1481_v57 = vpop.f32.mrf.mxu0 }
 0x469   :  { %v10277_v20 = vadd.f32 %v1481_v57, %v10075_v49  ;;  %v1546_v11 = vsel %vm647_vm4, %v1332_v15, -inf }
 0x46a   :  { %v1334_v22 = vpop.f32.mrf.mxu1  ;;  %1547 = vmax.xlane.f32.xlu0 %v1546_v11  ;;  %v8810_v23 = vpop.f32.mrf.mxu0 }
 0x46b   :  { %v1555_v24 = vsel %vm647_vm4, %v10277_v20, -inf }
 0x46c   :  { %v8793_v26 = vpop.f32.mrf.mxu1  ;;  %1556 = vmax.xlane.f32.xlu1 %v1555_v24  ;;  %v1484_v27 = vpop.f32.mrf.mxu0 }
 0x46e   :  { %v1431_v18 = vpop.f32.mrf.mxu1  ;;  %v8811_v30 = vpop.f32.mrf.mxu0 }
 0x46f   :  { %v1432_v32 = vadd.f32 %v1431_v18, %v10086_v3 }
 0x470   :  { %v8804_v34 = vpop.f32.mrf.mxu1 }
 0x471   :  { %v1552_v40 = vsel %vm647_vm4, %v1432_v32, -inf }
 0x472   :  { %v1434_v42 = vpop.f32.mrf.mxu1  ;;  %1553 = vmax.xlane.f32.xlu0 %v1552_v40 }
 0x474   :  { %v8805_v43 = vpop.f32.mrf.mxu1 }
 0x476   :  { %v1531_v46 = vpop.f32.mrf.mxu1 }
 0x477   :  { %v1532_v47 = vadd.f32 %v1531_v46, %v10091_v16 }
 0x478   :  { %v8816_v19 = vpop.f32.mrf.mxu1 }
 0x479   :  { %v1558_v51 = vsel %vm647_vm4, %v1532_v47, -inf }
 0x47a   :  { %v1534_v52 = vpop.f32.mrf.mxu1  ;;  %1559 = vmax.xlane.f32.xlu0 %v1558_v51 }
 0x47c   :  { %v8817_v12 = vpop.f32.mrf.mxu1 }
 0x47d   :  { %1873 = vrot.lane.b32.xlu1 %v9962_v35, %s9833_s13 }
 0x490   :  { %1825 = vrot.lane.b32.xlu0 %v9965_v36, %s9833_s13 }
 0x4dd   :  { %v1539_v41 = vpop.xlane.xlu0 %1538 }
 0x4de   :  { %v1561_v54 = vsub.f32 %v10264_v45, %v1539_v41 }
 0x4e0   :  { %v1569_v50 = vmul.f32 1.442695, %v1561_v54 }
 0x4e2   :  { %9562 = vpow2.f32 %v1569_v50 }
 0x4e5   :  { %v1545_v55 = vpop.xlane.xlu0 %1544 }
 0x4e6   :  { %v1563_v44 = vsub.f32 %v1282_v53, %v1545_v55 }
 0x4e8   :  { %v1573_v59 = vmul.f32 1.442695, %v1563_v44 }
 0x4ea   :  { %9564 = vpow2.f32 %v1573_v59 }
 0x4eb   :  { %v1542_v60 = vpop.xlane.xlu1 %1541 }
 0x4ec   :  { %v1562_v61 = vsub.f32 %v1232_v56, %v1542_v60  ;;  %v1735_v60 = vsel %vm749_vm3, %v10291_v17, 0 }
 0x4ee   :  { %v1571_v2 = vmul.f32 1.442695, %v1562_v61 }
 0x4ef   :  { %v10295_v4 = vpop.eup %9562  ;;  %v1551_v62 = vpop.xlane.xlu1 %1550 }
 0x4f0   :  { %9566 = vpow2.f32 %v1571_v2  ;;  %v1565_v5 = vsub.f32 %v1382_v63, %v1551_v62  ;;  %v1585_v45 = vsel %vm647_vm4, %v10295_v4, 0.0 }
 0x4f1   :  { %1586 = vadd.xlane.f32.xlu1 %v1585_v45 }
 0x4f2   :  { %v1577_v7 = vmul.f32 1.442695, %v1565_v5 }
 0x4f3   :  { %v1548_v10 = vpop.xlane.xlu0 %1547 }
 0x4f4   :  { %9568 = vpow2.f32 %v1577_v7  ;;  %v1564_v53 = vsub.f32 %v1332_v15, %v1548_v10 }
 0x4f5   :  { %v1557_v30 = vpop.xlane.xlu1 %1556 }
 0x4f6   :  { %v1575_v1 = vmul.f32 1.442695, %v1564_v53 }
 0x4f7   :  { %v10299_v13 = vpop.eup %9564 }
 0x4f8   :  { %9570 = vpow2.f32 %v1575_v1  ;;  %v1591_v56 = vsel %vm647_vm4, %v10299_v13, 0.0  ;;  %v1783_v1 = vsel %vm749_vm3, %v10293_v58, 0 }
 0x4f9   :  { %1592 = vadd.xlane.f32.xlu1 %v1591_v56 }
 0x4fb   :  { %v1554_v37 = vpop.xlane.xlu0 %1553 }
 0x4fc   :  { %v1566_v57 = vsub.f32 %v1432_v32, %v1554_v37  ;;  %v1567_v32 = vsub.f32 %v10277_v20, %v1557_v30 }
 0x4fd   :  { %v10303_v11 = vpop.eup %9566 }
 0x4fe   :  { %v1579_v63 = vmul.f32 1.442695, %v1566_v57  ;;  %v1588_v22 = vsel %vm647_vm4, %v10303_v11, 0.0  ;;  %v1581_v34 = vmul.f32 1.442695, %v1567_v32 }
 0x4ff   :  { %1589 = vadd.xlane.f32.xlu0 %v1588_v22 }
 0x500   :  { %9572 = vpow2.f32 %v1579_v63 }
 0x501   :  { %v10307_v23 = vpop.eup %9568  ;;  %9574 = vpow2.f32 %v1581_v34 }
 0x502   :  { %v1597_v15 = vsel %vm647_vm4, %v10307_v23, 0.0 }
 0x503   :  { %1598 = vadd.xlane.f32.xlu1 %v1597_v15  ;;  %v1560_v40 = vpop.xlane.xlu0 %1559 }
 0x504   :  { %v1568_v42 = vsub.f32 %v1532_v47, %v1560_v40  ;;  %v1874_v47 = vpop.permute.xlu1 %1873 }
 0x505   :  { %v10311_v24 = vpop.eup %9570  ;;  %v1879_v22 = vsel %vm749_vm3, %v1874_v47, 0 }
 0x506   :  { %v1594_v26 = vsel %vm647_vm4, %v10311_v24, 0.0  ;;  %v1583_v43 = vmul.f32 1.442695, %v1568_v42 }
 0x507   :  { %1595 = vadd.xlane.f32.xlu0 %v1594_v26  ;;  %v1826_v41 = vpop.permute.xlu0 %1825 }
 0x508   :  { %9576 = vpow2.f32 %v1583_v43  ;;  %v1831_v5 = vsel %vm749_vm3, %v1826_v41, 0 }
 0x50d   :  { %v10315_v27 = vpop.eup %9572 }
 0x50e   :  { %v1600_v18 = vsel %vm647_vm4, %v10315_v27, 0.0  ;;  %v10324_v46 = vpop.eup %9574 }
 0x50f   :  { %1601 = vadd.xlane.f32.xlu0 %v1600_v18  ;;  %v1603_v19 = vsel %vm647_vm4, %v10324_v46, 0.0 }
 0x514   :  { %1969 = vrot.lane.b32.xlu1 %v9968_v38, %s9833_s13 }
 0x515   :  { %v10328_v51 = vpop.eup %9576 }
 0x516   :  { %v1606_v20 = vsel %vm647_vm4, %v10328_v51, 0.0 }
 0x525   :  { %1921 = vrot.lane.b32.xlu0 %v9972_v39, %s9833_s13  ;;  %s9857_s13 = smov 24  }
 0x538   :  { %1604 = vadd.xlane.f32.xlu1 %v1603_v19 }
 0x544   :  { %1607 = vadd.xlane.f32.xlu0 %v1606_v20 }
 0x549   :  { %2110 = vrot.lane.b32.xlu1 %v9960_v33, %s9834_s14 }
 0x54d   :  { %2108 = vrot.lane.b32.xlu1 %v9960_v33, %s9835_s15 }
 0x551   :  { %2210 = vrot.lane.b32.xlu1 %v9957_v29, %s9834_s14 }
 0x555   :  { %2208 = vrot.lane.b32.xlu1 %v9957_v29, %s9835_s15 }
 0x559   :  { %2310 = vrot.lane.b32.xlu1 %v9962_v35, %s9834_s14 }
 0x55a   :  { %2060 = vrot.lane.b32.xlu0 %v9954_v25, %s9834_s14 }
 0x55d   :  { %2308 = vrot.lane.b32.xlu1 %v9962_v35, %s9835_s15 }
 0x55e   :  { %2058 = vrot.lane.b32.xlu0 %v9954_v25, %s9835_s15 }
 0x561   :  { %2410 = vrot.lane.b32.xlu1 %v9968_v38, %s9834_s14 }
 0x562   :  { %2160 = vrot.lane.b32.xlu0 %v9952_v21, %s9834_s14 }
 0x565   :  { %2408 = vrot.lane.b32.xlu1 %v9968_v38, %s9835_s15 }
 0x566   :  { %2158 = vrot.lane.b32.xlu0 %v9952_v21, %s9835_s15 }
 0x569   :  { %2554 = vrot.lane.b32.xlu1 %v9954_v25, %s9836_s16 }
 0x56a   :  { %2260 = vrot.lane.b32.xlu0 %v9965_v36, %s9834_s14 }
 0x56d   :  { %2650 = vrot.lane.b32.xlu1 %v9952_v21, %s9836_s16 }
 0x56e   :  { %2258 = vrot.lane.b32.xlu0 %v9965_v36, %s9835_s15 }
 0x571   :  { %2698 = vrot.lane.b32.xlu1 %v9957_v29, %s9836_s16 }
 0x572   :  { %2360 = vrot.lane.b32.xlu0 %v9972_v39, %s9834_s14  ;;  %s9858_s14 = smov 28  }
 0x576   :  { %2358 = vrot.lane.b32.xlu0 %v9972_v39, %s9835_s15 }
 0x57a   :  { %v1587_v52 = vpop.xlane.xlu1 %1586  ;;  %2602 = vrot.lane.b32.xlu0 %v9960_v33, %s9836_s16 }
 0x57b   :  { %9578 = vrcp.f32 %v1587_v52 }
 0x582   :  { %v1593_v12 = vpop.xlane.xlu1 %1592 }
 0x583   :  { %9580 = vrcp.f32 %v1593_v12 }
 0x588   :  { %v9579_v54 = vpop.eup %9578  ;;  %v1590_v50 = vpop.xlane.xlu0 %1589 }
 0x589   :  { %9582 = vrcp.f32 %v1590_v50  ;;  %v1617_v55 = vmul.f32 %v9579_v54, %v10295_v4 }
 0x58b   :  { %v1625_v44 = vpack.c.bf16 %v1617_v55, %v1617_v55 }
 0x58c   :  { %v1599_v59 = vpop.xlane.xlu1 %1598 }
 0x58d   :  { %9584 = vrcp.f32 %v1599_v59  ;;  %8821 = vmatmul.mubr.msk.bf16.vlgmr.msra.gmra.mxu0 %vm647_vm4, %v1625_v44 }
 0x58e   :  { %8831 = vmatpush3.bf16.msra.mxu0 %v1735_v60  ;;  %8832 = vmatprep.mubr.msk.bf16.mxu0 %vm9827_vm1, %v11984_v14 }
 0x58f   :  { %8842 = vmatprep.subr.bf16.mxu0 %v11984_v14 }
 0x590   :  { %v9581_v61 = vpop.eup %9580  ;;  %v1596_v2 = vpop.xlane.xlu0 %1595 }
 0x591   :  { %9586 = vrcp.f32 %v1596_v2  ;;  %v1619_v62 = vmul.f32 %v9581_v61, %v10299_v13 }
 0x593   :  { %v1627_v4 = vpack.c.bf16 %v1619_v62, %v1619_v62 }
 0x595   :  { %8833 = vmatmul.mubr.msk.bf16.vlgmr.msra.gmra.mxu0 %vm647_vm4, %v1627_v4 }
 0x596   :  { %v9583_v17 = vpop.eup %9582  ;;  %8843 = vmatpush3.bf16.msra.mxu0 %v1831_v5  ;;  %8844 = vmatprep.mubr.msk.bf16.mxu0 %vm9827_vm1, %v11984_v14 }
 0x597   :  { %v1618_v45 = vmul.f32 %v9583_v17, %v10303_v11  ;;  %8854 = vmatprep.subr.bf16.mxu0 %v11984_v14 }
 0x598   :  { %v1602_v7 = vpop.xlane.xlu0 %1601 }
 0x599   :  { %9588 = vrcp.f32 %v1602_v7  ;;  %v1626_v10 = vpack.c.bf16 %v1618_v45, %v1618_v45 }
 0x59a   :  { %v9585_v53 = vpop.eup %9584 }
 0x59b   :  { %8827 = vmatmul.mubr.msk.bf16.vlgmr.msra.gmra.mxu1 %vm647_vm4, %v1626_v10  ;;  %v1621_v13 = vmul.f32 %v9585_v53, %v10307_v23 }
 0x59c   :  { %8837 = vmatpush3.bf16.msra.mxu1 %v1783_v1  ;;  %v1922_v56 = vpop.permute.xlu0 %1921  ;;  %8838 = vmatprep.mubr.msk.bf16.mxu1 %vm9827_vm1, %v11984_v14 }
 0x59d   :  { %v1927_v37 = vsel %vm749_vm3, %v1922_v56, 0  ;;  %v1629_v57 = vpack.c.bf16 %v1621_v13, %v1621_v13  ;;  %8848 = vmatprep.subr.bf16.mxu1 %v11984_v14 }
 0x59e   :  { %v9587_v11 = vpop.eup %9586 }
 0x59f   :  { %8845 = vmatmul.mubr.msk.bf16.vlgmr.msra.gmra.mxu0 %vm647_vm4, %v1629_v57  ;;  %v1620_v63 = vmul.f32 %v9587_v11, %v10311_v24  ;;  %v1970_v24 = vpop.permute.xlu1 %1969 }
 0x5a0   :  { %8855 = vmatpush3.bf16.msra.mxu0 %v1927_v37  ;;  %8856 = vmatprep.mubr.msk.bf16.mxu0 %vm9827_vm1, %v11984_v14  ;;  %v1975_v18 = vsel %vm749_vm3, %v1970_v24, 0 }
 0x5a1   :  { %v1628_v58 = vpack.c.bf16 %v1620_v63, %v1620_v63  ;;  %8866 = vmatprep.subr.bf16.mxu0 %v11984_v14 }
 0x5a3   :  { %8839 = vmatmul.mubr.msk.bf16.vlgmr.msra.gmra.mxu1 %vm647_vm4, %v1628_v58 }
 0x5a4   :  { %8849 = vmatpush3.bf16.msra.mxu1 %v1879_v22  ;;  %8850 = vmatprep.mubr.msk.bf16.mxu1 %vm9827_vm1, %v11984_v14 }
 0x5a5   :  { %8860 = vmatprep.subr.bf16.mxu1 %v11984_v14 }
 0x5a6   :  { %v9589_v23 = vpop.eup %9588 }
 0x5a7   :  { %v1622_v15 = vmul.f32 %v9589_v23, %v10315_v27 }
 0x5a9   :  { %v1630_v26 = vpack.c.bf16 %v1622_v15, %v1622_v15 }
 0x5ab   :  { %8851 = vmatmul.mubr.msk.bf16.vlgmr.msra.gmra.mxu1 %vm647_vm4, %v1630_v26 }
 0x5ac   :  { %8861 = vmatpush3.bf16.msra.mxu1 %v1975_v18  ;;  %8862 = vmatprep.mubr.msk.bf16.mxu1 %vm9827_vm1, %v11984_v14 }
 0x5ad   :  { %8872 = vmatprep.subr.bf16.mxu1 %v11984_v14 }
 0x5c1   :  { %v1605_v30 = vpop.xlane.xlu1 %1604 }
 0x5c2   :  { %9590 = vrcp.f32 %v1605_v30 }
 0x5c5   :  { %v2111_v32 = vpop.permute.xlu1 %2110 }
 0x5c6   :  { %v2116_v61 = vsel %vm264_vm2, %v2111_v32, 0 }
 0x5c9   :  { %v2109_v34 = vpop.permute.xlu1 %2108 }
 0x5cd   :  { %v2211_v40 = vpop.permute.xlu1 %2210  ;;  %v1608_v42 = vpop.xlane.xlu0 %1607 }
 0x5ce   :  { %9592 = vrcp.f32 %v1608_v42  ;;  %v2216_v5 = vsel %vm264_vm2, %v2211_v40, 0 }
 0x5cf   :  { %v9591_v27 = vpop.eup %9590 }
 0x5d0   :  { %v1623_v43 = vmul.f32 %v9591_v27, %v10324_v46 }
 0x5d1   :  { %v2061_v19 = vpop.permute.xlu0 %2060  ;;  %v2209_v52 = vpop.permute.xlu1 %2208 }
 0x5d2   :  { %v2066_v20 = vsel %vm264_vm2, %v2061_v19, 0  ;;  %v1631_v47 = vpack.c.bf16 %v1623_v43, %v1623_v43 }
 0x5d4   :  { %8857 = vmatmul.mubr.msk.bf16.vlgmr.msra.gmra.mxu0 %vm647_vm4, %v1631_v47 }
 0x5d5   :  { %8867 = vmatpush3.bf16.xpose.msra.mxu0 %v2066_v20  ;;  %v2059_v12 = vpop.permute.xlu0 %2058  ;;  %8868 = vmatprep.mubr.msk.bf16.mxu0 %vm9827_vm1, %v11984_v14  ;;  %v2311_v41 = vpop.permute.xlu1 %2310 }
 0x5d6   :  { %8878 = vmatprep.subr.bf16.mxu0 %v11984_v14  ;;  %v2316_v10 = vsel %vm264_vm2, %v2311_v41, 0 }
 0x5d9   :  { %v2161_v54 = vpop.permute.xlu0 %2160  ;;  %v2309_v60 = vpop.permute.xlu1 %2308 }
 0x5da   :  { %v2166_v50 = vsel %vm264_vm2, %v2161_v54, 0 }
 0x5db   :  { %v9593_v55 = vpop.eup %9592 }
 0x5dc   :  { %8869 = vmatmul.mubr.msk.bf16.vlgmr.msra.gmra.mxu0 %vm264_vm2, %v2059_v12  ;;  %v1624_v46 = vmul.f32 %v9593_v55, %v10328_v51 }
 0x5dd   :  { %8879 = vmatpush3.bf16.xpose.msra.mxu0 %v2166_v50  ;;  %v2159_v44 = vpop.permute.xlu0 %2158  ;;  %8880 = vmatprep.mubr.msk.bf16.mxu0 %vm9827_vm1, %v11984_v14  ;;  %v2411_v62 = vpop.permute.xlu1 %2410 }
 0x5de   :  { %v1632_v59 = vpack.c.bf16 %v1624_v46, %v1624_v46  ;;  %8890 = vmatprep.subr.bf16.mxu0 %v11984_v14  ;;  %v2416_v56 = vsel %vm264_vm2, %v2411_v62, 0 }
 0x5e0   :  { %8863 = vmatmul.mubr.msk.bf16.vlgmr.msra.gmra.mxu1 %vm647_vm4, %v1632_v59 }
 0x5e1   :  { %8873 = vmatpush3.bf16.xpose.msra.mxu1 %v2116_v61  ;;  %v2261_v2 = vpop.permute.xlu0 %2260  ;;  %8874 = vmatprep.mubr.msk.bf16.mxu1 %vm9827_vm1, %v11984_v14  ;;  %v2409_v7 = vpop.permute.xlu1 %2408 }
 0x5e2   :  { %v2266_v51 = vsel %vm264_vm2, %v2261_v2, 0  ;;  %8884 = vmatprep.subr.bf16.mxu1 %v11984_v14 }
 0x5e4   :  { %8881 = vmatmul.mubr.msk.bf16.vlgmr.msra.gmra.mxu0 %vm264_vm2, %v2159_v44 }
 0x5e5   :  { %8891 = vmatpush3.bf16.xpose.msra.mxu0 %v2266_v51  ;;  %v2259_v4 = vpop.permute.xlu0 %2258  ;;  %8892 = vmatprep.mubr.msk.bf16.mxu0 %vm9827_vm1, %v11984_v14  ;;  %v2555_v53 = vpop.permute.xlu1 %2554 }
 0x5e6   :  { %8902 = vmatprep.subr.bf16.mxu0 %v11984_v14  ;;  %v2560_v13 = vsel %vm749_vm3, %v2555_v53, 0 }
 0x5e8   :  { %8875 = vmatmul.mubr.msk.bf16.vlgmr.msra.gmra.mxu1 %vm264_vm2, %v2109_v34 }
 0x5e9   :  { %8885 = vmatpush3.bf16.xpose.msra.mxu1 %v2216_v5  ;;  %v2361_v17 = vpop.permute.xlu0 %2360  ;;  %8886 = vmatprep.mubr.msk.bf16.mxu1 %vm9827_vm1, %v11984_v14 }
 0x5ea   :  { %v2366_v45 = vsel %vm264_vm2, %v2361_v17, 0  ;;  %8896 = vmatprep.subr.bf16.mxu1 %v11984_v14 }
 0x5ec   :  { %8893 = vmatmul.mubr.msk.bf16.vlgmr.msra.gmra.mxu0 %vm264_vm2, %v2259_v4 }
 0x5ed   :  { %8903 = vmatpush3.bf16.xpose.msra.mxu0 %v2366_v45  ;;  %8904 = vmatprep.mubr.msk.bf16.mxu0 %vm9827_vm1, %v11984_v14  ;;  %v2359_v1 = vpop.permute.xlu0 %2358 }
 0x5ee   :  { %8914 = vmatprep.subr.bf16.mxu0 %v11984_v14 }
 0x5f0   :  { %8887 = vmatmul.mubr.msk.bf16.vlgmr.msra.gmra.mxu1 %vm264_vm2, %v2209_v52 }
 0x5f1   :  { %8897 = vmatpush3.bf16.xpose.msra.mxu1 %v2316_v10  ;;  %8898 = vmatprep.mubr.msk.bf16.mxu1 %vm9827_vm1, %v11984_v14  ;;  %v2603_v37 = vpop.permute.xlu0 %2602 }
 0x5f2   :  { %8908 = vmatprep.subr.bf16.mxu1 %v11984_v14  ;;  %v2608_v57 = vsel %vm749_vm3, %v2603_v37, 0 }
 0x5f4   :  { %8905 = vmatmul.mubr.msk.bf16.vlgmr.msra.gmra.mxu0 %vm264_vm2, %v2359_v1 }
 0x5f5   :  { %8915 = vmatpush3.bf16.msra.mxu0 %v2560_v13  ;;  %8916 = vmatprep.mubr.msk.bf16.mxu0 %vm9827_vm1, %v11984_v14 }
 0x5f6   :  { %8926 = vmatprep.subr.bf16.mxu0 %v11984_v14 }
 0x5f8   :  { %8899 = vmatmul.mubr.msk.bf16.vlgmr.msra.gmra.mxu1 %vm264_vm2, %v2309_v60 }
 0x5f9   :  { %8909 = vmatpush3.bf16.xpose.msra.mxu1 %v2416_v56  ;;  %8910 = vmatprep.mubr.msk.bf16.mxu1 %vm9827_vm1, %v11984_v14 }
 0x5fa   :  { %8920 = vmatprep.subr.bf16.mxu1 %v11984_v14 }
 0x600   :  { %8911 = vmatmul.mubr.msk.bf16.vlgmr.msra.gmra.mxu1 %vm264_vm2, %v2409_v7 }
 0x601   :  { %8921 = vmatpush3.bf16.msra.mxu1 %v2608_v57  ;;  %8922 = vmatprep.mubr.msk.bf16.mxu1 %vm9827_vm1, %v11984_v14 }
 0x602   :  { %8932 = vmatprep.subr.bf16.mxu1 %v11984_v14 }
 0x64d   :  { %v10446_v11 = vpop.f32.mrf.mxu0 }
 0x64f   :  { %v8822_v63 = vpop.f32.mrf.mxu0 }
 0x651   :  { %v1678_v58 = vpop.f32.mrf.mxu0 }
 0x653   :  { %v8823_v22 = vpop.f32.mrf.mxu0 }
 0x655   :  { %v10448_v23 = vpop.f32.mrf.mxu0 }
 0x657   :  { %v8834_v15 = vpop.f32.mrf.mxu0 }
 0x659   :  { %v1774_v24 = vpop.f32.mrf.mxu0 }
 0x65b   :  { %v10450_v26 = vpop.f32.mrf.mxu1  ;;  %v8835_v18 = vpop.f32.mrf.mxu0 }
 0x65d   :  { %v8828_v30 = vpop.f32.mrf.mxu1 }
 0x65f   :  { %v1726_v32 = vpop.f32.mrf.mxu1  ;;  %v10452_v34 = vpop.f32.mrf.mxu0 }
 0x660   :  { %11991 = vst [vmem:[#allocation5_spill] sm:$0xff] %v10452_v34 }
 0x661   :  { %v8829_v40 = vpop.f32.mrf.mxu1  ;;  %v8846_v42 = vpop.f32.mrf.mxu0 }
 0x663   :  { %v10454_v27 = vpop.f32.mrf.mxu1  ;;  %v1870_v43 = vpop.f32.mrf.mxu0 }
 0x665   :  { %v8840_v19 = vpop.f32.mrf.mxu1  ;;  %v8847_v20 = vpop.f32.mrf.mxu0 }
 0x667   :  { %v1822_v47 = vpop.f32.mrf.mxu1 }
 0x669   :  { %v8841_v52 = vpop.f32.mrf.mxu1 }
 0x66b   :  { %v10456_v12 = vpop.f32.mrf.mxu1 }
 0x66d   :  { %v8852_v41 = vpop.f32.mrf.mxu1 }
 0x66f   :  { %v1918_v54 = vpop.f32.mrf.mxu1 }
 0x671   :  { %v8853_v50 = vpop.f32.mrf.mxu1 }
 0x694   :  { %v10458_v55 = vpop.f32.mrf.mxu0 }
 0x695   :  { %11992 = vst [vmem:[#allocation6_spill] sm:$0xff] %v10458_v55 }
 0x696   :  { %v8858_v46 = vpop.f32.mrf.mxu0 }
 0x698   :  { %v1966_v44 = vpop.f32.mrf.mxu0 }
 0x69a   :  { %v8859_v59 = vpop.f32.mrf.mxu0 }
 0x69c   :  { %v2102_v60 = vpop.f32.mrf.mxu0 }
 0x69d   :  { %v10461_v61 = vadd.f32 %v2102_v60, %v10047_v9 }
 0x69e   :  { %v8870_v2 = vpop.f32.mrf.mxu0 }
 0x69f   :  { %v2458_v51 = vsel %vm647_vm4, %v10461_v61, -inf }
 0x6a0   :  { %v10465_v62 = vpop.f32.mrf.mxu1  ;;  %2459 = vmax.xlane.f32.xlu0 %v2458_v51  ;;  %v2105_v4 = vpop.f32.mrf.mxu0 }
 0x6a2   :  { %v8864_v5 = vpop.f32.mrf.mxu1  ;;  %v8871_v17 = vpop.f32.mrf.mxu0 }
 0x6a4   :  { %v2014_v45 = vpop.f32.mrf.mxu1  ;;  %v2202_v7 = vpop.f32.mrf.mxu0 }
 0x6a5   :  { %v2203_v10 = vadd.f32 %v2202_v7, %v10044_v8 }
 0x6a6   :  { %v8865_v53 = vpop.f32.mrf.mxu1  ;;  %v8882_v1 = vpop.f32.mrf.mxu0 }
 0x6a7   :  { %v2464_v13 = vsel %vm647_vm4, %v2203_v10, -inf }
 0x6a8   :  { %v2152_v56 = vpop.f32.mrf.mxu1  ;;  %2465 = vmax.xlane.f32.xlu0 %v2464_v13  ;;  %v2205_v37 = vpop.f32.mrf.mxu0 }
 0x6a9   :  { %v2153_v57 = vadd.f32 %v2152_v56, %v10063_v31 }
 0x6aa   :  { %v8876_v63 = vpop.f32.mrf.mxu1  ;;  %v8883_v58 = vpop.f32.mrf.mxu0 }
 0x6ab   :  { %v2461_v22 = vsel %vm647_vm4, %v2153_v57, -inf }
 0x6ac   :  { %2462 = vmax.xlane.f32.xlu1 %v2461_v22  ;;  %v2155_v15 = vpop.f32.mrf.mxu1  ;;  %v2302_v24 = vpop.f32.mrf.mxu0 }
 0x6ad   :  { %v2303_v18 = vadd.f32 %v2302_v24, %v10060_v28  ;;  %v10489_v15 = vpop.permute.xlu1 %2650 }
 0x6ae   :  { %v8877_v30 = vpop.f32.mrf.mxu1  ;;  %v8894_v32 = vpop.f32.mrf.mxu0 }
 0x6af   :  { %v2470_v40 = vsel %vm647_vm4, %v2303_v18, -inf }
 0x6b0   :  { %v2252_v42 = vpop.f32.mrf.mxu1  ;;  %2471 = vmax.xlane.f32.xlu1 %v2470_v40  ;;  %v2305_v43 = vpop.f32.mrf.mxu0 }
 0x6b1   :  { %v2253_v19 = vadd.f32 %v2252_v42, %v10072_v48  ;;  %v10491_v30 = vpop.permute.xlu1 %2698 }
 0x6b2   :  { %v8888_v20 = vpop.f32.mrf.mxu1  ;;  %v8895_v47 = vpop.f32.mrf.mxu0 }
 0x6b3   :  { %v2467_v52 = vsel %vm647_vm4, %v2253_v19, -inf }
 0x6b4   :  { %v2255_v41 = vpop.f32.mrf.mxu1  ;;  %2468 = vmax.xlane.f32.xlu0 %v2467_v52  ;;  %v2402_v54 = vpop.f32.mrf.mxu0 }
 0x6b5   :  { %v10476_v50 = vadd.f32 %v2402_v54, %v10075_v49 }
 0x6b6   :  { %v8889_v46 = vpop.f32.mrf.mxu1  ;;  %v8906_v44 = vpop.f32.mrf.mxu0 }
 0x6b7   :  { %v2476_v59 = vsel %vm647_vm4, %v10476_v50, -inf }
 0x6b8   :  { %v2352_v60 = vpop.f32.mrf.mxu1  ;;  %2477 = vmax.xlane.f32.xlu1 %v2476_v59  ;;  %v2405_v2 = vpop.f32.mrf.mxu0 }
 0x6b9   :  { %v2353_v51 = vadd.f32 %v2352_v60, %v10086_v3 }
 0x6ba   :  { %v8900_v4 = vpop.f32.mrf.mxu1  ;;  %v8907_v5 = vpop.f32.mrf.mxu0 }
 0x6bb   :  { %v2473_v17 = vsel %vm647_vm4, %v2353_v51, -inf }
 0x6bc   :  { %v2355_v45 = vpop.f32.mrf.mxu1  ;;  %2474 = vmax.xlane.f32.xlu0 %v2473_v17 }
 0x6be   :  { %v8901_v7 = vpop.f32.mrf.mxu1 }
 0x6c0   :  { %v2452_v53 = vpop.f32.mrf.mxu1 }
 0x6c1   :  { %v2453_v1 = vadd.f32 %v2452_v53, %v10091_v16 }
 0x6c2   :  { %v8912_v13 = vpop.f32.mrf.mxu1 }
 0x6c3   :  { %v2479_v56 = vsel %vm647_vm4, %v2453_v1, -inf }
 0x6c4   :  { %v2455_v37 = vpop.f32.mrf.mxu1  ;;  %2480 = vmax.xlane.f32.xlu0 %v2479_v56 }
 0x6c6   :  { %v8913_v63 = vpop.f32.mrf.mxu1 }
 0x6c9   :  { %2794 = vrot.lane.b32.xlu1 %v9962_v35, %s9836_s16 }
 0x6da   :  { %2746 = vrot.lane.b32.xlu0 %v9965_v36, %s9836_s16 }
 0x729   :  { %v2460_v58 = vpop.xlane.xlu0 %2459 }
 0x72a   :  { %v2482_v22 = vsub.f32 %v10461_v61, %v2460_v58 }
 0x72c   :  { %v2490_v24 = vmul.f32 1.442695, %v2482_v22 }
 0x72e   :  { %9594 = vpow2.f32 %v2490_v24 }
 0x731   :  { %v2466_v32 = vpop.xlane.xlu0 %2465 }
 0x732   :  { %v2484_v40 = vsub.f32 %v2203_v10, %v2466_v32 }
 0x734   :  { %v2494_v42 = vmul.f32 1.442695, %v2484_v40 }
 0x735   :  { %v2463_v43 = vpop.xlane.xlu1 %2462 }
 0x736   :  { %9596 = vpow2.f32 %v2494_v42  ;;  %v2483_v20 = vsub.f32 %v2153_v57, %v2463_v43 }
 0x738   :  { %v2492_v47 = vmul.f32 1.442695, %v2483_v20 }
 0x739   :  { %v2472_v52 = vpop.xlane.xlu1 %2471 }
 0x73a   :  { %9598 = vpow2.f32 %v2492_v47  ;;  %v2486_v41 = vsub.f32 %v2303_v18, %v2472_v52 }
 0x73b   :  { %v10493_v54 = vpop.eup %9594 }
 0x73c   :  { %v2498_v46 = vmul.f32 1.442695, %v2486_v41  ;;  %v2506_v61 = vsel %vm647_vm4, %v10493_v54, 0.0 }
 0x73d   :  { %2507 = vadd.xlane.f32.xlu1 %v2506_v61  ;;  %v2469_v44 = vpop.xlane.xlu0 %2468 }
 0x73e   :  { %9600 = vpow2.f32 %v2498_v46  ;;  %v2485_v59 = vsub.f32 %v2253_v19, %v2469_v44 }
 0x740   :  { %v2496_v60 = vmul.f32 1.442695, %v2485_v59  ;;  %v2656_v59 = vsel %vm749_vm3, %v10489_v15, 0 }
 0x741   :  { %v2478_v56 = vpop.xlane.xlu1 %2477 }
 0x742   :  { %9602 = vpow2.f32 %v2496_v60  ;;  %v2488_v37 = vsub.f32 %v10476_v50, %v2478_v56 }
 0x743   :  { %v10497_v10 = vpop.eup %9596 }
 0x744   :  { %v2512_v57 = vsel %vm647_vm4, %v10497_v10, 0.0  ;;  %v2502_v63 = vmul.f32 1.442695, %v2488_v37 }
 0x745   :  { %2513 = vadd.xlane.f32.xlu1 %v2512_v57  ;;  %v2475_v2 = vpop.xlane.xlu0 %2474 }
 0x746   :  { %v2487_v18 = vsub.f32 %v2353_v51, %v2475_v2 }
 0x747   :  { %v10501_v4 = vpop.eup %9598 }
 0x748   :  { %v2500_v5 = vmul.f32 1.442695, %v2487_v18  ;;  %v2509_v17 = vsel %vm647_vm4, %v10501_v4, 0.0 }
 0x749   :  { %2510 = vadd.xlane.f32.xlu0 %v2509_v17 }
 0x74a   :  { %9604 = vpow2.f32 %v2500_v5 }
 0x74b   :  { %v10505_v45 = vpop.eup %9600  ;;  %9606 = vpow2.f32 %v2502_v63 }
 0x74c   :  { %v2518_v19 = vsel %vm647_vm4, %v10505_v45, 0.0 }
 0x74d   :  { %2519 = vadd.xlane.f32.xlu1 %v2518_v19  ;;  %v2481_v58 = vpop.xlane.xlu0 %2480 }
 0x74e   :  { %v2489_v22 = vsub.f32 %v2453_v1, %v2481_v58  ;;  %v2795_v1 = vpop.permute.xlu1 %2794 }
 0x74f   :  { %v10509_v7 = vpop.eup %9602 }
 0x750   :  { %v2515_v53 = vsel %vm647_vm4, %v10509_v7, 0.0  ;;  %v2504_v24 = vmul.f32 1.442695, %v2489_v22 }
 0x751   :  { %2516 = vadd.xlane.f32.xlu0 %v2515_v53  ;;  %v2747_v20 = vpop.permute.xlu0 %2746 }
 0x752   :  { %9608 = vpow2.f32 %v2504_v24  ;;  %v2752_v5 = vsel %vm749_vm3, %v2747_v20, 0 }
 0x757   :  { %v10513_v51 = vpop.eup %9604 }
 0x758   :  { %v2521_v13 = vsel %vm647_vm4, %v10513_v51, 0.0  ;;  %v10522_v32 = vpop.eup %9606 }
 0x759   :  { %2522 = vadd.xlane.f32.xlu0 %v2521_v13  ;;  %v2524_v40 = vsel %vm647_vm4, %v10522_v32, 0.0 }
 0x75e   :  { %2890 = vrot.lane.b32.xlu1 %v9968_v38, %s9836_s16 }
 0x75f   :  { %v10526_v42 = vpop.eup %9608 }
 0x760   :  { %v2527_v50 = vsel %vm647_vm4, %v10526_v42, 0.0 }
 0x76f   :  { %2842 = vrot.lane.b32.xlu0 %v9972_v39, %s9836_s16 }
 0x782   :  { %2525 = vadd.xlane.f32.xlu1 %v2524_v40 }
 0x78e   :  { %2528 = vadd.xlane.f32.xlu0 %v2527_v50 }
 0x793   :  { %3031 = vrot.lane.b32.xlu1 %v9960_v33, %s9837_s17 }
 0x797   :  { %3029 = vrot.lane.b32.xlu1 %v9960_v33, %s9838_s18 }
 0x79b   :  { %3131 = vrot.lane.b32.xlu1 %v9957_v29, %s9837_s17 }
 0x79f   :  { %3129 = vrot.lane.b32.xlu1 %v9957_v29, %s9838_s18 }
 0x7a3   :  { %3231 = vrot.lane.b32.xlu1 %v9962_v35, %s9837_s17 }
 0x7a4   :  { %2981 = vrot.lane.b32.xlu0 %v9954_v25, %s9837_s17 }
 0x7a7   :  { %3229 = vrot.lane.b32.xlu1 %v9962_v35, %s9838_s18 }
 0x7a8   :  { %2979 = vrot.lane.b32.xlu0 %v9954_v25, %s9838_s18 }
 0x7ab   :  { %3331 = vrot.lane.b32.xlu1 %v9968_v38, %s9837_s17 }
 0x7ac   :  { %3081 = vrot.lane.b32.xlu0 %v9952_v21, %s9837_s17 }
 0x7af   :  { %3329 = vrot.lane.b32.xlu1 %v9968_v38, %s9838_s18 }
 0x7b0   :  { %3079 = vrot.lane.b32.xlu0 %v9952_v21, %s9838_s18 }
 0x7b3   :  { %3475 = vrot.lane.b32.xlu1 %v9954_v25, %s9839_s19 }
 0x7b4   :  { %3181 = vrot.lane.b32.xlu0 %v9965_v36, %s9837_s17 }
 0x7b7   :  { %3571 = vrot.lane.b32.xlu1 %v9952_v21, %s9839_s19 }
 0x7b8   :  { %3179 = vrot.lane.b32.xlu0 %v9965_v36, %s9838_s18 }
 0x7bb   :  { %3619 = vrot.lane.b32.xlu1 %v9957_v29, %s9839_s19 }
 0x7bc   :  { %3281 = vrot.lane.b32.xlu0 %v9972_v39, %s9837_s17 }
 0x7c0   :  { %3279 = vrot.lane.b32.xlu0 %v9972_v39, %s9838_s18 }
 0x7c4   :  { %3523 = vrot.lane.b32.xlu0 %v9960_v33, %s9839_s19 }
 0x7c6   :  { %v2508_v43 = vpop.xlane.xlu1 %2507 }
 0x7c7   :  { %9610 = vrcp.f32 %v2508_v43 }
 0x7ce   :  { %v2514_v47 = vpop.xlane.xlu1 %2513 }
 0x7cf   :  { %9612 = vrcp.f32 %v2514_v47 }
 0x7d2   :  { %v2511_v52 = vpop.xlane.xlu0 %2510 }
 0x7d3   :  { %9614 = vrcp.f32 %v2511_v52 }
 0x7d4   :  { %v9611_v41 = vpop.eup %9610 }
 0x7d5   :  { %v2538_v46 = vmul.f32 %v9611_v41, %v10493_v54 }
 0x7d6   :  { %v2520_v61 = vpop.xlane.xlu1 %2519 }
 0x7d7   :  { %9616 = vrcp.f32 %v2520_v61  ;;  %v2546_v44 = vpack.c.bf16 %v2538_v46, %v2538_v46 }
 0x7d9   :  { %8917 = vmatmul.mubr.msk.bf16.vlgmr.msra.gmra.mxu0 %vm647_vm4, %v2546_v44 }
 0x7da   :  { %8927 = vmatpush3.bf16.msra.mxu0 %v2656_v59  ;;  %v2517_v60 = vpop.xlane.xlu0 %2516  ;;  %8928 = vmatprep.mubr.msk.bf16.mxu0 %vm9827_vm1, %v11984_v14  ;;  %v2891_v24 = vpop.permute.xlu1 %2890 }
 0x7db   :  { %9618 = vrcp.f32 %v2517_v60  ;;  %8938 = vmatprep.subr.bf16.mxu0 %v11984_v14  ;;  %v2896_v50 = vsel %vm749_vm3, %v2891_v24, 0 }
 0x7dc   :  { %v9613_v57 = vpop.eup %9612 }
 0x7dd   :  { %v2540_v2 = vmul.f32 %v9613_v57, %v10497_v10  ;;  %v2704_v10 = vsel %vm749_vm3, %v10491_v30, 0 }
 0x7df   :  { %v2548_v54 = vpack.c.bf16 %v2540_v2, %v2540_v2 }
 0x7e0   :  { %v9615_v18 = vpop.eup %9614 }
 0x7e1   :  { %8929 = vmatmul.mubr.msk.bf16.vlgmr.msra.gmra.mxu0 %vm647_vm4, %v2548_v54  ;;  %v2539_v15 = vmul.f32 %v9615_v18, %v10501_v4 }
 0x7e2   :  { %8939 = vmatpush3.bf16.msra.mxu0 %v2752_v5  ;;  %v2523_v17 = vpop.xlane.xlu0 %2522  ;;  %8940 = vmatprep.mubr.msk.bf16.mxu0 %vm9827_vm1, %v11984_v14 }
 0x7e3   :  { %9620 = vrcp.f32 %v2523_v17  ;;  %v2547_v19 = vpack.c.bf16 %v2539_v15, %v2539_v15  ;;  %8950 = vmatprep.subr.bf16.mxu0 %v11984_v14 }
 0x7e4   :  { %v9617_v53 = vpop.eup %9616 }
 0x7e5   :  { %8923 = vmatmul.mubr.msk.bf16.vlgmr.msra.gmra.mxu1 %vm647_vm4, %v2547_v19  ;;  %v2542_v13 = vmul.f32 %v9617_v53, %v10505_v45  ;;  %v2800_v45 = vsel %vm749_vm3, %v2795_v1, 0 }
 0x7e6   :  { %8933 = vmatpush3.bf16.msra.mxu1 %v2704_v10  ;;  %v2843_v56 = vpop.permute.xlu0 %2842  ;;  %8934 = vmatprep.mubr.msk.bf16.mxu1 %vm9827_vm1, %v11984_v14 }
 0x7e7   :  { %v2848_v4 = vsel %vm749_vm3, %v2843_v56, 0  ;;  %v2550_v37 = vpack.c.bf16 %v2542_v13, %v2542_v13  ;;  %8944 = vmatprep.subr.bf16.mxu1 %v11984_v14 }
 0x7e8   :  { %v9619_v63 = vpop.eup %9618 }
 0x7e9   :  { %8941 = vmatmul.mubr.msk.bf16.vlgmr.msra.gmra.mxu0 %vm647_vm4, %v2550_v37  ;;  %v2541_v58 = vmul.f32 %v9619_v63, %v10509_v7 }
 0x7ea   :  { %8951 = vmatpush3.bf16.msra.mxu0 %v2848_v4  ;;  %8952 = vmatprep.mubr.msk.bf16.mxu0 %vm9827_vm1, %v11984_v14 }
 0x7eb   :  { %v2549_v30 = vpack.c.bf16 %v2541_v58, %v2541_v58  ;;  %8962 = vmatprep.subr.bf16.mxu0 %v11984_v14 }
 0x7ed   :  { %8935 = vmatmul.mubr.msk.bf16.vlgmr.msra.gmra.mxu1 %vm647_vm4, %v2549_v30 }
 0x7ee   :  { %8945 = vmatpush3.bf16.msra.mxu1 %v2800_v45  ;;  %8946 = vmatprep.mubr.msk.bf16.mxu1 %vm9827_vm1, %v11984_v14 }
 0x7ef   :  { %8956 = vmatprep.subr.bf16.mxu1 %v11984_v14 }
 0x7f0   :  { %v9621_v22 = vpop.eup %9620 }
 0x7f1   :  { %v2543_v7 = vmul.f32 %v9621_v22, %v10513_v51 }
 0x7f3   :  { %v2551_v40 = vpack.c.bf16 %v2543_v7, %v2543_v7 }
 0x7f5   :  { %8947 = vmatmul.mubr.msk.bf16.vlgmr.msra.gmra.mxu1 %vm647_vm4, %v2551_v40 }
 0x7f6   :  { %8957 = vmatpush3.bf16.msra.mxu1 %v2896_v50  ;;  %8958 = vmatprep.mubr.msk.bf16.mxu1 %vm9827_vm1, %v11984_v14 }
 0x7f7   :  { %8968 = vmatprep.subr.bf16.mxu1 %v11984_v14 }
 0x80b   :  { %v2526_v1 = vpop.xlane.xlu1 %2525 }
 0x80c   :  { %9622 = vrcp.f32 %v2526_v1 }
 0x80f   :  { %v3032_v43 = vpop.permute.xlu1 %3031 }
 0x810   :  { %v3037_v19 = vsel %vm264_vm2, %v3032_v43, 0 }
 0x813   :  { %v3030_v20 = vpop.permute.xlu1 %3029 }
 0x817   :  { %v3132_v47 = vpop.permute.xlu1 %3131  ;;  %v2529_v52 = vpop.xlane.xlu0 %2528 }
 0x818   :  { %9624 = vrcp.f32 %v2529_v52  ;;  %v3137_v56 = vsel %vm264_vm2, %v3132_v47, 0 }
 0x819   :  { %v9623_v51 = vpop.eup %9622 }
 0x81a   :  { %v2544_v41 = vmul.f32 %v9623_v51, %v10522_v32 }
 0x81b   :  { %v2982_v46 = vpop.permute.xlu0 %2981  ;;  %v3130_v59 = vpop.permute.xlu1 %3129 }
 0x81c   :  { %v2987_v61 = vsel %vm264_vm2, %v2982_v46, 0  ;;  %v2552_v44 = vpack.c.bf16 %v2544_v41, %v2544_v41 }
 0x81e   :  { %8953 = vmatmul.mubr.msk.bf16.vlgmr.msra.gmra.mxu0 %vm647_vm4, %v2552_v44 }
 0x81f   :  { %8963 = vmatpush3.bf16.xpose.msra.mxu0 %v2987_v61  ;;  %v2980_v60 = vpop.permute.xlu0 %2979  ;;  %8964 = vmatprep.mubr.msk.bf16.mxu0 %vm9827_vm1, %v11984_v14  ;;  %v3232_v57 = vpop.permute.xlu1 %3231 }
 0x820   :  { %8974 = vmatprep.subr.bf16.mxu0 %v11984_v14  ;;  %v3237_v58 = vsel %vm264_vm2, %v3232_v57, 0 }
 0x823   :  { %v3082_v2 = vpop.permute.xlu0 %3081  ;;  %v3230_v17 = vpop.permute.xlu1 %3229 }
 0x824   :  { %v3087_v54 = vsel %vm264_vm2, %v3082_v2, 0 }
 0x825   :  { %v9625_v18 = vpop.eup %9624 }
 0x826   :  { %8965 = vmatmul.mubr.msk.bf16.vlgmr.msra.gmra.mxu0 %vm264_vm2, %v2980_v60  ;;  %v2545_v32 = vmul.f32 %v9625_v18, %v10526_v42 }
 0x827   :  { %8975 = vmatpush3.bf16.xpose.msra.mxu0 %v3087_v54  ;;  %v3080_v5 = vpop.permute.xlu0 %3079  ;;  %8976 = vmatprep.mubr.msk.bf16.mxu0 %vm9827_vm1, %v11984_v14  ;;  %v3332_v10 = vpop.permute.xlu1 %3331 }
 0x828   :  { %v2553_v15 = vpack.c.bf16 %v2545_v32, %v2545_v32  ;;  %8986 = vmatprep.subr.bf16.mxu0 %v11984_v14  ;;  %v3337_v7 = vsel %vm264_vm2, %v3332_v10, 0 }
 0x82a   :  { %8959 = vmatmul.mubr.msk.bf16.vlgmr.msra.gmra.mxu1 %vm647_vm4, %v2553_v15 }
 0x82b   :  { %8969 = vmatpush3.bf16.xpose.msra.mxu1 %v3037_v19  ;;  %v3182_v53 = vpop.permute.xlu0 %3181  ;;  %8970 = vmatprep.mubr.msk.bf16.mxu1 %vm9827_vm1, %v11984_v14  ;;  %v3330_v63 = vpop.permute.xlu1 %3329 }
 0x82c   :  { %v3187_v42 = vsel %vm264_vm2, %v3182_v53, 0  ;;  %8980 = vmatprep.subr.bf16.mxu1 %v11984_v14 }
 0x82e   :  { %8977 = vmatmul.mubr.msk.bf16.vlgmr.msra.gmra.mxu0 %vm264_vm2, %v3080_v5 }
 0x82f   :  { %8987 = vmatpush3.bf16.xpose.msra.mxu0 %v3187_v42  ;;  %v3180_v13 = vpop.permute.xlu0 %3179  ;;  %8988 = vmatprep.mubr.msk.bf16.mxu0 %vm9827_vm1, %v11984_v14  ;;  %v3476_v30 = vpop.permute.xlu1 %3475 }
 0x830   :  { %8998 = vmatprep.subr.bf16.mxu0 %v11984_v14  ;;  %v3481_v22 = vsel %vm749_vm3, %v3476_v30, 0 }
 0x832   :  { %8971 = vmatmul.mubr.msk.bf16.vlgmr.msra.gmra.mxu1 %vm264_vm2, %v3030_v20 }
 0x833   :  { %8981 = vmatpush3.bf16.xpose.msra.mxu1 %v3137_v56  ;;  %v3282_v4 = vpop.permute.xlu0 %3281  ;;  %8982 = vmatprep.mubr.msk.bf16.mxu1 %vm9827_vm1, %v11984_v14 }
 0x834   :  { %v3287_v37 = vsel %vm264_vm2, %v3282_v4, 0  ;;  %8992 = vmatprep.subr.bf16.mxu1 %v11984_v14 }
 0x836   :  { %8989 = vmatmul.mubr.msk.bf16.vlgmr.msra.gmra.mxu0 %vm264_vm2, %v3180_v13 }
 0x837   :  { %8999 = vmatpush3.bf16.xpose.msra.mxu0 %v3287_v37  ;;  %9000 = vmatprep.mubr.msk.bf16.mxu0 %vm9827_vm1, %v11984_v14  ;;  %v3280_v45 = vpop.permute.xlu0 %3279 }
 0x838   :  { %9010 = vmatprep.subr.bf16.mxu0 %v11984_v14 }
 0x83a   :  { %8983 = vmatmul.mubr.msk.bf16.vlgmr.msra.gmra.mxu1 %vm264_vm2, %v3130_v59 }
 0x83b   :  { %8993 = vmatpush3.bf16.xpose.msra.mxu1 %v3237_v58  ;;  %8994 = vmatprep.mubr.msk.bf16.mxu1 %vm9827_vm1, %v11984_v14  ;;  %v3524_v24 = vpop.permute.xlu0 %3523 }
 0x83c   :  { %9004 = vmatprep.subr.bf16.mxu1 %v11984_v14  ;;  %v3529_v40 = vsel %vm749_vm3, %v3524_v24, 0 }
 0x83e   :  { %9001 = vmatmul.mubr.msk.bf16.vlgmr.msra.gmra.mxu0 %vm264_vm2, %v3280_v45 }
 0x83f   :  { %9011 = vmatpush3.bf16.msra.mxu0 %v3481_v22  ;;  %9012 = vmatprep.mubr.msk.bf16.mxu0 %vm9827_vm1, %v11984_v14 }
 0x840   :  { %9022 = vmatprep.subr.bf16.mxu0 %v11984_v14 }
 0x842   :  { %8995 = vmatmul.mubr.msk.bf16.vlgmr.msra.gmra.mxu1 %vm264_vm2, %v3230_v17 }
 0x843   :  { %9005 = vmatpush3.bf16.xpose.msra.mxu1 %v3337_v7  ;;  %9006 = vmatprep.mubr.msk.bf16.mxu1 %vm9827_vm1, %v11984_v14 }
 0x844   :  { %9016 = vmatprep.subr.bf16.mxu1 %v11984_v14 }
 0x84a   :  { %9007 = vmatmul.mubr.msk.bf16.vlgmr.msra.gmra.mxu1 %vm264_vm2, %v3330_v63 }
 0x84b   :  { %9017 = vmatpush3.bf16.msra.mxu1 %v3529_v40  ;;  %9018 = vmatprep.mubr.msk.bf16.mxu1 %vm9827_vm1, %v11984_v14 }
 0x84c   :  { %9028 = vmatprep.subr.bf16.mxu1 %v11984_v14 }
 0x899   :  { %v10644_v50 = vpop.f32.mrf.mxu0 }
 0x89b   :  { %v8918_v1 = vpop.f32.mrf.mxu0 }
 0x89d   :  { %v2599_v43 = vpop.f32.mrf.mxu0 }
 0x89f   :  { %v8919_v20 = vpop.f32.mrf.mxu0 }
 0x8a1   :  { %v10646_v47 = vpop.f32.mrf.mxu0 }
 0x8a3   :  { %v8930_v52 = vpop.f32.mrf.mxu0 }
 0x8a5   :  { %v10648_v51 = vpop.f32.mrf.mxu1  ;;  %v2695_v41 = vpop.f32.mrf.mxu0 }
 0x8a7   :  { %v8924_v46 = vpop.f32.mrf.mxu1  ;;  %v8931_v61 = vpop.f32.mrf.mxu0 }
 0x8a9   :  { %v2647_v44 = vpop.f32.mrf.mxu1  ;;  %v10650_v59 = vpop.f32.mrf.mxu0 }
 0x8aa   :  { %11993 = vst [vmem:[#allocation7_spill] sm:$0xff] %v10650_v59 }
 0x8ab   :  { %v8925_v60 = vpop.f32.mrf.mxu1  ;;  %v8942_v57 = vpop.f32.mrf.mxu0 }
 0x8ad   :  { %v10652_v2 = vpop.f32.mrf.mxu1  ;;  %v2791_v54 = vpop.f32.mrf.mxu0 }
 0x8af   :  { %v8936_v18 = vpop.f32.mrf.mxu1  ;;  %v8943_v32 = vpop.f32.mrf.mxu0 }
 0x8b1   :  { %v2743_v5 = vpop.f32.mrf.mxu1 }
 0x8b3   :  { %v8937_v15 = vpop.f32.mrf.mxu1 }
 0x8b5   :  { %v10654_v17 = vpop.f32.mrf.mxu1 }
 0x8b7   :  { %v8948_v19 = vpop.f32.mrf.mxu1 }
 0x8b9   :  { %v2839_v53 = vpop.f32.mrf.mxu1 }
 0x8bb   :  { %v8949_v42 = vpop.f32.mrf.mxu1 }
 0x8de   :  { %v10656_v10 = vpop.f32.mrf.mxu0 }
 0x8df   :  { %11994 = vst [vmem:[#allocation8_spill] sm:$0xff] %v10656_v10 }
 0x8e0   :  { %v8954_v13 = vpop.f32.mrf.mxu0 }
 0x8e2   :  { %v2887_v56 = vpop.f32.mrf.mxu0 }
 0x8e4   :  { %v8955_v4 = vpop.f32.mrf.mxu0 }
 0x8e6   :  { %v3023_v37 = vpop.f32.mrf.mxu0 }
 0x8e7   :  { %v10659_v63 = vadd.f32 %v3023_v37, %v10047_v9 }
 0x8e8   :  { %v8966_v58 = vpop.f32.mrf.mxu0 }
 0x8e9   :  { %v3379_v30 = vsel %vm647_vm4, %v10659_v63, -inf }
 0x8ea   :  { %v10663_v45 = vpop.f32.mrf.mxu1  ;;  %3380 = vmax.xlane.f32.xlu0 %v3379_v30  ;;  %v3026_v22 = vpop.f32.mrf.mxu0 }
 0x8ec   :  { %v8960_v7 = vpop.f32.mrf.mxu1  ;;  %v8967_v24 = vpop.f32.mrf.mxu0 }
 0x8ee   :  { %v2935_v40 = vpop.f32.mrf.mxu1  ;;  %v3123_v1 = vpop.f32.mrf.mxu0 }
 0x8ef   :  { %v3124_v43 = vadd.f32 %v3123_v1, %v10044_v8 }
 0x8f0   :  { %v8961_v20 = vpop.f32.mrf.mxu1  ;;  %v8978_v52 = vpop.f32.mrf.mxu0 }
 0x8f1   :  { %v3385_v41 = vsel %vm647_vm4, %v3124_v43, -inf }
 0x8f2   :  { %v3073_v46 = vpop.f32.mrf.mxu1  ;;  %3386 = vmax.xlane.f32.xlu0 %v3385_v41  ;;  %v3126_v61 = vpop.f32.mrf.mxu0 }
 0x8f3   :  { %v3074_v44 = vadd.f32 %v3073_v46, %v10063_v31 }
 0x8f4   :  { %v8972_v60 = vpop.f32.mrf.mxu1  ;;  %v8979_v57 = vpop.f32.mrf.mxu0 }
 0x8f5   :  { %v3382_v54 = vsel %vm647_vm4, %v3074_v44, -inf }
 0x8f6   :  { %3383 = vmax.xlane.f32.xlu1 %v3382_v54  ;;  %v3076_v18 = vpop.f32.mrf.mxu1  ;;  %v3223_v32 = vpop.f32.mrf.mxu0 }
 0x8f7   :  { %v3224_v5 = vadd.f32 %v3223_v32, %v10060_v28 }
 0x8f8   :  { %v8973_v15 = vpop.f32.mrf.mxu1  ;;  %v8990_v19 = vpop.f32.mrf.mxu0 }
 0x8f9   :  { %v3391_v53 = vsel %vm647_vm4, %v3224_v5, -inf }
 0x8fa   :  { %v3173_v42 = vpop.f32.mrf.mxu1  ;;  %3392 = vmax.xlane.f32.xlu1 %v3391_v53  ;;  %v3226_v13 = vpop.f32.mrf.mxu0 }
 0x8fb   :  { %v3174_v56 = vadd.f32 %v3173_v42, %v10072_v48 }
 0x8fc   :  { %v8984_v4 = vpop.f32.mrf.mxu1  ;;  %v8991_v37 = vpop.f32.mrf.mxu0 }
 0x8fd   :  { %v3388_v58 = vsel %vm647_vm4, %v3174_v56, -inf  ;;  %v10687_v37 = vpop.permute.xlu1 %3571 }
 0x8fe   :  { %v3176_v30 = vpop.f32.mrf.mxu1  ;;  %3389 = vmax.xlane.f32.xlu0 %v3388_v58  ;;  %v3323_v22 = vpop.f32.mrf.mxu0 }
 0x8ff   :  { %v10674_v7 = vadd.f32 %v3323_v22, %v10075_v49 }
 0x900   :  { %v8985_v24 = vpop.f32.mrf.mxu1  ;;  %v9002_v40 = vpop.f32.mrf.mxu0 }
 0x901   :  { %v3397_v1 = vsel %vm647_vm4, %v10674_v7, -inf  ;;  %v10689_v30 = vpop.permute.xlu1 %3619 }
 0x902   :  { %v3273_v20 = vpop.f32.mrf.mxu1  ;;  %3398 = vmax.xlane.f32.xlu1 %v3397_v1  ;;  %v3326_v52 = vpop.f32.mrf.mxu0 }
 0x903   :  { %v3274_v41 = vadd.f32 %v3273_v20, %v10086_v3 }
 0x904   :  { %v8996_v46 = vpop.f32.mrf.mxu1  ;;  %v9003_v61 = vpop.f32.mrf.mxu0 }
 0x905   :  { %v3394_v60 = vsel %vm647_vm4, %v3274_v41, -inf }
 0x906   :  { %v3276_v57 = vpop.f32.mrf.mxu1  ;;  %3395 = vmax.xlane.f32.xlu0 %v3394_v60 }
 0x908   :  { %v8997_v54 = vpop.f32.mrf.mxu1 }
 0x90a   :  { %v3373_v18 = vpop.f32.mrf.mxu1 }
 0x90b   :  { %v3374_v32 = vadd.f32 %v3373_v18, %v10091_v16 }
 0x90c   :  { %v9008_v15 = vpop.f32.mrf.mxu1 }
 0x90d   :  { %v3400_v19 = vsel %vm647_vm4, %v3374_v32, -inf }
 0x90e   :  { %v3376_v53 = vpop.f32.mrf.mxu1  ;;  %3401 = vmax.xlane.f32.xlu0 %v3400_v19 }
 0x910   :  { %v9009_v42 = vpop.f32.mrf.mxu1 }
 0x913   :  { %3715 = vrot.lane.b32.xlu1 %v9962_v35, %s9839_s19 }
 0x924   :  { %3667 = vrot.lane.b32.xlu0 %v9965_v36, %s9839_s19 }
 0x973   :  { %v3381_v13 = vpop.xlane.xlu0 %3380 }
 0x974   :  { %v3403_v4 = vsub.f32 %v10659_v63, %v3381_v13 }
 0x976   :  { %v3411_v58 = vmul.f32 1.442695, %v3403_v4 }
 0x978   :  { %9626 = vpow2.f32 %v3411_v58 }
 0x97b   :  { %v3387_v22 = vpop.xlane.xlu0 %3386 }
 0x97c   :  { %v3405_v24 = vsub.f32 %v3124_v43, %v3387_v22 }
 0x97e   :  { %v3415_v40 = vmul.f32 1.442695, %v3405_v24 }
 0x97f   :  { %v3384_v1 = vpop.xlane.xlu1 %3383 }
 0x980   :  { %9628 = vpow2.f32 %v3415_v40  ;;  %v3404_v20 = vsub.f32 %v3074_v44, %v3384_v1 }
 0x982   :  { %v3413_v52 = vmul.f32 1.442695, %v3404_v20 }
 0x983   :  { %v3393_v46 = vpop.xlane.xlu1 %3392 }
 0x984   :  { %9630 = vpow2.f32 %v3413_v52  ;;  %v3407_v61 = vsub.f32 %v3224_v5, %v3393_v46 }
 0x985   :  { %v10691_v60 = vpop.eup %9626 }
 0x986   :  { %v3419_v57 = vmul.f32 1.442695, %v3407_v61  ;;  %v3427_v63 = vsel %vm647_vm4, %v10691_v60, 0.0 }
 0x987   :  { %3428 = vadd.xlane.f32.xlu1 %v3427_v63  ;;  %v3390_v54 = vpop.xlane.xlu0 %3389 }
 0x988   :  { %9632 = vpow2.f32 %v3419_v57  ;;  %v3406_v18 = vsub.f32 %v3174_v56, %v3390_v54 }
 0x98a   :  { %v3417_v15 = vmul.f32 1.442695, %v3406_v18 }
 0x98b   :  { %v3399_v40 = vpop.xlane.xlu1 %3398 }
 0x98c   :  { %9634 = vpow2.f32 %v3417_v15  ;;  %v3409_v1 = vsub.f32 %v10674_v7, %v3399_v40 }
 0x98d   :  { %v10695_v43 = vpop.eup %9628 }
 0x98e   :  { %v3433_v44 = vsel %vm647_vm4, %v10695_v43, 0.0  ;;  %v3423_v20 = vmul.f32 1.442695, %v3409_v1 }
 0x98f   :  { %3434 = vadd.xlane.f32.xlu1 %v3433_v44  ;;  %v3396_v19 = vpop.xlane.xlu0 %3395 }
 0x990   :  { %v3408_v5 = vsub.f32 %v3274_v41, %v3396_v19 }
 0x991   :  { %v10699_v53 = vpop.eup %9630 }
 0x992   :  { %v3421_v42 = vmul.f32 1.442695, %v3408_v5  ;;  %v3430_v13 = vsel %vm647_vm4, %v10699_v53, 0.0 }
 0x993   :  { %3431 = vadd.xlane.f32.xlu0 %v3430_v13 }
 0x994   :  { %9636 = vpow2.f32 %v3421_v42 }
 0x995   :  { %v10703_v4 = vpop.eup %9632  ;;  %9638 = vpow2.f32 %v3423_v20 }
 0x996   :  { %v3439_v56 = vsel %vm647_vm4, %v10703_v4, 0.0 }
 0x997   :  { %3440 = vadd.xlane.f32.xlu1 %v3439_v56  ;;  %v3402_v52 = vpop.xlane.xlu0 %3401 }
 0x998   :  { %v3410_v46 = vsub.f32 %v3374_v32, %v3402_v52  ;;  %v3716_v32 = vpop.permute.xlu1 %3715 }
 0x999   :  { %v10707_v58 = vpop.eup %9634 }
 0x99a   :  { %v3436_v22 = vsel %vm647_vm4, %v10707_v58, 0.0  ;;  %v3425_v61 = vmul.f32 1.442695, %v3410_v46 }
 0x99b   :  { %3437 = vadd.xlane.f32.xlu0 %v3436_v22  ;;  %v3668_v15 = vpop.permute.xlu0 %3667  ;;  %v3577_v22 = vsel %vm749_vm3, %v10687_v37, 0 }
 0x99c   :  { %9640 = vpow2.f32 %v3425_v61  ;;  %v3673_v52 = vsel %vm749_vm3, %v3668_v15, 0 }
 0x9a1   :  { %v10711_v41 = vpop.eup %9636 }
 0x9a2   :  { %v3442_v24 = vsel %vm647_vm4, %v10711_v41, 0.0  ;;  %v10720_v57 = vpop.eup %9638 }
 0x9a3   :  { %3443 = vadd.xlane.f32.xlu0 %v3442_v24  ;;  %v3445_v63 = vsel %vm647_vm4, %v10720_v57, 0.0 }
 0x9a8   :  { %3811 = vrot.lane.b32.xlu1 %v9968_v38, %s9839_s19 }
 0x9a9   :  { %v10724_v54 = vpop.eup %9640 }
 0x9aa   :  { %v3448_v7 = vsel %vm647_vm4, %v10724_v54, 0.0 }
 0x9b9   :  { %3763 = vrot.lane.b32.xlu0 %v9972_v39, %s9839_s19 }
 0x9cc   :  { %3446 = vadd.xlane.f32.xlu1 %v3445_v63 }
 0x9d8   :  { %3449 = vadd.xlane.f32.xlu0 %v3448_v7 }
 0x9dd   :  { %3952 = vrot.lane.b32.xlu1 %v9960_v33, %s9840_s2 }
 0x9e1   :  { %3950 = vrot.lane.b32.xlu1 %v9960_v33, %s9841_s20 }
 0x9e5   :  { %4052 = vrot.lane.b32.xlu1 %v9957_v29, %s9840_s2 }
 0x9e9   :  { %4050 = vrot.lane.b32.xlu1 %v9957_v29, %s9841_s20 }
 0x9ed   :  { %4152 = vrot.lane.b32.xlu1 %v9962_v35, %s9840_s2 }
 0x9ee   :  { %3902 = vrot.lane.b32.xlu0 %v9954_v25, %s9840_s2 }
 0x9f1   :  { %4150 = vrot.lane.b32.xlu1 %v9962_v35, %s9841_s20 }
 0x9f2   :  { %3900 = vrot.lane.b32.xlu0 %v9954_v25, %s9841_s20 }
 0x9f5   :  { %4252 = vrot.lane.b32.xlu1 %v9968_v38, %s9840_s2 }
 0x9f6   :  { %4002 = vrot.lane.b32.xlu0 %v9952_v21, %s9840_s2 }
 0x9f9   :  { %4250 = vrot.lane.b32.xlu1 %v9968_v38, %s9841_s20 }
 0x9fa   :  { %4000 = vrot.lane.b32.xlu0 %v9952_v21, %s9841_s20 }
 0x9fd   :  { %4396 = vrot.lane.b32.xlu1 %v9954_v25, %s9842_s21 }
 0x9fe   :  { %4102 = vrot.lane.b32.xlu0 %v9965_v36, %s9840_s2 }
 0xa01   :  { %4492 = vrot.lane.b32.xlu1 %v9952_v21, %s9842_s21 }
 0xa02   :  { %4100 = vrot.lane.b32.xlu0 %v9965_v36, %s9841_s20 }
 0xa05   :  { %4540 = vrot.lane.b32.xlu1 %v9957_v29, %s9842_s21 }
 0xa06   :  { %4202 = vrot.lane.b32.xlu0 %v9972_v39, %s9840_s2 }
 0xa0a   :  { %4200 = vrot.lane.b32.xlu0 %v9972_v39, %s9841_s20 }
 0xa0e   :  { %4444 = vrot.lane.b32.xlu0 %v9960_v33, %s9842_s21 }
 0xa10   :  { %v3429_v18 = vpop.xlane.xlu1 %3428 }
 0xa11   :  { %9642 = vrcp.f32 %v3429_v18 }
 0xa18   :  { %v3435_v44 = vpop.xlane.xlu1 %3434 }
 0xa19   :  { %9644 = vrcp.f32 %v3435_v44 }
 0xa1c   :  { %v3432_v19 = vpop.xlane.xlu0 %3431 }
 0xa1d   :  { %9646 = vrcp.f32 %v3432_v19 }
 0xa1e   :  { %v9643_v5 = vpop.eup %9642 }
 0xa1f   :  { %v3459_v42 = vmul.f32 %v9643_v5, %v10691_v60 }
 0xa20   :  { %v3441_v13 = vpop.xlane.xlu1 %3440 }
 0xa21   :  { %v3467_v56 = vpack.c.bf16 %v3459_v42, %v3459_v42  ;;  %9648 = vrcp.f32 %v3441_v13 }
 0xa23   :  { %9013 = vmatmul.mubr.msk.bf16.vlgmr.msra.gmra.mxu0 %vm647_vm4, %v3467_v56 }
 0xa24   :  { %9023 = vmatpush3.bf16.msra.mxu0 %v3577_v22  ;;  %v3438_v24 = vpop.xlane.xlu0 %3437  ;;  %9024 = vmatprep.mubr.msk.bf16.mxu0 %vm9827_vm1, %v11984_v14  ;;  %v3812_v42 = vpop.permute.xlu1 %3811 }
 0xa25   :  { %9650 = vrcp.f32 %v3438_v24  ;;  %9034 = vmatprep.subr.bf16.mxu0 %v11984_v14  ;;  %v3817_v56 = vsel %vm749_vm3, %v3812_v42, 0 }
 0xa26   :  { %v9645_v40 = vpop.eup %9644 }
 0xa27   :  { %v3461_v1 = vmul.f32 %v9645_v40, %v10695_v43  ;;  %v3625_v43 = vsel %vm749_vm3, %v10689_v30, 0 }
 0xa29   :  { %v3469_v60 = vpack.c.bf16 %v3461_v1, %v3461_v1 }
 0xa2a   :  { %v9647_v20 = vpop.eup %9646 }
 0xa2b   :  { %v3460_v46 = vmul.f32 %v9647_v20, %v10699_v53  ;;  %9025 = vmatmul.mubr.msk.bf16.vlgmr.msra.gmra.mxu0 %vm647_vm4, %v3469_v60 }
 0xa2c   :  { %9035 = vmatpush3.bf16.msra.mxu0 %v3673_v52  ;;  %v3444_v37 = vpop.xlane.xlu0 %3443  ;;  %9036 = vmatprep.mubr.msk.bf16.mxu0 %vm9827_vm1, %v11984_v14 }
 0xa2d   :  { %v3468_v61 = vpack.c.bf16 %v3460_v46, %v3460_v46  ;;  %9652 = vrcp.f32 %v3444_v37  ;;  %9046 = vmatprep.subr.bf16.mxu0 %v11984_v14 }
 0xa2e   :  { %v9649_v63 = vpop.eup %9648 }
 0xa2f   :  { %v3463_v7 = vmul.f32 %v9649_v63, %v10703_v4  ;;  %9019 = vmatmul.mubr.msk.bf16.vlgmr.msra.gmra.mxu1 %vm647_vm4, %v3468_v61  ;;  %v3721_v4 = vsel %vm749_vm3, %v3716_v32, 0 }
 0xa30   :  { %9029 = vmatpush3.bf16.msra.mxu1 %v3625_v43  ;;  %v3764_v53 = vpop.permute.xlu0 %3763  ;;  %9030 = vmatprep.mubr.msk.bf16.mxu1 %vm9827_vm1, %v11984_v14 }
 0xa31   :  { %v3471_v18 = vpack.c.bf16 %v3463_v7, %v3463_v7  ;;  %v3769_v15 = vsel %vm749_vm3, %v3764_v53, 0  ;;  %9040 = vmatprep.subr.bf16.mxu1 %v11984_v14 }
 0xa32   :  { %v9651_v44 = vpop.eup %9650 }
 0xa33   :  { %v3462_v19 = vmul.f32 %v9651_v44, %v10707_v58  ;;  %9037 = vmatmul.mubr.msk.bf16.vlgmr.msra.gmra.mxu0 %vm647_vm4, %v3471_v18 }
 0xa34   :  { %9047 = vmatpush3.bf16.msra.mxu0 %v3769_v15  ;;  %9048 = vmatprep.mubr.msk.bf16.mxu0 %vm9827_vm1, %v11984_v14 }
 0xa35   :  { %v3470_v30 = vpack.c.bf16 %v3462_v19, %v3462_v19  ;;  %9058 = vmatprep.subr.bf16.mxu0 %v11984_v14 }
 0xa37   :  { %9031 = vmatmul.mubr.msk.bf16.vlgmr.msra.gmra.mxu1 %vm647_vm4, %v3470_v30 }
 0xa38   :  { %9041 = vmatpush3.bf16.msra.mxu1 %v3721_v4  ;;  %9042 = vmatprep.mubr.msk.bf16.mxu1 %vm9827_vm1, %v11984_v14 }
 0xa39   :  { %9052 = vmatprep.subr.bf16.mxu1 %v11984_v14 }
 0xa3a   :  { %v9653_v58 = vpop.eup %9652 }
 0xa3b   :  { %v3464_v5 = vmul.f32 %v9653_v58, %v10711_v41 }
 0xa3d   :  { %v3472_v13 = vpack.c.bf16 %v3464_v5, %v3464_v5 }
 0xa3f   :  { %9043 = vmatmul.mubr.msk.bf16.vlgmr.msra.gmra.mxu1 %vm647_vm4, %v3472_v13 }
 0xa40   :  { %9053 = vmatpush3.bf16.msra.mxu1 %v3817_v56  ;;  %9054 = vmatprep.mubr.msk.bf16.mxu1 %vm9827_vm1, %v11984_v14 }
 0xa41   :  { %9064 = vmatprep.subr.bf16.mxu1 %v11984_v14 }
 0xa55   :  { %v3447_v32 = vpop.xlane.xlu1 %3446 }
 0xa56   :  { %9654 = vrcp.f32 %v3447_v32 }
 0xa59   :  { %v3953_v22 = vpop.permute.xlu1 %3952 }
 0xa5a   :  { %v3958_v19 = vsel %vm264_vm2, %v3953_v22, 0 }
 0xa5d   :  { %v3951_v24 = vpop.permute.xlu1 %3950 }
 0xa61   :  { %v4053_v40 = vpop.permute.xlu1 %4052  ;;  %v3450_v1 = vpop.xlane.xlu0 %3449 }
 0xa62   :  { %9656 = vrcp.f32 %v3450_v1  ;;  %v4058_v5 = vsel %vm264_vm2, %v4053_v40, 0 }
 0xa63   :  { %v9655_v41 = vpop.eup %9654 }
 0xa64   :  { %v3465_v60 = vmul.f32 %v9655_v41, %v10720_v57 }
 0xa65   :  { %v3903_v20 = vpop.permute.xlu0 %3902  ;;  %v4051_v37 = vpop.permute.xlu1 %4050 }
 0xa66   :  { %v3473_v52 = vpack.c.bf16 %v3465_v60, %v3465_v60  ;;  %v3908_v46 = vsel %vm264_vm2, %v3903_v20, 0 }
 0xa68   :  { %9049 = vmatmul.mubr.msk.bf16.vlgmr.msra.gmra.mxu0 %vm647_vm4, %v3473_v52 }
 0xa69   :  { %9059 = vmatpush3.bf16.xpose.msra.mxu0 %v3908_v46  ;;  %v3901_v61 = vpop.permute.xlu0 %3900  ;;  %9060 = vmatprep.mubr.msk.bf16.mxu0 %vm9827_vm1, %v11984_v14  ;;  %v4153_v63 = vpop.permute.xlu1 %4152 }
 0xa6a   :  { %9070 = vmatprep.subr.bf16.mxu0 %v11984_v14  ;;  %v4158_v32 = vsel %vm264_vm2, %v4153_v63, 0 }
 0xa6d   :  { %v4003_v43 = vpop.permute.xlu0 %4002  ;;  %v4151_v44 = vpop.permute.xlu1 %4150 }
 0xa6e   :  { %v4008_v7 = vsel %vm264_vm2, %v4003_v43, 0 }
 0xa6f   :  { %v9657_v53 = vpop.eup %9656 }
 0xa70   :  { %v3466_v57 = vmul.f32 %v9657_v53, %v10724_v54  ;;  %9061 = vmatmul.mubr.msk.bf16.vlgmr.msra.gmra.mxu0 %vm264_vm2, %v3901_v61 }
 0xa71   :  { %9071 = vmatpush3.bf16.xpose.msra.mxu0 %v4008_v7  ;;  %v4001_v18 = vpop.permute.xlu0 %4000  ;;  %9072 = vmatprep.mubr.msk.bf16.mxu0 %vm9827_vm1, %v11984_v14  ;;  %v4253_v4 = vpop.permute.xlu1 %4252 }
 0xa72   :  { %v3474_v15 = vpack.c.bf16 %v3466_v57, %v3466_v57  ;;  %9082 = vmatprep.subr.bf16.mxu0 %v11984_v14  ;;  %v4258_v1 = vsel %vm264_vm2, %v4253_v4, 0 }
 0xa74   :  { %9055 = vmatmul.mubr.msk.bf16.vlgmr.msra.gmra.mxu1 %vm647_vm4, %v3474_v15 }
 0xa75   :  { %9065 = vmatpush3.bf16.xpose.msra.mxu1 %v3958_v19  ;;  %v4103_v30 = vpop.permute.xlu0 %4102  ;;  %9066 = vmatprep.mubr.msk.bf16.mxu1 %vm9827_vm1, %v11984_v14  ;;  %v4251_v56 = vpop.permute.xlu1 %4250 }
 0xa76   :  { %v4108_v54 = vsel %vm264_vm2, %v4103_v30, 0  ;;  %9076 = vmatprep.subr.bf16.mxu1 %v11984_v14 }
 0xa78   :  { %9073 = vmatmul.mubr.msk.bf16.vlgmr.msra.gmra.mxu0 %vm264_vm2, %v4001_v18 }
 0xa79   :  { %9083 = vmatpush3.bf16.xpose.msra.mxu0 %v4108_v54  ;;  %v4101_v58 = vpop.permute.xlu0 %4100  ;;  %9084 = vmatprep.mubr.msk.bf16.mxu0 %vm9827_vm1, %v11984_v14  ;;  %v4397_v22 = vpop.permute.xlu1 %4396 }
 0xa7a   :  { %9094 = vmatprep.subr.bf16.mxu0 %v11984_v14  ;;  %v4402_v40 = vsel %vm749_vm3, %v4397_v22, 0 }
 0xa7c   :  { %9067 = vmatmul.mubr.msk.bf16.vlgmr.msra.gmra.mxu1 %vm264_vm2, %v3951_v24 }
 0xa7d   :  { %9077 = vmatpush3.bf16.xpose.msra.mxu1 %v4058_v5  ;;  %v4203_v42 = vpop.permute.xlu0 %4202  ;;  %9078 = vmatprep.mubr.msk.bf16.mxu1 %vm9827_vm1, %v11984_v14 }
 0xa7e   :  { %v4208_v13 = vsel %vm264_vm2, %v4203_v42, 0  ;;  %9088 = vmatprep.subr.bf16.mxu1 %v11984_v14 }
 0xa80   :  { %9085 = vmatmul.mubr.msk.bf16.vlgmr.msra.gmra.mxu0 %vm264_vm2, %v4101_v58 }
 0xa81   :  { %9095 = vmatpush3.bf16.xpose.msra.mxu0 %v4208_v13  ;;  %9096 = vmatprep.mubr.msk.bf16.mxu0 %vm9827_vm1, %v11984_v14  ;;  %v4201_v24 = vpop.permute.xlu0 %4200 }
 0xa82   :  { %9106 = vmatprep.subr.bf16.mxu0 %v11984_v14 }
 0xa84   :  { %9079 = vmatmul.mubr.msk.bf16.vlgmr.msra.gmra.mxu1 %vm264_vm2, %v4051_v37 }
 0xa85   :  { %9089 = vmatpush3.bf16.xpose.msra.mxu1 %v4158_v32  ;;  %9090 = vmatprep.mubr.msk.bf16.mxu1 %vm9827_vm1, %v11984_v14  ;;  %v4445_v41 = vpop.permute.xlu0 %4444 }
 0xa86   :  { %9100 = vmatprep.subr.bf16.mxu1 %v11984_v14  ;;  %v4450_v60 = vsel %vm749_vm3, %v4445_v41, 0 }
 0xa88   :  { %9097 = vmatmul.mubr.msk.bf16.vlgmr.msra.gmra.mxu0 %vm264_vm2, %v4201_v24 }
 0xa89   :  { %9107 = vmatpush3.bf16.msra.mxu0 %v4402_v40  ;;  %9108 = vmatprep.mubr.msk.bf16.mxu0 %vm9827_vm1, %v11984_v14 }
 0xa8a   :  { %9118 = vmatprep.subr.bf16.mxu0 %v11984_v14 }
 0xa8c   :  { %9091 = vmatmul.mubr.msk.bf16.vlgmr.msra.gmra.mxu1 %vm264_vm2, %v4151_v44 }
 0xa8d   :  { %9101 = vmatpush3.bf16.xpose.msra.mxu1 %v4258_v1  ;;  %9102 = vmatprep.mubr.msk.bf16.mxu1 %vm9827_vm1, %v11984_v14 }
 0xa8e   :  { %9112 = vmatprep.subr.bf16.mxu1 %v11984_v14 }
 0xa94   :  { %9103 = vmatmul.mubr.msk.bf16.vlgmr.msra.gmra.mxu1 %vm264_vm2, %v4251_v56 }
 0xa95   :  { %9113 = vmatpush3.bf16.msra.mxu1 %v4450_v60  ;;  %9114 = vmatprep.mubr.msk.bf16.mxu1 %vm9827_vm1, %v11984_v14 }
 0xa96   :  { %9124 = vmatprep.subr.bf16.mxu1 %v11984_v14 }
 0xae3   :  { %v10842_v20 = vpop.f32.mrf.mxu0 }
 0xae5   :  { %v9014_v52 = vpop.f32.mrf.mxu0 }
 0xae7   :  { %v3520_v46 = vpop.f32.mrf.mxu0 }
 0xae9   :  { %v9015_v37 = vpop.f32.mrf.mxu0 }
 0xaeb   :  { %v10844_v61 = vpop.f32.mrf.mxu0 }
 0xaed   :  { %v9026_v63 = vpop.f32.mrf.mxu0 }
 0xaef   :  { %v10846_v43 = vpop.f32.mrf.mxu1  ;;  %v3616_v7 = vpop.f32.mrf.mxu0 }
 0xaf1   :  { %v9020_v53 = vpop.f32.mrf.mxu1  ;;  %v9027_v57 = vpop.f32.mrf.mxu0 }
 0xaf3   :  { %v3568_v18 = vpop.f32.mrf.mxu1  ;;  %v10848_v15 = vpop.f32.mrf.mxu0 }
 0xaf4   :  { %11995 = vst [vmem:[#allocation9_spill] sm:$0xff] %v10848_v15 }
 0xaf5   :  { %v9021_v44 = vpop.f32.mrf.mxu1  ;;  %v9038_v19 = vpop.f32.mrf.mxu0 }
 0xaf7   :  { %v10850_v30 = vpop.f32.mrf.mxu1  ;;  %v3712_v54 = vpop.f32.mrf.mxu0 }
 0xaf9   :  { %v9032_v4 = vpop.f32.mrf.mxu1  ;;  %v9039_v58 = vpop.f32.mrf.mxu0 }
 0xafb   :  { %v3664_v5 = vpop.f32.mrf.mxu1 }
 0xafd   :  { %v9033_v42 = vpop.f32.mrf.mxu1 }
 0xaff   :  { %v10852_v13 = vpop.f32.mrf.mxu1 }
 0xb00   :  { %11996 = vst [vmem:[#allocation10_spill] sm:$0xff] %v10852_v13 }
 0xb01   :  { %v9044_v56 = vpop.f32.mrf.mxu1 }
 0xb03   :  { %v3760_v32 = vpop.f32.mrf.mxu1 }
 0xb05   :  { %v9045_v22 = vpop.f32.mrf.mxu1 }
 0xb28   :  { %v10854_v24 = vpop.f32.mrf.mxu0 }
 0xb29   :  { %11997 = vst [vmem:[#allocation11_spill] sm:$0xff] %v10854_v24 }
 0xb2a   :  { %v9050_v40 = vpop.f32.mrf.mxu0 }
 0xb2c   :  { %v3808_v1 = vpop.f32.mrf.mxu0 }
 0xb2e   :  { %v9051_v41 = vpop.f32.mrf.mxu0 }
 0xb30   :  { %v3944_v60 = vpop.f32.mrf.mxu0 }
 0xb31   :  { %v10857_v52 = vadd.f32 %v3944_v60, %v10047_v9 }
 0xb32   :  { %v9062_v46 = vpop.f32.mrf.mxu0 }
 0xb33   :  { %v4300_v37 = vsel %vm647_vm4, %v10857_v52, -inf }
 0xb34   :  { %v10861_v63 = vpop.f32.mrf.mxu1  ;;  %4301 = vmax.xlane.f32.xlu0 %v4300_v37  ;;  %v3947_v7 = vpop.f32.mrf.mxu0 }
 0xb35   :  { %11998 = vst [vmem:[#allocation12_spill] sm:$0xff] %v10861_v63 }
 0xb36   :  { %v9056_v53 = vpop.f32.mrf.mxu1  ;;  %v9063_v57 = vpop.f32.mrf.mxu0 }
 0xb38   :  { %v3856_v18 = vpop.f32.mrf.mxu1  ;;  %v4044_v44 = vpop.f32.mrf.mxu0 }
 0xb39   :  { %v4045_v19 = vadd.f32 %v4044_v44, %v10044_v8 }
 0xb3a   :  { %v9057_v54 = vpop.f32.mrf.mxu1  ;;  %v9074_v4 = vpop.f32.mrf.mxu0 }
 0xb3b   :  { %v4306_v58 = vsel %vm647_vm4, %v4045_v19, -inf }
 0xb3c   :  { %v3994_v5 = vpop.f32.mrf.mxu1  ;;  %4307 = vmax.xlane.f32.xlu0 %v4306_v58  ;;  %v4047_v42 = vpop.f32.mrf.mxu0 }
 0xb3d   :  { %v3995_v56 = vadd.f32 %v3994_v5, %v10063_v31 }
 0xb3e   :  { %v9068_v32 = vpop.f32.mrf.mxu1  ;;  %v9075_v22 = vpop.f32.mrf.mxu0 }
 0xb3f   :  { %v4303_v40 = vsel %vm647_vm4, %v3995_v56, -inf }
 0xb40   :  { %4304 = vmax.xlane.f32.xlu1 %v4303_v40  ;;  %v3997_v1 = vpop.f32.mrf.mxu1  ;;  %v4144_v41 = vpop.f32.mrf.mxu0 }
 0xb41   :  { %v4145_v60 = vadd.f32 %v4144_v41, %v10060_v28 }
 0xb42   :  { %v9069_v46 = vpop.f32.mrf.mxu1  ;;  %v9086_v37 = vpop.f32.mrf.mxu0 }
 0xb43   :  { %v4312_v7 = vsel %vm647_vm4, %v4145_v60, -inf }
 0xb44   :  { %v4094_v53 = vpop.f32.mrf.mxu1  ;;  %4313 = vmax.xlane.f32.xlu1 %v4312_v7  ;;  %v4147_v57 = vpop.f32.mrf.mxu0 }
 0xb45   :  { %v4095_v18 = vadd.f32 %v4094_v53, %v10072_v48 }
 0xb46   :  { %v9080_v44 = vpop.f32.mrf.mxu1  ;;  %v9087_v54 = vpop.f32.mrf.mxu0 }
 0xb47   :  { %v4309_v4 = vsel %vm647_vm4, %v4095_v18, -inf }
 0xb48   :  { %v4097_v58 = vpop.f32.mrf.mxu1  ;;  %4310 = vmax.xlane.f32.xlu0 %v4309_v4  ;;  %v4244_v5 = vpop.f32.mrf.mxu0 }
 0xb49   :  { %v10872_v42 = vadd.f32 %v4244_v5, %v10075_v49 }
 0xb4a   :  { %v9081_v32 = vpop.f32.mrf.mxu1  ;;  %v9098_v22 = vpop.f32.mrf.mxu0 }
 0xb4b   :  { %v4318_v40 = vsel %vm647_vm4, %v10872_v42, -inf }
 0xb4c   :  { %v4194_v1 = vpop.f32.mrf.mxu1  ;;  %4319 = vmax.xlane.f32.xlu1 %v4318_v40  ;;  %v4247_v41 = vpop.f32.mrf.mxu0 }
 0xb4d   :  { %v4195_v46 = vadd.f32 %v4194_v1, %v10086_v3  ;;  %v10885_v41 = vpop.permute.xlu1 %4492 }
 0xb4e   :  { %v9092_v37 = vpop.f32.mrf.mxu1  ;;  %v9099_v7 = vpop.f32.mrf.mxu0 }
 0xb4f   :  { %v4315_v53 = vsel %vm647_vm4, %v4195_v46, -inf }
 0xb50   :  { %v4197_v57 = vpop.f32.mrf.mxu1  ;;  %4316 = vmax.xlane.f32.xlu0 %v4315_v53 }
 0xb51   :  { %v10887_v7 = vpop.permute.xlu1 %4540 }
 0xb52   :  { %v9093_v44 = vpop.f32.mrf.mxu1 }
 0xb54   :  { %v4294_v54 = vpop.f32.mrf.mxu1 }
 0xb55   :  { %v4295_v4 = vadd.f32 %v4294_v54, %v10091_v16 }
 0xb56   :  { %v9104_v58 = vpop.f32.mrf.mxu1 }
 0xb57   :  { %v4321_v5 = vsel %vm647_vm4, %v4295_v4, -inf }
 0xb58   :  { %v4297_v32 = vpop.f32.mrf.mxu1  ;;  %4322 = vmax.xlane.f32.xlu0 %v4321_v5 }
 0xb5a   :  { %v9105_v22 = vpop.f32.mrf.mxu1 }
 0xb5d   :  { %4636 = vrot.lane.b32.xlu1 %v9962_v35, %s9842_s21 }
 0xb6e   :  { %4588 = vrot.lane.b32.xlu0 %v9965_v36, %s9842_s21 }
 0xbbd   :  { %v4302_v40 = vpop.xlane.xlu0 %4301 }
 0xbbe   :  { %v4324_v1 = vsub.f32 %v10857_v52, %v4302_v40 }
 0xbc0   :  { %v4332_v37 = vmul.f32 1.442695, %v4324_v1 }
 0xbc2   :  { %9658 = vpow2.f32 %v4332_v37 }
 0xbc5   :  { %v4308_v53 = vpop.xlane.xlu0 %4307 }
 0xbc6   :  { %v4326_v57 = vsub.f32 %v4045_v19, %v4308_v53 }
 0xbc8   :  { %v4336_v44 = vmul.f32 1.442695, %v4326_v57 }
 0xbc9   :  { %v4305_v54 = vpop.xlane.xlu1 %4304 }
 0xbca   :  { %9660 = vpow2.f32 %v4336_v44  ;;  %v4325_v58 = vsub.f32 %v3995_v56, %v4305_v54 }
 0xbcc   :  { %v4334_v5 = vmul.f32 1.442695, %v4325_v58 }
 0xbcd   :  { %v4314_v32 = vpop.xlane.xlu1 %4313 }
 0xbce   :  { %9662 = vpow2.f32 %v4334_v5  ;;  %v4328_v22 = vsub.f32 %v4145_v60, %v4314_v32 }
 0xbcf   :  { %v10889_v14 = vpop.eup %9658 }
 0xbd0   :  { %v4340_v0 = vmul.f32 1.442695, %v4328_v22  ;;  %v4348_v52 = vsel %vm647_vm4, %v10889_v14, 0.0 }
 0xbd1   :  { %4349 = vadd.xlane.f32.xlu1 %v4348_v52  ;;  %v4311_v40 = vpop.xlane.xlu0 %4310 }
 0xbd2   :  { %9664 = vpow2.f32 %v4340_v0  ;;  %v4327_v1 = vsub.f32 %v4095_v18, %v4311_v40 }
 0xbd4   :  { %v4338_v37 = vmul.f32 1.442695, %v4327_v1 }
 0xbd5   :  { %v4320_v22 = vpop.xlane.xlu1 %4319 }
 0xbd6   :  { %9666 = vpow2.f32 %v4338_v37  ;;  %v4330_v52 = vsub.f32 %v10872_v42, %v4320_v22 }
 0xbd7   :  { %v10893_v19 = vpop.eup %9660 }
 0xbd8   :  { %v4354_v56 = vsel %vm647_vm4, %v10893_v19, 0.0  ;;  %v4344_v40 = vmul.f32 1.442695, %v4330_v52 }
 0xbd9   :  { %4355 = vadd.xlane.f32.xlu1 %v4354_v56  ;;  %v4317_v53 = vpop.xlane.xlu0 %4316 }
 0xbda   :  { %v4329_v60 = vsub.f32 %v4195_v46, %v4317_v53 }
 0xbdb   :  { %v10897_v57 = vpop.eup %9662 }
 0xbdc   :  { %v4342_v44 = vmul.f32 1.442695, %v4329_v60  ;;  %v4351_v54 = vsel %vm647_vm4, %v10897_v57, 0.0 }
 0xbdd   :  { %4352 = vadd.xlane.f32.xlu0 %v4351_v54 }
 0xbde   :  { %9668 = vpow2.f32 %v4342_v44 }
 0xbdf   :  { %v10901_v0 = vpop.eup %9664  ;;  %9670 = vpow2.f32 %v4344_v40 }
 0xbe0   :  { %v4360_v18 = vsel %vm647_vm4, %v10901_v0, 0.0 }
 0xbe1   :  { %4361 = vadd.xlane.f32.xlu1 %v4360_v18  ;;  %v4323_v1 = vpop.xlane.xlu0 %4322 }
 0xbe2   :  { %v4331_v37 = vsub.f32 %v4295_v4, %v4323_v1  ;;  %v4637_v4 = vpop.permute.xlu1 %4636 }
 0xbe3   :  { %v10905_v58 = vpop.eup %9666 }
 0xbe4   :  { %v4357_v5 = vsel %vm647_vm4, %v10905_v58, 0.0  ;;  %v4346_v56 = vmul.f32 1.442695, %v4331_v37  ;;  %v4498_v37 = vsel %vm749_vm3, %v10885_v41, 0 }
 0xbe5   :  { %4358 = vadd.xlane.f32.xlu0 %v4357_v5  ;;  %v4589_v18 = vpop.permute.xlu0 %4588 }
 0xbe6   :  { %9672 = vpow2.f32 %v4346_v56 }
 0xbeb   :  { %v10909_v46 = vpop.eup %9668 }
 0xbec   :  { %v4363_v32 = vsel %vm647_vm4, %v10909_v46, 0.0  ;;  %v10918_v53 = vpop.eup %9670 }
 0xbed   :  { %4364 = vadd.xlane.f32.xlu0 %v4363_v32  ;;  %v4366_v60 = vsel %vm647_vm4, %v10918_v53, 0.0 }
 0xbf2   :  { %4732 = vrot.lane.b32.xlu1 %v9968_v38, %s9842_s21 }
 0xbf3   :  { %v10922_v44 = vpop.eup %9672 }
 0xbf4   :  { %v4369_v42 = vsel %vm647_vm4, %v10922_v44, 0.0 }
 0xc03   :  { %4684 = vrot.lane.b32.xlu0 %v9972_v39, %s9842_s21 }
 0xc16   :  { %4367 = vadd.xlane.f32.xlu1 %v4366_v60  ;;  %v11999_v60 = vmov 0.0  }
 0xc22   :  { %4370 = vadd.xlane.f32.xlu0 %v4369_v42 }
 0xc27   :  { %4873 = vrot.lane.b32.xlu1 %v9960_v33, %s9843_s22 }
 0xc2b   :  { %4871 = vrot.lane.b32.xlu1 %v9960_v33, %s9844_s23 }
 0xc2f   :  { %4973 = vrot.lane.b32.xlu1 %v9957_v29, %s9843_s22 }
 0xc33   :  { %4971 = vrot.lane.b32.xlu1 %v9957_v29, %s9844_s23 }
 0xc37   :  { %5073 = vrot.lane.b32.xlu1 %v9962_v35, %s9843_s22 }
 0xc38   :  { %4823 = vrot.lane.b32.xlu0 %v9954_v25, %s9843_s22 }
 0xc3b   :  { %5071 = vrot.lane.b32.xlu1 %v9962_v35, %s9844_s23 }
 0xc3c   :  { %4821 = vrot.lane.b32.xlu0 %v9954_v25, %s9844_s23 }
 0xc3f   :  { %5173 = vrot.lane.b32.xlu1 %v9968_v38, %s9843_s22 }
 0xc40   :  { %4923 = vrot.lane.b32.xlu0 %v9952_v21, %s9843_s22 }
 0xc43   :  { %5171 = vrot.lane.b32.xlu1 %v9968_v38, %s9844_s23 }
 0xc44   :  { %4921 = vrot.lane.b32.xlu0 %v9952_v21, %s9844_s23 }
 0xc47   :  { %5317 = vrot.lane.b32.xlu1 %v9954_v25, %s9845_s24 }
 0xc48   :  { %5023 = vrot.lane.b32.xlu0 %v9965_v36, %s9843_s22 }
 0xc4b   :  { %5413 = vrot.lane.b32.xlu1 %v9952_v21, %s9845_s24 }
 0xc4c   :  { %5021 = vrot.lane.b32.xlu0 %v9965_v36, %s9844_s23 }
 0xc4f   :  { %5461 = vrot.lane.b32.xlu1 %v9957_v29, %s9845_s24 }
 0xc50   :  { %5123 = vrot.lane.b32.xlu0 %v9972_v39, %s9843_s22 }
 0xc54   :  { %5121 = vrot.lane.b32.xlu0 %v9972_v39, %s9844_s23 }
 0xc58   :  { %5365 = vrot.lane.b32.xlu0 %v9960_v33, %s9845_s24 }
 0xc5a   :  { %v4350_v54 = vpop.xlane.xlu1 %4349 }
 0xc5b   :  { %9674 = vrcp.f32 %v4350_v54 }
 0xc62   :  { %v4356_v5 = vpop.xlane.xlu1 %4355 }
 0xc63   :  { %9676 = vrcp.f32 %v4356_v5 }
 0xc66   :  { %v4353_v32 = vpop.xlane.xlu0 %4352 }
 0xc67   :  { %9678 = vrcp.f32 %v4353_v32  ;;  %v4594_v32 = vsel %vm749_vm3, %v4589_v18, 0 }
 0xc68   :  { %v9675_v22 = vpop.eup %9674 }
 0xc69   :  { %v4380_v52 = vmul.f32 %v9675_v22, %v10889_v14 }
 0xc6a   :  { %v4362_v40 = vpop.xlane.xlu1 %4361 }
 0xc6b   :  { %v4388_v1 = vpack.c.bf16 %v4380_v52, %v4380_v52  ;;  %9680 = vrcp.f32 %v4362_v40 }
 0xc6d   :  { %9109 = vmatmul.mubr.msk.bf16.vlgmr.msra.gmra.mxu0 %vm647_vm4, %v4388_v1 }
 0xc6e   :  { %9119 = vmatpush3.bf16.msra.mxu0 %v4498_v37  ;;  %v4359_v56 = vpop.xlane.xlu0 %4358  ;;  %9120 = vmatprep.mubr.msk.bf16.mxu0 %vm9827_vm1, %v11999_v60 }
 0xc6f   :  { %9682 = vrcp.f32 %v4359_v56  ;;  %9130 = vmatprep.subr.bf16.mxu0 %v11999_v60 }
 0xc70   :  { %v9677_v42 = vpop.eup %9676 }
 0xc71   :  { %v4382_v54 = vmul.f32 %v9677_v42, %v10893_v19  ;;  %v4546_v19 = vsel %vm749_vm3, %v10887_v7, 0 }
 0xc73   :  { %v4390_v14 = vpack.c.bf16 %v4382_v54, %v4382_v54 }
 0xc74   :  { %v9679_v5 = vpop.eup %9678 }
 0xc75   :  { %v4381_v22 = vmul.f32 %v9679_v5, %v10897_v57  ;;  %9121 = vmatmul.mubr.msk.bf16.vlgmr.msra.gmra.mxu0 %vm647_vm4, %v4390_v14  ;;  %v4733_v14 = vpop.permute.xlu1 %4732 }
 0xc76   :  { %9131 = vmatpush3.bf16.msra.mxu0 %v4594_v32  ;;  %v4365_v41 = vpop.xlane.xlu0 %4364  ;;  %9132 = vmatprep.mubr.msk.bf16.mxu0 %vm9827_vm1, %v11999_v60  ;;  %v4738_v32 = vsel %vm749_vm3, %v4733_v14, 0 }
 0xc77   :  { %v4389_v52 = vpack.c.bf16 %v4381_v22, %v4381_v22  ;;  %9684 = vrcp.f32 %v4365_v41  ;;  %9142 = vmatprep.subr.bf16.mxu0 %v11999_v60 }
 0xc78   :  { %v9681_v40 = vpop.eup %9680 }
 0xc79   :  { %v4384_v1 = vmul.f32 %v9681_v40, %v10901_v0  ;;  %9115 = vmatmul.mubr.msk.bf16.vlgmr.msra.gmra.mxu1 %vm647_vm4, %v4389_v52  ;;  %v4642_v0 = vsel %vm749_vm3, %v4637_v4, 0 }
 0xc7a   :  { %9125 = vmatpush3.bf16.msra.mxu1 %v4546_v19  ;;  %v4685_v57 = vpop.permute.xlu0 %4684  ;;  %9126 = vmatprep.mubr.msk.bf16.mxu1 %vm9827_vm1, %v11999_v60 }
 0xc7b   :  { %v4392_v18 = vpack.c.bf16 %v4384_v1, %v4384_v1  ;;  %v4690_v37 = vsel %vm749_vm3, %v4685_v57, 0  ;;  %9136 = vmatprep.subr.bf16.mxu1 %v11999_v60 }
 0xc7c   :  { %v9683_v56 = vpop.eup %9682 }
 0xc7d   :  { %v4383_v42 = vmul.f32 %v9683_v56, %v10905_v58  ;;  %9133 = vmatmul.mubr.msk.bf16.vlgmr.msra.gmra.mxu0 %vm647_vm4, %v4392_v18 }
 0xc7e   :  { %9143 = vmatpush3.bf16.msra.mxu0 %v4690_v37  ;;  %9144 = vmatprep.mubr.msk.bf16.mxu0 %vm9827_vm1, %v11999_v60 }
 0xc7f   :  { %v4391_v7 = vpack.c.bf16 %v4383_v42, %v4383_v42  ;;  %9154 = vmatprep.subr.bf16.mxu0 %v11999_v60 }
 0xc81   :  { %9127 = vmatmul.mubr.msk.bf16.vlgmr.msra.gmra.mxu1 %vm647_vm4, %v4391_v7 }
 0xc82   :  { %9137 = vmatpush3.bf16.msra.mxu1 %v4642_v0  ;;  %9138 = vmatprep.mubr.msk.bf16.mxu1 %vm9827_vm1, %v11999_v60 }
 0xc83   :  { %9148 = vmatprep.subr.bf16.mxu1 %v11999_v60 }
 0xc84   :  { %v9685_v58 = vpop.eup %9684 }
 0xc85   :  { %v4385_v54 = vmul.f32 %v9685_v58, %v10909_v46 }
 0xc87   :  { %v4393_v5 = vpack.c.bf16 %v4385_v54, %v4385_v54 }
 0xc89   :  { %9139 = vmatmul.mubr.msk.bf16.vlgmr.msra.gmra.mxu1 %vm647_vm4, %v4393_v5 }
 0xc8a   :  { %9149 = vmatpush3.bf16.msra.mxu1 %v4738_v32  ;;  %9150 = vmatprep.mubr.msk.bf16.mxu1 %vm9827_vm1, %v11999_v60 }
 0xc8b   :  { %9160 = vmatprep.subr.bf16.mxu1 %v11999_v60 }
 0xc9f   :  { %v4368_v4 = vpop.xlane.xlu1 %4367 }
 0xca0   :  { %9686 = vrcp.f32 %v4368_v4 }
 0xca3   :  { %v4874_v22 = vpop.permute.xlu1 %4873 }
 0xca4   :  { %v4879_v32 = vsel %vm264_vm2, %v4874_v22, 0 }
 0xca7   :  { %v4872_v41 = vpop.permute.xlu1 %4871 }
 0xcab   :  { %v4974_v52 = vpop.permute.xlu1 %4973  ;;  %v4371_v40 = vpop.xlane.xlu0 %4370 }
 0xcac   :  { %9688 = vrcp.f32 %v4371_v40  ;;  %v4979_v22 = vsel %vm264_vm2, %v4974_v52, 0 }
 0xcad   :  { %v9687_v46 = vpop.eup %9686 }
 0xcae   :  { %v4386_v19 = vmul.f32 %v9687_v46, %v10918_v53 }
 0xcaf   :  { %v4824_v1 = vpop.permute.xlu0 %4823  ;;  %v4972_v37 = vpop.permute.xlu1 %4971 }
 0xcb0   :  { %v4394_v57 = vpack.c.bf16 %v4386_v19, %v4386_v19  ;;  %v4829_v18 = vsel %vm264_vm2, %v4824_v1, 0 }
 0xcb2   :  { %9145 = vmatmul.mubr.msk.bf16.vlgmr.msra.gmra.mxu0 %vm647_vm4, %v4394_v57 }
 0xcb3   :  { %9155 = vmatpush3.bf16.xpose.msra.mxu0 %v4829_v18  ;;  %v4822_v56 = vpop.permute.xlu0 %4821  ;;  %9156 = vmatprep.mubr.msk.bf16.mxu0 %vm9827_vm1, %v11999_v60  ;;  %v5074_v42 = vpop.permute.xlu1 %5073 }
 0xcb4   :  { %9166 = vmatprep.subr.bf16.mxu0 %v11999_v60 }
 0xcb7   :  { %v4924_v7 = vpop.permute.xlu0 %4923  ;;  %v5072_v5 = vpop.permute.xlu1 %5071 }
 0xcb8   :  { %v4929_v0 = vsel %vm264_vm2, %v4924_v7, 0 }
 0xcb9   :  { %v9689_v58 = vpop.eup %9688 }
 0xcba   :  { %v4387_v53 = vmul.f32 %v9689_v58, %v10922_v44  ;;  %9157 = vmatmul.mubr.msk.bf16.vlgmr.msra.gmra.mxu0 %vm264_vm2, %v4822_v56 }
 0xcbb   :  { %9167 = vmatpush3.bf16.xpose.msra.mxu0 %v4929_v0  ;;  %v4922_v54 = vpop.permute.xlu0 %4921  ;;  %9168 = vmatprep.mubr.msk.bf16.mxu0 %vm9827_vm1, %v11999_v60  ;;  %v5174_v40 = vpop.permute.xlu1 %5173 }
 0xcbc   :  { %v4395_v14 = vpack.c.bf16 %v4387_v53, %v4387_v53  ;;  %9178 = vmatprep.subr.bf16.mxu0 %v11999_v60 }
 0xcbe   :  { %9151 = vmatmul.mubr.msk.bf16.vlgmr.msra.gmra.mxu1 %vm647_vm4, %v4395_v14 }
 0xcbf   :  { %9161 = vmatpush3.bf16.xpose.msra.mxu1 %v4879_v32  ;;  %v5024_v4 = vpop.permute.xlu0 %5023  ;;  %9162 = vmatprep.mubr.msk.bf16.mxu1 %vm9827_vm1, %v11999_v60  ;;  %v5172_v57 = vpop.permute.xlu1 %5171 }
 0xcc0   :  { %v5029_v44 = vsel %vm264_vm2, %v5024_v4, 0  ;;  %9172 = vmatprep.subr.bf16.mxu1 %v11999_v60 }
 0xcc2   :  { %9169 = vmatmul.mubr.msk.bf16.vlgmr.msra.gmra.mxu0 %vm264_vm2, %v4922_v54 }
 0xcc3   :  { %9179 = vmatpush3.bf16.xpose.msra.mxu0 %v5029_v44  ;;  %v5022_v46 = vpop.permute.xlu0 %5021  ;;  %9180 = vmatprep.mubr.msk.bf16.mxu0 %vm9827_vm1, %v11999_v60  ;;  %v5318_v52 = vpop.permute.xlu1 %5317 }
 0xcc4   :  { %9190 = vmatprep.subr.bf16.mxu0 %v11999_v60  ;;  %v5323_v56 = vsel %vm749_vm3, %v5318_v52, 0 }
 0xcc6   :  { %9163 = vmatmul.mubr.msk.bf16.vlgmr.msra.gmra.mxu1 %vm264_vm2, %v4872_v41  ;;  %v5079_v41 = vsel %vm264_vm2, %v5074_v42, 0 }
 0xcc7   :  { %9173 = vmatpush3.bf16.xpose.msra.mxu1 %v4979_v22  ;;  %v5124_v19 = vpop.permute.xlu0 %5123  ;;  %9174 = vmatprep.mubr.msk.bf16.mxu1 %vm9827_vm1, %v11999_v60 }
 0xcc8   :  { %v5129_v1 = vsel %vm264_vm2, %v5124_v19, 0  ;;  %9184 = vmatprep.subr.bf16.mxu1 %v11999_v60 }
 0xcca   :  { %9181 = vmatmul.mubr.msk.bf16.vlgmr.msra.gmra.mxu0 %vm264_vm2, %v5022_v46 }
 0xccb   :  { %9191 = vmatpush3.bf16.xpose.msra.mxu0 %v5129_v1  ;;  %9192 = vmatprep.mubr.msk.bf16.mxu0 %vm9827_vm1, %v11999_v60  ;;  %v5122_v18 = vpop.permute.xlu0 %5121 }
 0xccc   :  { %9202 = vmatprep.subr.bf16.mxu0 %v11999_v60 }
 0xcce   :  { %9175 = vmatmul.mubr.msk.bf16.vlgmr.msra.gmra.mxu1 %vm264_vm2, %v4972_v37  ;;  %v5179_v37 = vsel %vm264_vm2, %v5174_v40, 0 }
 0xccf   :  { %9185 = vmatpush3.bf16.xpose.msra.mxu1 %v5079_v41  ;;  %9186 = vmatprep.mubr.msk.bf16.mxu1 %vm9827_vm1, %v11999_v60  ;;  %v5366_v42 = vpop.permute.xlu0 %5365 }
 0xcd0   :  { %9196 = vmatprep.subr.bf16.mxu1 %v11999_v60  ;;  %v5371_v7 = vsel %vm749_vm3, %v5366_v42, 0 }
 0xcd2   :  { %9193 = vmatmul.mubr.msk.bf16.vlgmr.msra.gmra.mxu0 %vm264_vm2, %v5122_v18 }
 0xcd3   :  { %9203 = vmatpush3.bf16.msra.mxu0 %v5323_v56  ;;  %9204 = vmatprep.mubr.msk.bf16.mxu0 %vm9827_vm1, %v11999_v60 }
 0xcd4   :  { %9214 = vmatprep.subr.bf16.mxu0 %v11999_v60 }
 0xcd6   :  { %9187 = vmatmul.mubr.msk.bf16.vlgmr.msra.gmra.mxu1 %vm264_vm2, %v5072_v5 }
 0xcd7   :  { %9197 = vmatpush3.bf16.xpose.msra.mxu1 %v5179_v37  ;;  %9198 = vmatprep.mubr.msk.bf16.mxu1 %vm9827_vm1, %v11999_v60 }
 0xcd8   :  { %9208 = vmatprep.subr.bf16.mxu1 %v11999_v60 }
 0xcde   :  { %9199 = vmatmul.mubr.msk.bf16.vlgmr.msra.gmra.mxu1 %vm264_vm2, %v5172_v57 }
 0xcdf   :  { %9209 = vmatpush3.bf16.msra.mxu1 %v5371_v7  ;;  %9210 = vmatprep.mubr.msk.bf16.mxu1 %vm9827_vm1, %v11999_v60 }
 0xce0   :  { %9220 = vmatprep.subr.bf16.mxu1 %v11999_v60 }
 0xd2d   :  { %v11040_v0 = vpop.f32.mrf.mxu0 }
 0xd2f   :  { %v9110_v58 = vpop.f32.mrf.mxu0 }
 0xd31   :  { %v4441_v53 = vpop.f32.mrf.mxu0 }
 0xd33   :  { %v9111_v54 = vpop.f32.mrf.mxu0 }
 0xd35   :  { %v11042_v14 = vpop.f32.mrf.mxu0 }
 0xd37   :  { %v9122_v5 = vpop.f32.mrf.mxu0 }
 0xd39   :  { %v11044_v32 = vpop.f32.mrf.mxu1  ;;  %v4537_v4 = vpop.f32.mrf.mxu0 }
 0xd3b   :  { %v9116_v44 = vpop.f32.mrf.mxu1  ;;  %v9123_v40 = vpop.f32.mrf.mxu0 }
 0xd3d   :  { %v4489_v46 = vpop.f32.mrf.mxu1  ;;  %v11046_v22 = vpop.f32.mrf.mxu0 }
 0xd3e   :  { %12000 = vst [vmem:[#allocation13_spill] sm:$0xff] %v11046_v22 }
 0xd3f   :  { %v9117_v19 = vpop.f32.mrf.mxu1  ;;  %v9134_v1 = vpop.f32.mrf.mxu0 }
 0xd41   :  { %v11048_v57 = vpop.f32.mrf.mxu1  ;;  %v4633_v41 = vpop.f32.mrf.mxu0 }
 0xd43   :  { %v9128_v52 = vpop.f32.mrf.mxu1  ;;  %v9135_v18 = vpop.f32.mrf.mxu0 }
 0xd45   :  { %v4585_v56 = vpop.f32.mrf.mxu1 }
 0xd47   :  { %v9129_v37 = vpop.f32.mrf.mxu1 }
 0xd49   :  { %v11050_v42 = vpop.f32.mrf.mxu1 }
 0xd4a   :  { %12001 = vst [vmem:[#allocation14_spill] sm:$0xff] %v11050_v42 }
 0xd4b   :  { %v9140_v7 = vpop.f32.mrf.mxu1 }
 0xd4d   :  { %v4681_v58 = vpop.f32.mrf.mxu1 }
 0xd4f   :  { %v9141_v53 = vpop.f32.mrf.mxu1 }
 0xd72   :  { %v11052_v54 = vpop.f32.mrf.mxu0 }
 0xd73   :  { %12002 = vst [vmem:[#allocation15_spill] sm:$0xff] %v11052_v54 }
 0xd74   :  { %v9146_v5 = vpop.f32.mrf.mxu0 }
 0xd76   :  { %v4729_v4 = vpop.f32.mrf.mxu0 }
 0xd78   :  { %v9147_v44 = vpop.f32.mrf.mxu0 }
 0xd7a   :  { %v4865_v40 = vpop.f32.mrf.mxu0 }
 0xd7b   :  { %v11055_v46 = vadd.f32 %v4865_v40, %v10047_v9 }
 0xd7c   :  { %v9158_v19 = vpop.f32.mrf.mxu0 }
 0xd7d   :  { %v5221_v1 = vsel %vm647_vm4, %v11055_v46, -inf }
 0xd7e   :  { %v11059_v41 = vpop.f32.mrf.mxu1  ;;  %5222 = vmax.xlane.f32.xlu0 %v5221_v1  ;;  %v4868_v52 = vpop.f32.mrf.mxu0 }
 0xd7f   :  { %12003 = vst [vmem:[#allocation16_spill] sm:$0xff] %v11059_v41 }
 0xd80   :  { %v9152_v18 = vpop.f32.mrf.mxu1  ;;  %v9159_v56 = vpop.f32.mrf.mxu0 }
 0xd82   :  { %v4777_v37 = vpop.f32.mrf.mxu1  ;;  %v4965_v7 = vpop.f32.mrf.mxu0 }
 0xd83   :  { %v4966_v58 = vadd.f32 %v4965_v7, %v10044_v8 }
 0xd84   :  { %v9153_v53 = vpop.f32.mrf.mxu1  ;;  %v9170_v5 = vpop.f32.mrf.mxu0 }
 0xd85   :  { %v5227_v4 = vsel %vm647_vm4, %v4966_v58, -inf }
 0xd86   :  { %v4915_v44 = vpop.f32.mrf.mxu1  ;;  %5228 = vmax.xlane.f32.xlu0 %v5227_v4  ;;  %v4968_v40 = vpop.f32.mrf.mxu0 }
 0xd87   :  { %v4916_v19 = vadd.f32 %v4915_v44, %v10063_v31 }
 0xd88   :  { %v9164_v6 = vpop.f32.mrf.mxu1  ;;  %v9171_v54 = vpop.f32.mrf.mxu0 }
 0xd89   :  { %v5224_v1 = vsel %vm647_vm4, %v4916_v19, -inf }
 0xd8a   :  { %5225 = vmax.xlane.f32.xlu1 %v5224_v1  ;;  %v4918_v52 = vpop.f32.mrf.mxu1  ;;  %v5065_v18 = vpop.f32.mrf.mxu0 }
 0xd8b   :  { %v5066_v56 = vadd.f32 %v5065_v18, %v10060_v28 }
 0xd8c   :  { %v9165_v37 = vpop.f32.mrf.mxu1  ;;  %v9182_v7 = vpop.f32.mrf.mxu0 }
 0xd8d   :  { %v5233_v53 = vsel %vm647_vm4, %v5066_v56, -inf }
 0xd8e   :  { %v5015_v5 = vpop.f32.mrf.mxu1  ;;  %5234 = vmax.xlane.f32.xlu1 %v5233_v53  ;;  %v5068_v22 = vpop.f32.mrf.mxu0 }
 0xd8f   :  { %v5016_v4 = vadd.f32 %v5015_v5, %v10072_v48 }
 0xd90   :  { %v9176_v40 = vpop.f32.mrf.mxu1  ;;  %v9183_v44 = vpop.f32.mrf.mxu0 }
 0xd91   :  { %v5230_v6 = vsel %vm647_vm4, %v5016_v4, -inf }
 0xd92   :  { %v5018_v54 = vpop.f32.mrf.mxu1  ;;  %5231 = vmax.xlane.f32.xlu0 %v5230_v6  ;;  %v5165_v1 = vpop.f32.mrf.mxu0 }
 0xd93   :  { %v11070_v52 = vadd.f32 %v5165_v1, %v10075_v49 }
 0xd94   :  { %v9177_v18 = vpop.f32.mrf.mxu1  ;;  %v9194_v37 = vpop.f32.mrf.mxu0 }
 0xd95   :  { %v5239_v7 = vsel %vm647_vm4, %v11070_v52, -inf }
 0xd96   :  { %v5115_v24 = vpop.f32.mrf.mxu1  ;;  %5240 = vmax.xlane.f32.xlu1 %v5239_v7  ;;  %v5168_v22 = vpop.f32.mrf.mxu0 }
 0xd97   :  { %v5116_v53 = vadd.f32 %v5115_v24, %v10086_v3  ;;  %v11083_v22 = vpop.permute.xlu1 %5413 }
 0xd98   :  { %v9188_v5 = vpop.f32.mrf.mxu1  ;;  %v9195_v40 = vpop.f32.mrf.mxu0 }
 0xd99   :  { %v5236_v44 = vsel %vm647_vm4, %v5116_v53, -inf }
 0xd9a   :  { %v5118_v54 = vpop.f32.mrf.mxu1  ;;  %5237 = vmax.xlane.f32.xlu0 %v5236_v44 }
 0xd9c   :  { %v9189_v6 = vpop.f32.mrf.mxu1 }
 0xd9e   :  { %v5215_v15 = vpop.f32.mrf.mxu1 }
 0xd9f   :  { %v5216_v1 = vadd.f32 %v5215_v15, %v10091_v16  ;;  %v11085_v15 = vpop.permute.xlu1 %5461 }
 0xda0   :  { %v9200_v18 = vpop.f32.mrf.mxu1 }
 0xda1   :  { %v5242_v37 = vsel %vm647_vm4, %v5216_v1, -inf }
 0xda2   :  { %v5218_v10 = vpop.f32.mrf.mxu1  ;;  %5243 = vmax.xlane.f32.xlu0 %v5242_v37 }
 0xda4   :  { %v9201_v41 = vpop.f32.mrf.mxu1 }
 0xda7   :  { %5557 = vrot.lane.b32.xlu1 %v9962_v35, %s9845_s24 }
 0xdb8   :  { %5509 = vrot.lane.b32.xlu0 %v9965_v36, %s9845_s24 }
 0xe07   :  { %v5223_v24 = vpop.xlane.xlu0 %5222 }
 0xe08   :  { %v5245_v7 = vsub.f32 %v11055_v46, %v5223_v24 }
 0xe0a   :  { %v5253_v5 = vmul.f32 1.442695, %v5245_v7 }
 0xe0c   :  { %9690 = vpow2.f32 %v5253_v5 }
 0xe0f   :  { %v5229_v40 = vpop.xlane.xlu0 %5228 }
 0xe10   :  { %v5247_v44 = vsub.f32 %v4966_v58, %v5229_v40 }
 0xe12   :  { %v5257_v10 = vmul.f32 1.442695, %v5247_v44 }
 0xe13   :  { %v5226_v54 = vpop.xlane.xlu1 %5225 }
 0xe14   :  { %9692 = vpow2.f32 %v5257_v10  ;;  %v5246_v41 = vsub.f32 %v4916_v19, %v5226_v54 }
 0xe16   :  { %v5255_v6 = vmul.f32 1.442695, %v5246_v41 }
 0xe17   :  { %v5235_v18 = vpop.xlane.xlu1 %5234 }
 0xe18   :  { %9694 = vpow2.f32 %v5255_v6  ;;  %v5249_v37 = vsub.f32 %v5066_v56, %v5235_v18 }
 0xe19   :  { %v11087_v59 = vpop.eup %9690 }
 0xe1a   :  { %v5261_v42 = vmul.f32 1.442695, %v5249_v37  ;;  %v5269_v46 = vsel %vm647_vm4, %v11087_v59, 0.0 }
 0xe1b   :  { %5270 = vadd.xlane.f32.xlu1 %v5269_v46  ;;  %v5232_v24 = vpop.xlane.xlu0 %5231 }
 0xe1c   :  { %9696 = vpow2.f32 %v5261_v42  ;;  %v5248_v7 = vsub.f32 %v5016_v4, %v5232_v24 }
 0xe1e   :  { %v5259_v5 = vmul.f32 1.442695, %v5248_v7 }
 0xe1f   :  { %v5241_v37 = vpop.xlane.xlu1 %5240 }
 0xe20   :  { %9698 = vpow2.f32 %v5259_v5  ;;  %v5251_v46 = vsub.f32 %v11070_v52, %v5241_v37 }
 0xe21   :  { %v11091_v58 = vpop.eup %9692 }
 0xe22   :  { %v5275_v19 = vsel %vm647_vm4, %v11091_v58, 0.0  ;;  %v5265_v24 = vmul.f32 1.442695, %v5251_v46 }
 0xe23   :  { %5276 = vadd.xlane.f32.xlu1 %v5275_v19  ;;  %v5238_v40 = vpop.xlane.xlu0 %5237 }
 0xe24   :  { %v5250_v56 = vsub.f32 %v5116_v53, %v5238_v40 }
 0xe25   :  { %v11095_v44 = vpop.eup %9694 }
 0xe26   :  { %v5263_v10 = vmul.f32 1.442695, %v5250_v56  ;;  %v5272_v54 = vsel %vm647_vm4, %v11095_v44, 0.0 }
 0xe27   :  { %5273 = vadd.xlane.f32.xlu0 %v5272_v54 }
 0xe28   :  { %9700 = vpow2.f32 %v5263_v10 }
 0xe29   :  { %v11099_v42 = vpop.eup %9696  ;;  %9702 = vpow2.f32 %v5265_v24 }
 0xe2a   :  { %v5281_v4 = vsel %vm647_vm4, %v11099_v42, 0.0 }
 0xe2b   :  { %5282 = vadd.xlane.f32.xlu1 %v5281_v4  ;;  %v5244_v7 = vpop.xlane.xlu0 %5243 }
 0xe2c   :  { %v5252_v5 = vsub.f32 %v5216_v1, %v5244_v7  ;;  %v5558_v1 = vpop.permute.xlu1 %5557 }
 0xe2d   :  { %v11103_v41 = vpop.eup %9698 }
 0xe2e   :  { %v5278_v6 = vsel %vm647_vm4, %v11103_v41, 0.0  ;;  %v5267_v19 = vmul.f32 1.442695, %v5252_v5  ;;  %v5419_v5 = vsel %vm749_vm3, %v11083_v22, 0 }
 0xe2f   :  { %5279 = vadd.xlane.f32.xlu0 %v5278_v6  ;;  %v5510_v4 = vpop.permute.xlu0 %5509 }
 0xe30   :  { %9704 = vpow2.f32 %v5267_v19 }
 0xe35   :  { %v11107_v53 = vpop.eup %9700 }
 0xe36   :  { %v5284_v18 = vsel %vm647_vm4, %v11107_v53, 0.0  ;;  %v11116_v40 = vpop.eup %9702 }
 0xe37   :  { %5285 = vadd.xlane.f32.xlu0 %v5284_v18  ;;  %v5287_v56 = vsel %vm647_vm4, %v11116_v40, 0.0 }
 0xe3c   :  { %5653 = vrot.lane.b32.xlu1 %v9968_v38, %s9845_s24 }
 0xe3d   :  { %v11120_v10 = vpop.eup %9704 }
 0xe3e   :  { %v5290_v52 = vsel %vm647_vm4, %v11120_v10, 0.0 }
 0xe4d   :  { %5605 = vrot.lane.b32.xlu0 %v9972_v39, %s9845_s24 }
 0xe60   :  { %5288 = vadd.xlane.f32.xlu1 %v5287_v56 }
 0xe6c   :  { %5291 = vadd.xlane.f32.xlu0 %v5290_v52 }
 0xe71   :  { %5794 = vrot.lane.b32.xlu1 %v9960_v33, %s9846_s25 }
 0xe75   :  { %5792 = vrot.lane.b32.xlu1 %v9960_v33, %s9847_s26 }
 0xe79   :  { %5894 = vrot.lane.b32.xlu1 %v9957_v29, %s9846_s25 }
 0xe7d   :  { %5892 = vrot.lane.b32.xlu1 %v9957_v29, %s9847_s26 }
 0xe81   :  { %5994 = vrot.lane.b32.xlu1 %v9962_v35, %s9846_s25 }
 0xe82   :  { %5744 = vrot.lane.b32.xlu0 %v9954_v25, %s9846_s25 }
 0xe85   :  { %5992 = vrot.lane.b32.xlu1 %v9962_v35, %s9847_s26 }
 0xe86   :  { %5742 = vrot.lane.b32.xlu0 %v9954_v25, %s9847_s26 }
 0xe89   :  { %6094 = vrot.lane.b32.xlu1 %v9968_v38, %s9846_s25 }
 0xe8a   :  { %5844 = vrot.lane.b32.xlu0 %v9952_v21, %s9846_s25 }
 0xe8d   :  { %6092 = vrot.lane.b32.xlu1 %v9968_v38, %s9847_s26 }
 0xe8e   :  { %5842 = vrot.lane.b32.xlu0 %v9952_v21, %s9847_s26 }
 0xe91   :  { %6238 = vrot.lane.b32.xlu1 %v9954_v25, %s9848_s27 }
 0xe92   :  { %5944 = vrot.lane.b32.xlu0 %v9965_v36, %s9846_s25 }
 0xe95   :  { %6334 = vrot.lane.b32.xlu1 %v9952_v21, %s9848_s27 }
 0xe96   :  { %5942 = vrot.lane.b32.xlu0 %v9965_v36, %s9847_s26 }
 0xe99   :  { %6382 = vrot.lane.b32.xlu1 %v9957_v29, %s9848_s27 }
 0xe9a   :  { %6044 = vrot.lane.b32.xlu0 %v9972_v39, %s9846_s25 }
 0xe9e   :  { %6042 = vrot.lane.b32.xlu0 %v9972_v39, %s9847_s26 }
 0xea2   :  { %6286 = vrot.lane.b32.xlu0 %v9960_v33, %s9848_s27 }
 0xea4   :  { %v5271_v54 = vpop.xlane.xlu1 %5270 }
 0xea5   :  { %9706 = vrcp.f32 %v5271_v54 }
 0xeac   :  { %v5277_v6 = vpop.xlane.xlu1 %5276 }
 0xead   :  { %9708 = vrcp.f32 %v5277_v6  ;;  %v5515_v6 = vsel %vm749_vm3, %v5510_v4, 0 }
 0xeb0   :  { %v5274_v18 = vpop.xlane.xlu0 %5273 }
 0xeb1   :  { %9710 = vrcp.f32 %v5274_v18 }
 0xeb2   :  { %v9707_v37 = vpop.eup %9706 }
 0xeb3   :  { %v5301_v46 = vmul.f32 %v9707_v37, %v11087_v59 }
 0xeb4   :  { %v5283_v24 = vpop.xlane.xlu1 %5282 }
 0xeb5   :  { %v5309_v7 = vpack.c.bf16 %v5301_v46, %v5301_v46  ;;  %9712 = vrcp.f32 %v5283_v24 }
 0xeb7   :  { %9205 = vmatmul.mubr.msk.bf16.vlgmr.msra.gmra.mxu0 %vm647_vm4, %v5309_v7 }
 0xeb8   :  { %9215 = vmatpush3.bf16.msra.mxu0 %v5419_v5  ;;  %v5280_v19 = vpop.xlane.xlu0 %5279  ;;  %9216 = vmatprep.mubr.msk.bf16.mxu0 %vm9827_vm1, %v11999_v60 }
 0xeb9   :  { %9714 = vrcp.f32 %v5280_v19  ;;  %9226 = vmatprep.subr.bf16.mxu0 %v11999_v60 }
 0xeba   :  { %v9709_v56 = vpop.eup %9708 }
 0xebb   :  { %v5303_v52 = vmul.f32 %v9709_v56, %v11091_v58  ;;  %v5467_v58 = vsel %vm749_vm3, %v11085_v15, 0 }
 0xebd   :  { %v5311_v59 = vpack.c.bf16 %v5303_v52, %v5303_v52  ;;  %v5654_v52 = vpop.permute.xlu1 %5653 }
 0xebe   :  { %v9711_v54 = vpop.eup %9710 }
 0xebf   :  { %v5302_v18 = vmul.f32 %v9711_v54, %v11095_v44  ;;  %9217 = vmatmul.mubr.msk.bf16.vlgmr.msra.gmra.mxu0 %vm647_vm4, %v5311_v59  ;;  %v5659_v54 = vsel %vm749_vm3, %v5654_v52, 0 }
 0xec0   :  { %9227 = vmatpush3.bf16.msra.mxu0 %v5515_v6  ;;  %v5286_v22 = vpop.xlane.xlu0 %5285  ;;  %9228 = vmatprep.mubr.msk.bf16.mxu0 %vm9827_vm1, %v11999_v60 }
 0xec1   :  { %v5310_v37 = vpack.c.bf16 %v5302_v18, %v5302_v18  ;;  %9716 = vrcp.f32 %v5286_v22  ;;  %9238 = vmatprep.subr.bf16.mxu0 %v11999_v60 }
 0xec2   :  { %v9713_v46 = vpop.eup %9712 }
 0xec3   :  { %v5305_v24 = vmul.f32 %v9713_v46, %v11099_v42  ;;  %9211 = vmatmul.mubr.msk.bf16.vlgmr.msra.gmra.mxu1 %vm647_vm4, %v5310_v37  ;;  %v5563_v42 = vsel %vm749_vm3, %v5558_v1, 0 }
 0xec4   :  { %9221 = vmatpush3.bf16.msra.mxu1 %v5467_v58  ;;  %v5606_v44 = vpop.permute.xlu0 %5605  ;;  %9222 = vmatprep.mubr.msk.bf16.mxu1 %vm9827_vm1, %v11999_v60 }
 0xec5   :  { %v5313_v4 = vpack.c.bf16 %v5305_v24, %v5305_v24  ;;  %v5611_v7 = vsel %vm749_vm3, %v5606_v44, 0  ;;  %9232 = vmatprep.subr.bf16.mxu1 %v11999_v60 }
 0xec6   :  { %v9715_v5 = vpop.eup %9714 }
 0xec7   :  { %v5304_v19 = vmul.f32 %v9715_v5, %v11103_v41  ;;  %9229 = vmatmul.mubr.msk.bf16.vlgmr.msra.gmra.mxu0 %vm647_vm4, %v5313_v4 }
 0xec8   :  { %9239 = vmatpush3.bf16.msra.mxu0 %v5611_v7  ;;  %9240 = vmatprep.mubr.msk.bf16.mxu0 %vm9827_vm1, %v11999_v60 }
 0xec9   :  { %v5312_v15 = vpack.c.bf16 %v5304_v19, %v5304_v19  ;;  %9250 = vmatprep.subr.bf16.mxu0 %v11999_v60 }
 0xecb   :  { %9223 = vmatmul.mubr.msk.bf16.vlgmr.msra.gmra.mxu1 %vm647_vm4, %v5312_v15 }
 0xecc   :  { %9233 = vmatpush3.bf16.msra.mxu1 %v5563_v42  ;;  %9234 = vmatprep.mubr.msk.bf16.mxu1 %vm9827_vm1, %v11999_v60 }
 0xecd   :  { %9244 = vmatprep.subr.bf16.mxu1 %v11999_v60 }
 0xece   :  { %v9717_v41 = vpop.eup %9716 }
 0xecf   :  { %v5306_v56 = vmul.f32 %v9717_v41, %v11107_v53 }
 0xed1   :  { %v5314_v59 = vpack.c.bf16 %v5306_v56, %v5306_v56 }
 0xed3   :  { %9235 = vmatmul.mubr.msk.bf16.vlgmr.msra.gmra.mxu1 %vm647_vm4, %v5314_v59 }
 0xed4   :  { %9245 = vmatpush3.bf16.msra.mxu1 %v5659_v54  ;;  %9246 = vmatprep.mubr.msk.bf16.mxu1 %vm9827_vm1, %v11999_v60 }
 0xed5   :  { %9256 = vmatprep.subr.bf16.mxu1 %v11999_v60 }
 0xee9   :  { %v5289_v1 = vpop.xlane.xlu1 %5288 }
 0xeea   :  { %9718 = vrcp.f32 %v5289_v1 }
 0xeed   :  { %v5795_v6 = vpop.permute.xlu1 %5794 }
 0xeee   :  { %v5800_v59 = vsel %vm264_vm2, %v5795_v6, 0 }
 0xef1   :  { %v5793_v18 = vpop.permute.xlu1 %5792 }
 0xef5   :  { %v5895_v22 = vpop.permute.xlu1 %5894  ;;  %v5292_v37 = vpop.xlane.xlu0 %5291 }
 0xef6   :  { %9720 = vrcp.f32 %v5292_v37  ;;  %v5900_v6 = vsel %vm264_vm2, %v5895_v22, 0 }
 0xef7   :  { %v9719_v53 = vpop.eup %9718 }
 0xef8   :  { %v5307_v46 = vmul.f32 %v9719_v53, %v11116_v40 }
 0xef9   :  { %v5745_v58 = vpop.permute.xlu0 %5744  ;;  %v5893_v4 = vpop.permute.xlu1 %5892 }
 0xefa   :  { %v5315_v24 = vpack.c.bf16 %v5307_v46, %v5307_v46  ;;  %v5750_v44 = vsel %vm264_vm2, %v5745_v58, 0 }
 0xefc   :  { %9241 = vmatmul.mubr.msk.bf16.vlgmr.msra.gmra.mxu0 %vm647_vm4, %v5315_v24 }
 0xefd   :  { %9251 = vmatpush3.bf16.xpose.msra.mxu0 %v5750_v44  ;;  %v5743_v7 = vpop.permute.xlu0 %5742  ;;  %9252 = vmatprep.mubr.msk.bf16.mxu0 %vm9827_vm1, %v11999_v60  ;;  %v5995_v5 = vpop.permute.xlu1 %5994 }
 0xefe   :  { %9262 = vmatprep.subr.bf16.mxu0 %v11999_v60 }
 0xf01   :  { %v5845_v19 = vpop.permute.xlu0 %5844  ;;  %v5993_v52 = vpop.permute.xlu1 %5992 }
 0xf02   :  { %v5850_v15 = vsel %vm264_vm2, %v5845_v19, 0 }
 0xf03   :  { %v9721_v42 = vpop.eup %9720 }
 0xf04   :  { %v5308_v40 = vmul.f32 %v9721_v42, %v11120_v10  ;;  %9253 = vmatmul.mubr.msk.bf16.vlgmr.msra.gmra.mxu0 %vm264_vm2, %v5743_v7 }
 0xf05   :  { %9263 = vmatpush3.bf16.xpose.msra.mxu0 %v5850_v15  ;;  %v5843_v41 = vpop.permute.xlu0 %5842  ;;  %9264 = vmatprep.mubr.msk.bf16.mxu0 %vm9827_vm1, %v11999_v60  ;;  %v6095_v1 = vpop.permute.xlu1 %6094 }
 0xf06   :  { %v5316_v56 = vpack.c.bf16 %v5308_v40, %v5308_v40  ;;  %9274 = vmatprep.subr.bf16.mxu0 %v11999_v60 }
 0xf08   :  { %9247 = vmatmul.mubr.msk.bf16.vlgmr.msra.gmra.mxu1 %vm647_vm4, %v5316_v56 }
 0xf09   :  { %9257 = vmatpush3.bf16.xpose.msra.mxu1 %v5800_v59  ;;  %v5945_v54 = vpop.permute.xlu0 %5944  ;;  %9258 = vmatprep.mubr.msk.bf16.mxu1 %vm9827_vm1, %v11999_v60  ;;  %v6093_v58 = vpop.permute.xlu1 %6092 }
 0xf0a   :  { %v5950_v10 = vsel %vm264_vm2, %v5945_v54, 0  ;;  %9268 = vmatprep.subr.bf16.mxu1 %v11999_v60 }
 0xf0c   :  { %9265 = vmatmul.mubr.msk.bf16.vlgmr.msra.gmra.mxu0 %vm264_vm2, %v5843_v41 }
 0xf0d   :  { %9275 = vmatpush3.bf16.xpose.msra.mxu0 %v5950_v10  ;;  %v5943_v37 = vpop.permute.xlu0 %5942  ;;  %9276 = vmatprep.mubr.msk.bf16.mxu0 %vm9827_vm1, %v11999_v60  ;;  %v6239_v22 = vpop.permute.xlu1 %6238 }
 0xf0e   :  { %9286 = vmatprep.subr.bf16.mxu0 %v11999_v60  ;;  %v6244_v44 = vsel %vm749_vm3, %v6239_v22, 0 }
 0xf10   :  { %9259 = vmatmul.mubr.msk.bf16.vlgmr.msra.gmra.mxu1 %vm264_vm2, %v5793_v18  ;;  %v6000_v18 = vsel %vm264_vm2, %v5995_v5, 0 }
 0xf11   :  { %9269 = vmatpush3.bf16.xpose.msra.mxu1 %v5900_v6  ;;  %v6045_v53 = vpop.permute.xlu0 %6044  ;;  %9270 = vmatprep.mubr.msk.bf16.mxu1 %vm9827_vm1, %v11999_v60 }
 0xf12   :  { %v6050_v46 = vsel %vm264_vm2, %v6045_v53, 0  ;;  %9280 = vmatprep.subr.bf16.mxu1 %v11999_v60 }
 0xf14   :  { %9277 = vmatmul.mubr.msk.bf16.vlgmr.msra.gmra.mxu0 %vm264_vm2, %v5943_v37 }
 0xf15   :  { %9287 = vmatpush3.bf16.xpose.msra.mxu0 %v6050_v46  ;;  %9288 = vmatprep.mubr.msk.bf16.mxu0 %vm9827_vm1, %v11999_v60  ;;  %v6043_v24 = vpop.permute.xlu0 %6042 }
 0xf16   :  { %9298 = vmatprep.subr.bf16.mxu0 %v11999_v60 }
 0xf18   :  { %9271 = vmatmul.mubr.msk.bf16.vlgmr.msra.gmra.mxu1 %vm264_vm2, %v5893_v4  ;;  %v6100_v4 = vsel %vm264_vm2, %v6095_v1, 0 }
 0xf19   :  { %9281 = vmatpush3.bf16.xpose.msra.mxu1 %v6000_v18  ;;  %9282 = vmatprep.mubr.msk.bf16.mxu1 %vm9827_vm1, %v11999_v60  ;;  %v6287_v7 = vpop.permute.xlu0 %6286 }
 0xf1a   :  { %9292 = vmatprep.subr.bf16.mxu1 %v11999_v60  ;;  %v6292_v5 = vsel %vm749_vm3, %v6287_v7, 0 }
 0xf1c   :  { %9289 = vmatmul.mubr.msk.bf16.vlgmr.msra.gmra.mxu0 %vm264_vm2, %v6043_v24 }
 0xf1d   :  { %9299 = vmatpush3.bf16.msra.mxu0 %v6244_v44  ;;  %9300 = vmatprep.mubr.msk.bf16.mxu0 %vm9827_vm1, %v11999_v60 }
 0xf1e   :  { %9310 = vmatprep.subr.bf16.mxu0 %v11999_v60 }
 0xf20   :  { %9283 = vmatmul.mubr.msk.bf16.vlgmr.msra.gmra.mxu1 %vm264_vm2, %v5993_v52 }
 0xf21   :  { %9293 = vmatpush3.bf16.xpose.msra.mxu1 %v6100_v4  ;;  %9294 = vmatprep.mubr.msk.bf16.mxu1 %vm9827_vm1, %v11999_v60 }
 0xf22   :  { %9304 = vmatprep.subr.bf16.mxu1 %v11999_v60 }
 0xf28   :  { %9295 = vmatmul.mubr.msk.bf16.vlgmr.msra.gmra.mxu1 %vm264_vm2, %v6093_v58 }
 0xf29   :  { %9305 = vmatpush3.bf16.msra.mxu1 %v6292_v5  ;;  %9306 = vmatprep.mubr.msk.bf16.mxu1 %vm9827_vm1, %v11999_v60 }
 0xf2a   :  { %9316 = vmatprep.subr.bf16.mxu1 %v11999_v60 }
 0xf77   :  { %v11238_v19 = vpop.f32.mrf.mxu0 }
 0xf79   :  { %v9206_v15 = vpop.f32.mrf.mxu0 }
 0xf7b   :  { %v5362_v42 = vpop.f32.mrf.mxu0 }
 0xf7d   :  { %v9207_v40 = vpop.f32.mrf.mxu0 }
 0xf7f   :  { %v11240_v41 = vpop.f32.mrf.mxu0 }
 0xf81   :  { %v9218_v56 = vpop.f32.mrf.mxu0 }
 0xf83   :  { %v11242_v52 = vpop.f32.mrf.mxu1  ;;  %v5458_v59 = vpop.f32.mrf.mxu0 }
 0xf85   :  { %v9212_v54 = vpop.f32.mrf.mxu1  ;;  %v9219_v10 = vpop.f32.mrf.mxu0 }
 0xf87   :  { %v5410_v1 = vpop.f32.mrf.mxu1  ;;  %v11244_v37 = vpop.f32.mrf.mxu0 }
 0xf88   :  { %12004 = vst [vmem:[#allocation17_spill] sm:$0xff] %v11244_v37 }
 0xf89   :  { %v9213_v6 = vpop.f32.mrf.mxu1  ;;  %v9230_v53 = vpop.f32.mrf.mxu0 }
 0xf8b   :  { %v11246_v46 = vpop.f32.mrf.mxu1  ;;  %v5554_v58 = vpop.f32.mrf.mxu0 }
 0xf8d   :  { %v9224_v18 = vpop.f32.mrf.mxu1  ;;  %v9231_v22 = vpop.f32.mrf.mxu0 }
 0xf8f   :  { %v5506_v24 = vpop.f32.mrf.mxu1 }
 0xf91   :  { %v9225_v44 = vpop.f32.mrf.mxu1 }
 0xf93   :  { %v11248_v4 = vpop.f32.mrf.mxu1 }
 0xf94   :  { %12005 = vst [vmem:[#allocation18_spill] sm:$0xff] %v11248_v4 }
 0xf95   :  { %v9236_v7 = vpop.f32.mrf.mxu1 }
 0xf97   :  { %v5602_v5 = vpop.f32.mrf.mxu1 }
 0xf99   :  { %v9237_v15 = vpop.f32.mrf.mxu1 }
 0xfbc   :  { %v11250_v42 = vpop.f32.mrf.mxu0 }
 0xfbd   :  { %12006 = vst [vmem:[#allocation19_spill] sm:$0xff] %v11250_v42 }
 0xfbe   :  { %v9242_v40 = vpop.f32.mrf.mxu0 }
 0xfc0   :  { %v5650_v56 = vpop.f32.mrf.mxu0 }
 0xfc2   :  { %v9243_v59 = vpop.f32.mrf.mxu0 }
 0xfc4   :  { %v5786_v54 = vpop.f32.mrf.mxu0 }
 0xfc5   :  { %v11253_v10 = vadd.f32 %v5786_v54, %v10047_v9 }
 0xfc6   :  { %v9254_v1 = vpop.f32.mrf.mxu0 }
 0xfc7   :  { %v6142_v6 = vsel %vm647_vm4, %v11253_v10, -inf }
 0xfc8   :  { %v11257_v53 = vpop.f32.mrf.mxu1  ;;  %6143 = vmax.xlane.f32.xlu0 %v6142_v6  ;;  %v5789_v58 = vpop.f32.mrf.mxu0 }
 0xfc9   :  { %12007 = vst [vmem:[#allocation20_spill] sm:$0xff] %v11257_v53 }
 0xfca   :  { %v9248_v18 = vpop.f32.mrf.mxu1  ;;  %v9255_v22 = vpop.f32.mrf.mxu0 }
 0xfcc   :  { %v5698_v24 = vpop.f32.mrf.mxu1  ;;  %v5886_v44 = vpop.f32.mrf.mxu0 }
 0xfcd   :  { %v5887_v7 = vadd.f32 %v5886_v44, %v10044_v8 }
 0xfce   :  { %v9249_v5 = vpop.f32.mrf.mxu1  ;;  %v9266_v15 = vpop.f32.mrf.mxu0 }
 0xfcf   :  { %v6148_v40 = vsel %vm647_vm4, %v5887_v7, -inf }
 0xfd0   :  { %v5836_v56 = vpop.f32.mrf.mxu1  ;;  %6149 = vmax.xlane.f32.xlu0 %v6148_v40  ;;  %v5889_v59 = vpop.f32.mrf.mxu0 }
 0xfd1   :  { %v5837_v54 = vadd.f32 %v5836_v56, %v10063_v31 }
 0xfd2   :  { %v9260_v1 = vpop.f32.mrf.mxu1  ;;  %v9267_v42 = vpop.f32.mrf.mxu0 }
 0xfd3   :  { %v6145_v6 = vsel %vm647_vm4, %v5837_v54, -inf }
 0xfd4   :  { %6146 = vmax.xlane.f32.xlu1 %v6145_v6  ;;  %v5839_v58 = vpop.f32.mrf.mxu1  ;;  %v5986_v18 = vpop.f32.mrf.mxu0 }
 0xfd5   :  { %v5987_v22 = vadd.f32 %v5986_v18, %v10060_v28 }
 0xfd6   :  { %v9261_v24 = vpop.f32.mrf.mxu1  ;;  %v9278_v44 = vpop.f32.mrf.mxu0 }
 0xfd7   :  { %v6154_v5 = vsel %vm647_vm4, %v5987_v22, -inf }
 0xfd8   :  { %v5936_v15 = vpop.f32.mrf.mxu1  ;;  %6155 = vmax.xlane.f32.xlu1 %v6154_v5  ;;  %v5989_v37 = vpop.f32.mrf.mxu0 }
 0xfd9   :  { %v5937_v40 = vadd.f32 %v5936_v15, %v10072_v48 }
 0xfda   :  { %v9272_v59 = vpop.f32.mrf.mxu1  ;;  %v9279_v56 = vpop.f32.mrf.mxu0 }
 0xfdb   :  { %v6151_v42 = vsel %vm647_vm4, %v5937_v40, -inf }
 0xfdc   :  { %v5939_v1 = vpop.f32.mrf.mxu1  ;;  %6152 = vmax.xlane.f32.xlu0 %v6151_v42  ;;  %v6086_v6 = vpop.f32.mrf.mxu0 }
 0xfdd   :  { %v11268_v58 = vadd.f32 %v6086_v6, %v10075_v49 }
 0xfde   :  { %v9273_v18 = vpop.f32.mrf.mxu1  ;;  %v9290_v24 = vpop.f32.mrf.mxu0 }
 0xfdf   :  { %v6160_v44 = vsel %vm647_vm4, %v11268_v58, -inf }
 0xfe0   :  { %v6036_v53 = vpop.f32.mrf.mxu1  ;;  %6161 = vmax.xlane.f32.xlu1 %v6160_v44  ;;  %v6089_v37 = vpop.f32.mrf.mxu0 }
 0xfe1   :  { %v6037_v5 = vadd.f32 %v6036_v53, %v10086_v3  ;;  %v11281_v37 = vpop.permute.xlu1 %6334 }
 0xfe2   :  { %v9284_v15 = vpop.f32.mrf.mxu1  ;;  %v9291_v59 = vpop.f32.mrf.mxu0 }
 0xfe3   :  { %v6157_v56 = vsel %vm647_vm4, %v6037_v5, -inf }
 0xfe4   :  { %v6039_v1 = vpop.f32.mrf.mxu1  ;;  %6158 = vmax.xlane.f32.xlu0 %v6157_v56 }
 0xfe6   :  { %v9285_v42 = vpop.f32.mrf.mxu1 }
 0xfe8   :  { %v6136_v4 = vpop.f32.mrf.mxu1 }
 0xfe9   :  { %v6137_v6 = vadd.f32 %v6136_v4, %v10091_v16  ;;  %v11283_v4 = vpop.permute.xlu1 %6382 }
 0xfea   :  { %v9296_v18 = vpop.f32.mrf.mxu1 }
 0xfeb   :  { %v6163_v24 = vsel %vm647_vm4, %v6137_v6, -inf }
 0xfec   :  { %v6139_v55 = vpop.f32.mrf.mxu1  ;;  %6164 = vmax.xlane.f32.xlu0 %v6163_v24 }
 0xfee   :  { %v9297_v63 = vpop.f32.mrf.mxu1 }
 0xff1   :  { %6478 = vrot.lane.b32.xlu1 %v9962_v35, %s9848_s27 }
0x1002   :  { %6430 = vrot.lane.b32.xlu0 %v9965_v36, %s9848_s27 }
0x1051   :  { %v6144_v53 = vpop.xlane.xlu0 %6143 }
0x1052   :  { %v6166_v44 = vsub.f32 %v11253_v10, %v6144_v53 }
0x1054   :  { %v6174_v15 = vmul.f32 1.442695, %v6166_v44 }
0x1056   :  { %9722 = vpow2.f32 %v6174_v15 }
0x1059   :  { %v6150_v59 = vpop.xlane.xlu0 %6149 }
0x105a   :  { %v6168_v56 = vsub.f32 %v5887_v7, %v6150_v59 }
0x105c   :  { %v6178_v55 = vmul.f32 1.442695, %v6168_v56 }
0x105d   :  { %v6147_v1 = vpop.xlane.xlu1 %6146 }
0x105e   :  { %9724 = vpow2.f32 %v6178_v55  ;;  %v6167_v63 = vsub.f32 %v5837_v54, %v6147_v1 }
0x1060   :  { %v6176_v42 = vmul.f32 1.442695, %v6167_v63 }
0x1061   :  { %v6156_v18 = vpop.xlane.xlu1 %6155 }
0x1062   :  { %9726 = vpow2.f32 %v6176_v42  ;;  %v6170_v24 = vsub.f32 %v5987_v22, %v6156_v18 }
0x1063   :  { %v11285_v34 = vpop.eup %9722 }
0x1064   :  { %v6182_v13 = vmul.f32 1.442695, %v6170_v24  ;;  %v6190_v10 = vsel %vm647_vm4, %v11285_v34, 0.0 }
0x1065   :  { %6191 = vadd.xlane.f32.xlu1 %v6190_v10  ;;  %v6153_v53 = vpop.xlane.xlu0 %6152 }
0x1066   :  { %9728 = vpow2.f32 %v6182_v13  ;;  %v6169_v44 = vsub.f32 %v5937_v40, %v6153_v53 }
0x1068   :  { %v6180_v15 = vmul.f32 1.442695, %v6169_v44 }
0x1069   :  { %v6162_v24 = vpop.xlane.xlu1 %6161 }
0x106a   :  { %9730 = vpow2.f32 %v6180_v15  ;;  %v6172_v10 = vsub.f32 %v11268_v58, %v6162_v24 }
0x106b   :  { %v11289_v7 = vpop.eup %9724 }
0x106c   :  { %v6196_v54 = vsel %vm647_vm4, %v11289_v7, 0.0  ;;  %v6186_v53 = vmul.f32 1.442695, %v6172_v10 }
0x106d   :  { %6197 = vadd.xlane.f32.xlu1 %v6196_v54  ;;  %v6159_v59 = vpop.xlane.xlu0 %6158 }
0x106e   :  { %v6171_v22 = vsub.f32 %v6037_v5, %v6159_v59 }
0x106f   :  { %v11293_v56 = vpop.eup %9726 }
0x1070   :  { %v6184_v55 = vmul.f32 1.442695, %v6171_v22  ;;  %v6193_v1 = vsel %vm647_vm4, %v11293_v56, 0.0 }
0x1071   :  { %6194 = vadd.xlane.f32.xlu0 %v6193_v1 }
0x1072   :  { %9732 = vpow2.f32 %v6184_v55 }
0x1073   :  { %v11297_v13 = vpop.eup %9728  ;;  %9734 = vpow2.f32 %v6186_v53 }
0x1074   :  { %v6202_v40 = vsel %vm647_vm4, %v11297_v13, 0.0 }
0x1075   :  { %6203 = vadd.xlane.f32.xlu1 %v6202_v40  ;;  %v6165_v44 = vpop.xlane.xlu0 %6164 }
0x1076   :  { %v6173_v15 = vsub.f32 %v6137_v6, %v6165_v44  ;;  %v6479_v6 = vpop.permute.xlu1 %6478  ;;  %v6340_v44 = vsel %vm749_vm3, %v11281_v37, 0 }
0x1077   :  { %v11301_v63 = vpop.eup %9730 }
0x1078   :  { %v6199_v42 = vsel %vm647_vm4, %v11301_v63, 0.0  ;;  %v6188_v54 = vmul.f32 1.442695, %v6173_v15 }
0x1079   :  { %6200 = vadd.xlane.f32.xlu0 %v6199_v42  ;;  %v6431_v40 = vpop.permute.xlu0 %6430 }
0x107a   :  { %9736 = vpow2.f32 %v6188_v54 }
0x107f   :  { %v11305_v5 = vpop.eup %9732 }
0x1080   :  { %v6205_v18 = vsel %vm647_vm4, %v11305_v5, 0.0  ;;  %v11314_v59 = vpop.eup %9734 }
0x1081   :  { %6206 = vadd.xlane.f32.xlu0 %v6205_v18  ;;  %v6208_v22 = vsel %vm647_vm4, %v11314_v59, 0.0 }
0x1086   :  { %6574 = vrot.lane.b32.xlu1 %v9968_v38, %s9848_s27 }
0x1087   :  { %v11318_v55 = vpop.eup %9736 }
0x1088   :  { %v6211_v58 = vsel %vm647_vm4, %v11318_v55, 0.0 }
0x1097   :  { %6526 = vrot.lane.b32.xlu0 %v9972_v39, %s9848_s27 }
0x10aa   :  { %6209 = vadd.xlane.f32.xlu1 %v6208_v22 }
0x10b6   :  { %6212 = vadd.xlane.f32.xlu0 %v6211_v58 }
0x10bb   :  { %6715 = vrot.lane.b32.xlu1 %v9960_v33, %s9849_s28 }
0x10bf   :  { %6713 = vrot.lane.b32.xlu1 %v9960_v33, %s9850_s29 }
0x10c3   :  { %6815 = vrot.lane.b32.xlu1 %v9957_v29, %s9849_s28 }
0x10c7   :  { %6813 = vrot.lane.b32.xlu1 %v9957_v29, %s9850_s29 }
0x10cb   :  { %6915 = vrot.lane.b32.xlu1 %v9962_v35, %s9849_s28 }
0x10cc   :  { %6665 = vrot.lane.b32.xlu0 %v9954_v25, %s9849_s28 }
0x10cf   :  { %6913 = vrot.lane.b32.xlu1 %v9962_v35, %s9850_s29 }
0x10d0   :  { %6663 = vrot.lane.b32.xlu0 %v9954_v25, %s9850_s29 }
0x10d3   :  { %7015 = vrot.lane.b32.xlu1 %v9968_v38, %s9849_s28 }
0x10d4   :  { %6765 = vrot.lane.b32.xlu0 %v9952_v21, %s9849_s28 }
0x10d7   :  { %7013 = vrot.lane.b32.xlu1 %v9968_v38, %s9850_s29 }
0x10d8   :  { %6763 = vrot.lane.b32.xlu0 %v9952_v21, %s9850_s29 }
0x10db   :  { %7159 = vrot.lane.b32.xlu1 %v9954_v25, %s9851_s3 }
0x10dc   :  { %6865 = vrot.lane.b32.xlu0 %v9965_v36, %s9849_s28 }
0x10e0   :  { %6863 = vrot.lane.b32.xlu0 %v9965_v36, %s9850_s29 }
0x10e4   :  { %6965 = vrot.lane.b32.xlu0 %v9972_v39, %s9849_s28 }
0x10e8   :  { %6963 = vrot.lane.b32.xlu0 %v9972_v39, %s9850_s29 }
0x10ee   :  { %v6192_v1 = vpop.xlane.xlu1 %6191 }
0x10ef   :  { %9738 = vrcp.f32 %v6192_v1  ;;  %v6436_v1 = vsel %vm749_vm3, %v6431_v40, 0 }
0x10f6   :  { %v6198_v42 = vpop.xlane.xlu1 %6197 }
0x10f7   :  { %9740 = vrcp.f32 %v6198_v42 }
0x10fa   :  { %v6195_v18 = vpop.xlane.xlu0 %6194 }
0x10fb   :  { %9742 = vrcp.f32 %v6195_v18 }
0x10fc   :  { %v9739_v24 = vpop.eup %9738 }
0x10fd   :  { %v6222_v10 = vmul.f32 %v9739_v24, %v11285_v34 }
0x10fe   :  { %v6204_v25 = vpop.xlane.xlu1 %6203 }
0x10ff   :  { %v6230_v53 = vpack.c.bf16 %v6222_v10, %v6222_v10  ;;  %9744 = vrcp.f32 %v6204_v25 }
0x1101   :  { %9301 = vmatmul.mubr.msk.bf16.vlgmr.msra.gmra.mxu0 %vm647_vm4, %v6230_v53 }
0x1102   :  { %9311 = vmatpush3.bf16.msra.mxu0 %v6340_v44  ;;  %v6201_v15 = vpop.xlane.xlu0 %6200  ;;  %9312 = vmatprep.mubr.msk.bf16.mxu0 %vm9827_vm1, %v11999_v60 }
0x1103   :  { %9746 = vrcp.f32 %v6201_v15  ;;  %9322 = vmatprep.subr.bf16.mxu0 %v11999_v60 }
0x1104   :  { %v9741_v54 = vpop.eup %9740 }
0x1105   :  { %v6224_v22 = vmul.f32 %v9741_v54, %v11289_v7  ;;  %v6388_v7 = vsel %vm749_vm3, %v11283_v4, 0  ;;  %v6575_v54 = vpop.permute.xlu1 %6574 }
0x1107   :  { %v6232_v34 = vpack.c.bf16 %v6224_v22, %v6224_v22 }
0x1108   :  { %v9743_v58 = vpop.eup %9742 }
0x1109   :  { %v6223_v42 = vmul.f32 %v9743_v58, %v11293_v56  ;;  %9313 = vmatmul.mubr.msk.bf16.vlgmr.msra.gmra.mxu0 %vm647_vm4, %v6232_v34  ;;  %v6580_v34 = vsel %vm749_vm3, %v6575_v54, 0 }
0x110a   :  { %9323 = vmatpush3.bf16.msra.mxu0 %v6436_v1  ;;  %v6207_v37 = vpop.xlane.xlu0 %6206  ;;  %9324 = vmatprep.mubr.msk.bf16.mxu0 %vm9827_vm1, %v11999_v60 }
0x110b   :  { %v6231_v18 = vpack.c.bf16 %v6223_v42, %v6223_v42  ;;  %9748 = vrcp.f32 %v6207_v37  ;;  %9334 = vmatprep.subr.bf16.mxu0 %v11999_v60 }
0x110c   :  { %v9745_v24 = vpop.eup %9744 }
0x110d   :  { %v6226_v10 = vmul.f32 %v9745_v24, %v11297_v13  ;;  %9307 = vmatmul.mubr.msk.bf16.vlgmr.msra.gmra.mxu1 %vm647_vm4, %v6231_v18  ;;  %v6484_v13 = vsel %vm749_vm3, %v6479_v6, 0 }
0x110e   :  { %9317 = vmatpush3.bf16.msra.mxu1 %v6388_v7  ;;  %v6527_v56 = vpop.permute.xlu0 %6526  ;;  %9318 = vmatprep.mubr.msk.bf16.mxu1 %vm9827_vm1, %v11999_v60 }
0x110f   :  { %v6234_v40 = vpack.c.bf16 %v6226_v10, %v6226_v10  ;;  %v6532_v25 = vsel %vm749_vm3, %v6527_v56, 0  ;;  %9328 = vmatprep.subr.bf16.mxu1 %v11999_v60 }
0x1110   :  { %v9747_v53 = vpop.eup %9746 }
0x1111   :  { %v6225_v44 = vmul.f32 %v9747_v53, %v11301_v63  ;;  %9325 = vmatmul.mubr.msk.bf16.vlgmr.msra.gmra.mxu0 %vm647_vm4, %v6234_v40 }
0x1112   :  { %9335 = vmatpush3.bf16.msra.mxu0 %v6532_v25  ;;  %9336 = vmatprep.mubr.msk.bf16.mxu0 %vm9827_vm1, %v11999_v60 }
0x1113   :  { %v6233_v4 = vpack.c.bf16 %v6225_v44, %v6225_v44  ;;  %9346 = vmatprep.subr.bf16.mxu0 %v11999_v60 }
0x1115   :  { %9319 = vmatmul.mubr.msk.bf16.vlgmr.msra.gmra.mxu1 %vm647_vm4, %v6233_v4 }
0x1116   :  { %9329 = vmatpush3.bf16.msra.mxu1 %v6484_v13  ;;  %9330 = vmatprep.mubr.msk.bf16.mxu1 %vm9827_vm1, %v11999_v60 }
0x1117   :  { %9340 = vmatprep.subr.bf16.mxu1 %v11999_v60 }
0x1118   :  { %v9749_v63 = vpop.eup %9748 }
0x1119   :  { %v6227_v15 = vmul.f32 %v9749_v63, %v11305_v5 }
0x111b   :  { %v6235_v22 = vpack.c.bf16 %v6227_v15, %v6227_v15 }
0x111d   :  { %9331 = vmatmul.mubr.msk.bf16.vlgmr.msra.gmra.mxu1 %vm647_vm4, %v6235_v22 }
0x111e   :  { %9341 = vmatpush3.bf16.msra.mxu1 %v6580_v34  ;;  %9342 = vmatprep.mubr.msk.bf16.mxu1 %vm9827_vm1, %v11999_v60 }
0x111f   :  { %9352 = vmatprep.subr.bf16.mxu1 %v11999_v60 }
0x1133   :  { %v6210_v6 = vpop.xlane.xlu1 %6209 }
0x1134   :  { %9750 = vrcp.f32 %v6210_v6 }
0x1137   :  { %v6716_v58 = vpop.permute.xlu1 %6715 }
0x1138   :  { %v6721_v54 = vsel %vm264_vm2, %v6716_v58, 0 }
0x113b   :  { %v6714_v1 = vpop.permute.xlu1 %6713 }
0x113f   :  { %v6816_v42 = vpop.permute.xlu1 %6815  ;;  %v6213_v37 = vpop.xlane.xlu0 %6212 }
0x1140   :  { %9752 = vrcp.f32 %v6213_v37  ;;  %v6821_v58 = vsel %vm264_vm2, %v6816_v42, 0 }
0x1141   :  { %v9751_v5 = vpop.eup %9750 }
0x1142   :  { %v6228_v18 = vmul.f32 %v9751_v5, %v11314_v59 }
0x1143   :  { %v6666_v24 = vpop.permute.xlu0 %6665  ;;  %v6814_v56 = vpop.permute.xlu1 %6813 }
0x1144   :  { %v6236_v7 = vpack.c.bf16 %v6228_v18, %v6228_v18  ;;  %v6671_v10 = vsel %vm264_vm2, %v6666_v24, 0 }
0x1146   :  { %9337 = vmatmul.mubr.msk.bf16.vlgmr.msra.gmra.mxu0 %vm647_vm4, %v6236_v7 }
0x1147   :  { %9347 = vmatpush3.bf16.xpose.msra.mxu0 %v6671_v10  ;;  %v6664_v40 = vpop.permute.xlu0 %6663  ;;  %9348 = vmatprep.mubr.msk.bf16.mxu0 %vm9827_vm1, %v11999_v60  ;;  %v6916_v25 = vpop.permute.xlu1 %6915 }
0x1148   :  { %9358 = vmatprep.subr.bf16.mxu0 %v11999_v60 }
0x114b   :  { %v6766_v53 = vpop.permute.xlu0 %6765  ;;  %v6914_v15 = vpop.permute.xlu1 %6913 }
0x114c   :  { %v6771_v44 = vsel %vm264_vm2, %v6766_v53, 0 }
0x114d   :  { %v9753_v4 = vpop.eup %9752 }
0x114e   :  { %v6229_v59 = vmul.f32 %v9753_v4, %v11318_v55  ;;  %9349 = vmatmul.mubr.msk.bf16.vlgmr.msra.gmra.mxu0 %vm264_vm2, %v6664_v40 }
0x114f   :  { %9359 = vmatpush3.bf16.xpose.msra.mxu0 %v6771_v44  ;;  %v6764_v13 = vpop.permute.xlu0 %6763  ;;  %9360 = vmatprep.mubr.msk.bf16.mxu0 %vm9827_vm1, %v11999_v60  ;;  %v7016_v34 = vpop.permute.xlu1 %7015 }
0x1150   :  { %v6237_v63 = vpack.c.bf16 %v6229_v59, %v6229_v59  ;;  %9370 = vmatprep.subr.bf16.mxu0 %v11999_v60  ;;  %v7021_v10 = vsel %vm264_vm2, %v7016_v34, 0 }
0x1152   :  { %9343 = vmatmul.mubr.msk.bf16.vlgmr.msra.gmra.mxu1 %vm647_vm4, %v6237_v63 }
0x1153   :  { %9353 = vmatpush3.bf16.xpose.msra.mxu1 %v6721_v54  ;;  %v6866_v22 = vpop.permute.xlu0 %6865  ;;  %9354 = vmatprep.mubr.msk.bf16.mxu1 %vm9827_vm1, %v11999_v60  ;;  %v7014_v18 = vpop.permute.xlu1 %7013 }
0x1154   :  { %v6871_v55 = vsel %vm264_vm2, %v6866_v22, 0  ;;  %9364 = vmatprep.subr.bf16.mxu1 %v11999_v60 }
0x1156   :  { %9361 = vmatmul.mubr.msk.bf16.vlgmr.msra.gmra.mxu0 %vm264_vm2, %v6764_v13 }
0x1157   :  { %9371 = vmatpush3.bf16.xpose.msra.mxu0 %v6871_v55  ;;  %v6864_v6 = vpop.permute.xlu0 %6863  ;;  %9372 = vmatprep.mubr.msk.bf16.mxu0 %vm9827_vm1, %v11999_v60  ;;  %v7160_v42 = vpop.permute.xlu1 %7159 }
0x1158   :  { %9382 = vmatprep.subr.bf16.mxu0 %v11999_v60  ;;  %v7165_v7 = vsel %vm749_vm3, %v7160_v42, 0 }
0x115a   :  { %9355 = vmatmul.mubr.msk.bf16.vlgmr.msra.gmra.mxu1 %vm264_vm2, %v6714_v1  ;;  %v6921_v1 = vsel %vm264_vm2, %v6916_v25, 0 }
0x115b   :  { %9365 = vmatpush3.bf16.xpose.msra.mxu1 %v6821_v58  ;;  %v6966_v37 = vpop.permute.xlu0 %6965  ;;  %9366 = vmatprep.mubr.msk.bf16.mxu1 %vm9827_vm1, %v11999_v60 }
0x115c   :  { %v6971_v5 = vsel %vm264_vm2, %v6966_v37, 0  ;;  %9376 = vmatprep.subr.bf16.mxu1 %v11999_v60 }
0x115e   :  { %9373 = vmatmul.mubr.msk.bf16.vlgmr.msra.gmra.mxu0 %vm264_vm2, %v6864_v6 }
0x115f   :  { %9383 = vmatpush3.bf16.xpose.msra.mxu0 %v6971_v5  ;;  %9384 = vmatprep.mubr.msk.bf16.mxu0 %vm9827_vm1, %v11999_v60  ;;  %v6964_v24 = vpop.permute.xlu0 %6963 }
0x1160   :  { %9394 = vmatprep.subr.bf16.mxu0 %v11999_v60 }
0x1162   :  { %9367 = vmatmul.mubr.msk.bf16.vlgmr.msra.gmra.mxu1 %vm264_vm2, %v6814_v56 }
0x1163   :  { %9377 = vmatpush3.bf16.xpose.msra.mxu1 %v6921_v1  ;;  %9378 = vmatprep.mubr.msk.bf16.mxu1 %vm9827_vm1, %v11999_v60 }
0x1164   :  { %9388 = vmatprep.subr.bf16.mxu1 %v11999_v60 }
0x1166   :  { %9385 = vmatmul.mubr.msk.bf16.vlgmr.msra.gmra.mxu0 %vm264_vm2, %v6964_v24 }
0x1167   :  { %9395 = vmatpush3.bf16.msra.mxu0 %v7165_v7  ;;  %9396 = vmatprep.mubr.msk.bf16.mxu0 %vm9827_vm1, %v11999_v60 }
0x1168   :  { %9406 = vmatprep.subr.bf16.mxu0 %v11999_v60 }
0x116a   :  { %9379 = vmatmul.mubr.msk.bf16.vlgmr.msra.gmra.mxu1 %vm264_vm2, %v6914_v15 }
0x116b   :  { %9389 = vmatpush3.bf16.xpose.msra.mxu1 %v7021_v10  ;;  %9390 = vmatprep.mubr.msk.bf16.mxu1 %vm9827_vm1, %v11999_v60 }
0x116c   :  { %9400 = vmatprep.subr.bf16.mxu1 %v11999_v60 }
0x1172   :  { %9391 = vmatmul.mubr.msk.bf16.vlgmr.msra.gmra.mxu1 %vm264_vm2, %v7014_v18 }
0x1173   :  { %9402 = vmatprep.mubr.msk.bf16.mxu1 %vm9827_vm1, %v11999_v60 }
0x11c1   :  { %v11428_v56 = vpop.f32.mrf.mxu0 }
0x11c3   :  { %v9302_v40 = vpop.f32.mrf.mxu0 }
0x11c5   :  { %v6283_v25 = vpop.f32.mrf.mxu0 }
0x11c7   :  { %v9303_v53 = vpop.f32.mrf.mxu0 }
0x11c9   :  { %v11430_v44 = vpop.f32.mrf.mxu0 }
0x11cb   :  { %v9314_v4 = vpop.f32.mrf.mxu0 }
0x11cd   :  { %v11432_v59 = vpop.f32.mrf.mxu1  ;;  %v6379_v13 = vpop.f32.mrf.mxu0 }
0x11cf   :  { %v9308_v63 = vpop.f32.mrf.mxu1  ;;  %v9315_v15 = vpop.f32.mrf.mxu0 }
0x11d1   :  { %v6331_v54 = vpop.f32.mrf.mxu1  ;;  %v11434_v22 = vpop.f32.mrf.mxu0 }
0x11d3   :  { %v9309_v55 = vpop.f32.mrf.mxu1  ;;  %v9326_v34 = vpop.f32.mrf.mxu0 }
0x11d5   :  { %v11436_v6 = vpop.f32.mrf.mxu1  ;;  %v6475_v58 = vpop.f32.mrf.mxu0 }
0x11d7   :  { %v9320_v37 = vpop.f32.mrf.mxu1  ;;  %v9327_v5 = vpop.f32.mrf.mxu0 }
0x11d9   :  { %v6427_v18 = vpop.f32.mrf.mxu1 }
0x11db   :  { %v9321_v1 = vpop.f32.mrf.mxu1 }
0x11dd   :  { %v11438_v42 = vpop.f32.mrf.mxu1 }
0x11df   :  { %v9332_v24 = vpop.f32.mrf.mxu1 }
0x11e1   :  { %v6523_v7 = vpop.f32.mrf.mxu1 }
0x11e3   :  { %v9333_v10 = vpop.f32.mrf.mxu1 }
0x1206   :  { %v11440_v40 = vpop.f32.mrf.mxu0 }
0x1208   :  { %v9338_v25 = vpop.f32.mrf.mxu0 }
0x120a   :  { %v6571_v53 = vpop.f32.mrf.mxu0 }
0x120c   :  { %v9339_v4 = vpop.f32.mrf.mxu0 }
0x120e   :  { %v6707_v13 = vpop.f32.mrf.mxu0 }
0x120f   :  { %v11443_v63 = vadd.f32 %v6707_v13, %v10047_v9 }
0x1210   :  { %v9350_v15 = vpop.f32.mrf.mxu0 }
0x1211   :  { %v7063_v54 = vsel %vm647_vm4, %v11443_v63, -inf }
0x1212   :  { %v11447_v55 = vpop.f32.mrf.mxu1  ;;  %7064 = vmax.xlane.f32.xlu0 %v7063_v54  ;;  %v6710_v34 = vpop.f32.mrf.mxu0 }
0x1214   :  { %v9344_v58 = vpop.f32.mrf.mxu1  ;;  %v9351_v37 = vpop.f32.mrf.mxu0 }
0x1216   :  { %v6619_v5 = vpop.f32.mrf.mxu1  ;;  %v6807_v18 = vpop.f32.mrf.mxu0 }
0x1217   :  { %v6808_v1 = vadd.f32 %v6807_v18, %v10044_v8 }
0x1218   :  { %v9345_v24 = vpop.f32.mrf.mxu1  ;;  %v9362_v7 = vpop.f32.mrf.mxu0 }
0x1219   :  { %v7069_v10 = vsel %vm647_vm4, %v6808_v1, -inf }
0x121a   :  { %v6757_v9 = vpop.f32.mrf.mxu1  ;;  %7070 = vmax.xlane.f32.xlu0 %v7069_v10  ;;  %v6810_v25 = vpop.f32.mrf.mxu0 }
0x121b   :  { %v6758_v53 = vadd.f32 %v6757_v9, %v10063_v31 }
0x121c   :  { %v9356_v4 = vpop.f32.mrf.mxu1  ;;  %v9363_v13 = vpop.f32.mrf.mxu0 }
0x121d   :  { %v7066_v15 = vsel %vm647_vm4, %v6758_v53, -inf }
0x121e   :  { %7067 = vmax.xlane.f32.xlu1 %v7066_v15  ;;  %v6760_v54 = vpop.f32.mrf.mxu1  ;;  %v6907_v34 = vpop.f32.mrf.mxu0 }
0x121f   :  { %v11454_v58 = vadd.f32 %v6907_v34, %v10060_v28 }
0x1220   :  { %v9357_v8 = vpop.f32.mrf.mxu1  ;;  %v9374_v37 = vpop.f32.mrf.mxu0 }
0x1221   :  { %v7075_v5 = vsel %vm647_vm4, %v11454_v58, -inf }
0x1222   :  { %v6857_v18 = vpop.f32.mrf.mxu1  ;;  %7076 = vmax.xlane.f32.xlu1 %v7075_v5  ;;  %v6910_v24 = vpop.f32.mrf.mxu0 }
0x1223   :  { %v6858_v31 = vadd.f32 %v6857_v18, %v10072_v48 }
0x1224   :  { %v9368_v7 = vpop.f32.mrf.mxu1  ;;  %v9375_v10 = vpop.f32.mrf.mxu0 }
0x1225   :  { %v7072_v9 = vsel %vm647_vm4, %v6858_v31, -inf }
0x1226   :  { %v6860_v25 = vpop.f32.mrf.mxu1  ;;  %7073 = vmax.xlane.f32.xlu0 %v7072_v9  ;;  %v7007_v4 = vpop.f32.mrf.mxu0 }
0x1227   :  { %v11461_v28 = vadd.f32 %v7007_v4, %v10075_v49 }
0x1228   :  { %v9369_v13 = vpop.f32.mrf.mxu1  ;;  %v9386_v15 = vpop.f32.mrf.mxu0 }
0x1229   :  { %v7081_v54 = vsel %vm647_vm4, %v11461_v28, -inf }
0x122a   :  { %v6957_v34 = vpop.f32.mrf.mxu1  ;;  %7082 = vmax.xlane.f32.xlu1 %v7081_v54  ;;  %v7010_v8 = vpop.f32.mrf.mxu0 }
0x122b   :  { %v6958_v48 = vadd.f32 %v6957_v34, %v10086_v3 }
0x122c   :  { %v9380_v37 = vpop.f32.mrf.mxu1  ;;  %v9387_v5 = vpop.f32.mrf.mxu0 }
0x122d   :  { %v7078_v18 = vsel %vm647_vm4, %v6958_v48, -inf }
0x122e   :  { %v6960_v24 = vpop.f32.mrf.mxu1  ;;  %7079 = vmax.xlane.f32.xlu0 %v7078_v18 }
0x1230   :  { %v9381_v7 = vpop.f32.mrf.mxu1 }
0x1232   :  { %v7057_v10 = vpop.f32.mrf.mxu1 }
0x1233   :  { %v7058_v49 = vadd.f32 %v7057_v10, %v10091_v16 }
0x1234   :  { %v9392_v9 = vpop.f32.mrf.mxu1 }
0x1235   :  { %v7084_v25 = vsel %vm647_vm4, %v7058_v49, -inf }
0x1236   :  { %v7060_v4 = vpop.f32.mrf.mxu1  ;;  %7085 = vmax.xlane.f32.xlu0 %v7084_v25 }
0x1238   :  { %v9393_v13 = vpop.f32.mrf.mxu1 }
0x123b   :  { %7255 = vrot.lane.b32.xlu1 %v9952_v21, %s9851_s3 }
0x123f   :  { %7303 = vrot.lane.b32.xlu1 %v9957_v29, %s9851_s3 }
0x124c   :  { %7207 = vrot.lane.b32.xlu0 %v9960_v33, %s9851_s3 }
0x129b   :  { %v7065_v3 = vpop.xlane.xlu0 %7064 }
0x129c   :  { %v7087_v15 = vsub.f32 %v11443_v63, %v7065_v3 }
0x129e   :  { %v7095_v54 = vmul.f32 1.442695, %v7087_v15 }
0x12a0   :  { %9754 = vpow2.f32 %v7095_v54 }
0x12a3   :  { %v7071_v16 = vpop.xlane.xlu0 %7070 }
0x12a4   :  { %v7089_v34 = vsub.f32 %v6808_v1, %v7071_v16 }
0x12a6   :  { %v7099_v8 = vmul.f32 1.442695, %v7089_v34 }
0x12a7   :  { %v7068_v37 = vpop.xlane.xlu1 %7067 }
0x12a8   :  { %9756 = vpow2.f32 %v7099_v8  ;;  %v7088_v5 = vsub.f32 %v6758_v53, %v7068_v37 }
0x12aa   :  { %v7097_v18 = vmul.f32 1.442695, %v7088_v5 }
0x12ab   :  { %v7077_v15 = vpop.xlane.xlu1 %7076 }
0x12ac   :  { %9758 = vpow2.f32 %v7097_v18  ;;  %v7091_v54 = vsub.f32 %v11454_v58, %v7077_v15 }
0x12ad   :  { %v11476_v21 = vpop.eup %9754 }
0x12ae   :  { %v7111_v29 = vsel %vm647_vm4, %v11476_v21, 0.0  ;;  %v7103_v34 = vmul.f32 1.442695, %v7091_v54 }
0x12af   :  { %7112 = vadd.xlane.f32.xlu1 %v7111_v29  ;;  %v7074_v33 = vpop.xlane.xlu0 %7073 }
0x12b0   :  { %v7090_v24 = vsub.f32 %v6858_v31, %v7074_v33 }
0x12b2   :  { %v7101_v7 = vmul.f32 1.442695, %v7090_v24 }
0x12b3   :  { %v7083_v16 = vpop.xlane.xlu1 %7082 }
0x12b4   :  { %9760 = vpow2.f32 %v7101_v7  ;;  %v7093_v8 = vsub.f32 %v11461_v28, %v7083_v16 }
0x12b5   :  { %v11480_v63 = vpop.eup %9756  ;;  %9762 = vpow2.f32 %v7103_v34 }
0x12b6   :  { %v7117_v1 = vsel %vm647_vm4, %v11480_v63, 0.0  ;;  %v7107_v37 = vmul.f32 1.442695, %v7093_v8 }
0x12b7   :  { %7118 = vadd.xlane.f32.xlu1 %v7117_v1  ;;  %v7080_v9 = vpop.xlane.xlu0 %7079 }
0x12b8   :  { %9764 = vpow2.f32 %v7107_v37  ;;  %v7092_v5 = vsub.f32 %v6958_v48, %v7080_v9  ;;  %v12020_v9 = vld [vmem:[#allocation13_spill] sm:$0xff] }
0x12b9   :  { %v11484_v10 = vpop.eup %9758 }
0x12ba   :  { %v7114_v53 = vsel %vm647_vm4, %v11484_v10, 0.0  ;;  %v7105_v18 = vmul.f32 1.442695, %v7092_v5 }
0x12bb   :  { %7115 = vadd.xlane.f32.xlu0 %v7114_v53 }
0x12bc   :  { %9766 = vpow2.f32 %v7105_v18 }
0x12bf   :  { %v7086_v25 = vpop.xlane.xlu0 %7085 }
0x12c0   :  { %v7094_v29 = vsub.f32 %v7058_v49, %v7086_v25 }
0x12c1   :  { %v11488_v4 = vpop.eup %9760 }
0x12c2   :  { %v7120_v31 = vsel %vm647_vm4, %v11488_v4, 0.0  ;;  %v7109_v33 = vmul.f32 1.442695, %v7094_v29  ;;  %v11500_v24 = vpop.eup %9762 }
0x12c3   :  { %7121 = vadd.xlane.f32.xlu0 %v7120_v31  ;;  %v7208_v13 = vpop.permute.xlu0 %7207  ;;  %v12023_v31 = vld [vmem:[#allocation19_spill] sm:$0xff] }
0x12c4   :  { %v7213_v3 = vsel %vm749_vm3, %v7208_v13, 0  ;;  %9768 = vpow2.f32 %v7109_v33 }
0x12c5   :  { %9401 = vmatpush3.bf16.msra.mxu1 %v7213_v3  ;;  %v11504_v58 = vpop.eup %9764 }
0x12c6   :  { %9412 = vmatprep.subr.bf16.mxu1 %v11999_v60 }
0x12c8   :  { %7399 = vrot.lane.b32.xlu1 %v9962_v35, %s9851_s3  ;;  %v7123_v35 = vsel %vm647_vm4, %v11500_v24, 0.0 }
0x12c9   :  { %v11508_v28 = vpop.eup %9766 }
0x12ca   :  { %v7126_v48 = vsel %vm647_vm4, %v11508_v28, 0.0 }
0x12d1   :  { %v11512_v49 = vpop.eup %9768 }
0x12d2   :  { %v7132_v7 = vsel %vm647_vm4, %v11512_v49, 0.0 }
0x12d9   :  { %7351 = vrot.lane.b32.xlu0 %v9965_v36, %s9851_s3  ;;  %v7129_v36 = vsel %vm647_vm4, %v11504_v58, 0.0 }
0x12ec   :  { %7124 = vadd.xlane.f32.xlu1 %v7123_v35 }
0x12f0   :  { %7130 = vadd.xlane.f32.xlu1 %v7129_v36 }
0x12f8   :  { %7127 = vadd.xlane.f32.xlu0 %v7126_v48 }
0x12fc   :  { %7133 = vadd.xlane.f32.xlu0 %v7132_v7 }
0x1301   :  { %7495 = vrot.lane.b32.xlu1 %v9968_v38, %s9851_s3  ;;  %v7256_v38 = vpop.permute.xlu1 %7255 }
0x1305   :  { %2027 = vrot.lane.b32.xlu1 %v10450_v26, %s9852_s30 }
0x1309   :  { %2031 = vrot.lane.b32.xlu1 %v10454_v27, %s9852_s30  ;;  %v12008_v27 = vld [vmem:[#allocation10_spill] sm:$0xff] }
0x130d   :  { %2948 = vrot.lane.b32.xlu1 %v10648_v51, %s9853_s10  ;;  %v12010_v51 = vld [vmem:[#allocation12_spill] sm:$0xff] }
0x1311   :  { %2952 = vrot.lane.b32.xlu1 %v10652_v2, %s9853_s10  ;;  %v12011_v2 = vld [vmem:[#allocation6_spill] sm:$0xff] }
0x1312   :  { %7447 = vrot.lane.b32.xlu0 %v9972_v39, %s9851_s3  ;;  %v7304_v39 = vpop.permute.xlu1 %7303 }
0x1315   :  { %3869 = vrot.lane.b32.xlu1 %v10846_v43, %s9854_s11  ;;  %v12013_v43 = vld [vmem:[#allocation7_spill] sm:$0xff] }
0x1316   :  { %2025 = vrot.lane.b32.xlu0 %v10446_v11, %s9852_s30 }
0x1319   :  { %3873 = vrot.lane.b32.xlu1 %v10850_v30, %s9854_s11 }
0x131a   :  { %2029 = vrot.lane.b32.xlu0 %v10448_v23, %s9852_s30 }
0x131d   :  { %4790 = vrot.lane.b32.xlu1 %v11044_v32, %s9855_s1 }
0x131e   :  { %2946 = vrot.lane.b32.xlu0 %v10644_v50, %s9853_s10 }
0x1321   :  { %4794 = vrot.lane.b32.xlu1 %v11048_v57, %s9855_s1  ;;  %v12014_v57 = vld [vmem:[#allocation16_spill] sm:$0xff] }
0x1322   :  { %2950 = vrot.lane.b32.xlu0 %v10646_v47, %s9853_s10 }
0x1325   :  { %5711 = vrot.lane.b32.xlu1 %v11242_v52, %s9856_s12 }
0x1326   :  { %3867 = vrot.lane.b32.xlu0 %v10842_v20, %s9854_s11  ;;  %v12012_v20 = vld [vmem:[#allocation14_spill] sm:$0xff] }
0x1329   :  { %5715 = vrot.lane.b32.xlu1 %v11246_v46, %s9856_s12 }
0x132a   :  { %3871 = vrot.lane.b32.xlu0 %v10844_v61, %s9854_s11 }
0x132d   :  { %6632 = vrot.lane.b32.xlu1 %v11432_v59, %s9857_s13  ;;  %v7309_v59 = vsel %vm749_vm3, %v7304_v39, 0 }
0x132e   :  { %4788 = vrot.lane.b32.xlu0 %v11040_v0, %s9855_s1 }
0x1331   :  { %6636 = vrot.lane.b32.xlu1 %v11436_v6, %s9857_s13  ;;  %v12018_v6 = vld [vmem:[#allocation20_spill] sm:$0xff] }
0x1332   :  { %4792 = vrot.lane.b32.xlu0 %v11042_v14, %s9855_s1 }
0x1335   :  { %2035 = vrot.lane.b32.xlu1 %v10456_v12, %s9852_s30 }
0x1336   :  { %5709 = vrot.lane.b32.xlu0 %v11238_v19, %s9856_s12 }
0x1338   :  { %v7113_v11 = vpop.xlane.xlu1 %7112 }
0x1339   :  { %9770 = vrcp.f32 %v7113_v11  ;;  %2039 = vrot.lane.b32.xlu1 %v10465_v62, %s9852_s30  ;;  %v12009_v62 = vld [vmem:[#allocation5_spill] sm:$0xff] }
0x133a   :  { %5713 = vrot.lane.b32.xlu0 %v11240_v41, %s9856_s12  ;;  %v12015_v41 = vld [vmem:[#allocation8_spill] sm:$0xff] }
0x133d   :  { %2956 = vrot.lane.b32.xlu1 %v10654_v17, %s9853_s10  ;;  %v7261_v17 = vsel %vm749_vm3, %v7256_v38, 0 }
0x133e   :  { %6630 = vrot.lane.b32.xlu0 %v11428_v56, %s9857_s13  ;;  %v12016_v56 = vld [vmem:[#allocation18_spill] sm:$0xff] }
0x1340   :  { %v7119_v23 = vpop.xlane.xlu1 %7118 }
0x1341   :  { %9772 = vrcp.f32 %v7119_v23  ;;  %2960 = vrot.lane.b32.xlu1 %v10663_v45, %s9853_s10 }
0x1342   :  { %6634 = vrot.lane.b32.xlu0 %v11430_v44, %s9857_s13  ;;  %v12017_v44 = vld [vmem:[#allocation9_spill] sm:$0xff] }
0x1344   :  { %v7116_v26 = vpop.xlane.xlu0 %7115 }
0x1345   :  { %9774 = vrcp.f32 %v7116_v26  ;;  %3877 = vrot.lane.b32.xlu1 %v12008_v27, %s9854_s11 }
0x1346   :  { %v9771_v12 = vpop.eup %9770  ;;  %2033 = vrot.lane.b32.xlu0 %v12009_v62, %s9852_s30 }
0x1347   :  { %v7143_v50 = vmul.f32 %v9771_v12, %v11476_v21 }
0x1349   :  { %v7151_v47 = vpack.c.bf16 %v7143_v50, %v7143_v50  ;;  %3881 = vrot.lane.b32.xlu1 %v12010_v51, %s9854_s11 }
0x134a   :  { %2037 = vrot.lane.b32.xlu0 %v12011_v2, %s9852_s30 }
0x134b   :  { %9397 = vmatmul.mubr.msk.bf16.vlgmr.msra.gmra.mxu0 %vm647_vm4, %v7151_v47 }
0x134c   :  { %9407 = vmatpush3.bf16.msra.mxu0 %v7261_v17  ;;  %v7122_v45 = vpop.xlane.xlu0 %7121  ;;  %9408 = vmatprep.mubr.msk.bf16.mxu0 %vm9827_vm1, %v11999_v60 }
0x134d   :  { %9776 = vrcp.f32 %v7122_v45  ;;  %4798 = vrot.lane.b32.xlu1 %v12012_v20, %s9855_s1  ;;  %9418 = vmatprep.subr.bf16.mxu0 %v11999_v60 }
0x134e   :  { %v9773_v61 = vpop.eup %9772  ;;  %2954 = vrot.lane.b32.xlu0 %v12013_v43, %s9853_s10 }
0x134f   :  { %v7145_v30 = vmul.f32 %v9773_v61, %v11480_v63  ;;  %v12019_v63 = vld [vmem:[#allocation11_spill] sm:$0xff] }
0x1350   :  { %v7352_v0 = vpop.permute.xlu0 %7351 }
0x1351   :  { %v7153_v14 = vpack.c.bf16 %v7145_v30, %v7145_v30  ;;  %v7357_v32 = vsel %vm749_vm3, %v7352_v0, 0  ;;  %4802 = vrot.lane.b32.xlu1 %v12014_v57, %s9855_s1 }
0x1352   :  { %v9775_v19 = vpop.eup %9774  ;;  %2958 = vrot.lane.b32.xlu0 %v12015_v41, %s9853_s10 }
0x1353   :  { %v7144_v52 = vmul.f32 %v9775_v19, %v11484_v10  ;;  %9409 = vmatmul.mubr.msk.bf16.vlgmr.msra.gmra.mxu0 %vm647_vm4, %v7153_v14  ;;  %v7400_v10 = vpop.permute.xlu1 %7399 }
0x1354   :  { %9419 = vmatpush3.bf16.msra.mxu0 %v7357_v32  ;;  %9420 = vmatprep.mubr.msk.bf16.mxu0 %vm9827_vm1, %v11999_v60  ;;  %v7405_v25 = vsel %vm749_vm3, %v7400_v10, 0 }
0x1355   :  { %v7152_v46 = vpack.c.bf16 %v7144_v52, %v7144_v52  ;;  %5719 = vrot.lane.b32.xlu1 %v12016_v56, %s9856_s12  ;;  %9430 = vmatprep.subr.bf16.mxu0 %v11999_v60 }
0x1356   :  { %3875 = vrot.lane.b32.xlu0 %v12017_v44, %s9854_s11 }
0x1357   :  { %9403 = vmatmul.mubr.msk.bf16.vlgmr.msra.gmra.mxu1 %vm647_vm4, %v7152_v46 }
0x1358   :  { %9413 = vmatpush3.bf16.msra.mxu1 %v7309_v59  ;;  %9414 = vmatprep.mubr.msk.bf16.mxu1 %vm9827_vm1, %v11999_v60 }
0x1359   :  { %5723 = vrot.lane.b32.xlu1 %v12018_v6, %s9856_s12  ;;  %9424 = vmatprep.subr.bf16.mxu1 %v11999_v60 }
0x135a   :  { %v9777_v21 = vpop.eup %9776  ;;  %3879 = vrot.lane.b32.xlu0 %v12019_v63, %s9854_s11 }
0x135b   :  { %v7146_v1 = vmul.f32 %v9777_v21, %v11488_v4  ;;  %v12021_v4 = vld [vmem:[#allocation15_spill] sm:$0xff] }
0x135d   :  { %v7154_v53 = vpack.c.bf16 %v7146_v1, %v7146_v1  ;;  %6640 = vrot.lane.b32.xlu1 %v11438_v42, %s9857_s13  ;;  %v12022_v42 = vld [vmem:[#allocation17_spill] sm:$0xff] }
0x135e   :  { %4796 = vrot.lane.b32.xlu0 %v12020_v9, %s9855_s1 }
0x135f   :  { %9415 = vmatmul.mubr.msk.bf16.vlgmr.msra.gmra.mxu1 %vm647_vm4, %v7154_v53 }
0x1360   :  { %9425 = vmatpush3.bf16.msra.mxu1 %v7405_v25  ;;  %9426 = vmatprep.mubr.msk.bf16.mxu1 %vm9827_vm1, %v11999_v60 }
0x1361   :  { %6644 = vrot.lane.b32.xlu1 %v11447_v55, %s9857_s13  ;;  %9436 = vmatprep.subr.bf16.mxu1 %v11999_v60 }
0x1362   :  { %4800 = vrot.lane.b32.xlu0 %v12021_v4, %s9855_s1 }
0x1366   :  { %5717 = vrot.lane.b32.xlu0 %v12022_v42, %s9856_s12 }
0x136a   :  { %5721 = vrot.lane.b32.xlu0 %v12023_v31, %s9856_s12 }
0x136e   :  { %6638 = vrot.lane.b32.xlu0 %v11434_v22, %s9857_s13 }
0x1372   :  { %6642 = vrot.lane.b32.xlu0 %v11440_v40, %s9857_s13 }
0x1375   :  { %v7125_v13 = vpop.xlane.xlu1 %7124 }
0x1376   :  { %9778 = vrcp.f32 %v7125_v13 }
0x1379   :  { %v7131_v55 = vpop.xlane.xlu1 %7130 }
0x137a   :  { %9780 = vrcp.f32 %v7131_v55 }
0x137d   :  { %v7496_v3 = vpop.permute.xlu1 %7495 }
0x137e   :  { %v7501_v23 = vsel %vm749_vm3, %v7496_v3, 0 }
0x1381   :  { %v2028_v15 = vpop.permute.xlu1 %2027  ;;  %v7128_v54 = vpop.xlane.xlu0 %7127 }
0x1382   :  { %2051 = vst.msk [vmem:[#allocation2 + $0x8] sm:$0xff] %vm2049_vm5, %v2028_v15  ;;  %9782 = vrcp.f32 %v7128_v54 }
0x1383   :  { %v9779_v16 = vpop.eup %9778 }
0x1384   :  { %v7147_v34 = vmul.f32 %v9779_v16, %v11500_v24 }
0x1385   :  { %v2032_v8 = vpop.permute.xlu1 %2031  ;;  %v7134_v37 = vpop.xlane.xlu0 %7133 }
0x1386   :  { %v7155_v22 = vpack.c.bf16 %v7147_v34, %v7147_v34  ;;  %2053 = vst.msk [vmem:[#allocation2 + $0x18] sm:$0xff] %vm2049_vm5, %v2032_v8  ;;  %9784 = vrcp.f32 %v7134_v37 }
0x1387   :  { %v9781_v40 = vpop.eup %9780 }
0x1388   :  { %9421 = vmatmul.mubr.msk.bf16.vlgmr.msra.gmra.mxu0 %vm647_vm4, %v7155_v22  ;;  %v7149_v29 = vmul.f32 %v9781_v40, %v11504_v58  ;;  %v9522_v22 = vld [vmem:[%s11978_s4 + $0x8] sm:$0xff]  }
0x1389   :  { %v2949_v5 = vpop.permute.xlu1 %2948  ;;  %v7448_v18 = vpop.permute.xlu0 %7447  ;;  %9432 = vmatprep.mubr.msk.bf16.mxu0 %vm9827_vm1, %v11999_v60 }
0x138a   :  { %2972 = vst.msk [vmem:[#allocation2 + $0x8] sm:$0xff] %vm2970_vm6, %v2949_v5  ;;  %v7453_v33 = vsel %vm749_vm3, %v7448_v18, 0  ;;  %v7157_v36 = vpack.c.bf16 %v7149_v29, %v7149_v29  ;;  %v9523_v5 = vld [vmem:[%s11978_s4] sm:$0xff]  }
0x138b   :  { %9431 = vmatpush3.bf16.msra.mxu0 %v7453_v33 }
0x138c   :  { %9442 = vmatprep.subr.bf16.mxu0 %v9522_v22 }
0x138d   :  { %v2953_v24 = vpop.permute.xlu1 %2952  ;;  %v2026_v35 = vpop.permute.xlu0 %2025 }
0x138e   :  { %2974 = vst.msk [vmem:[#allocation2 + $0x18] sm:$0xff] %vm2970_vm6, %v2953_v24 }
0x138f   :  { %2050 = vst.msk [vmem:[#allocation2] sm:$0xff] %vm2049_vm5, %v2026_v35  ;;  %v9783_v48 = vpop.eup %9782 }
0x1390   :  { %v7148_v7 = vmul.f32 %v9783_v48, %v11508_v28  ;;  %9433 = vmatmul.mubr.msk.bf16.vlgmr.msra.gmra.mxu0 %vm647_vm4, %v7157_v36 }
0x1391   :  { %v3870_v38 = vpop.permute.xlu1 %3869  ;;  %v2030_v58 = vpop.permute.xlu0 %2029  ;;  %9443 = vmatpush3.bf16.msra.mxu0 %v9522_v22 }
0x1392   :  { %v7156_v39 = vpack.c.bf16 %v7148_v7, %v7148_v7  ;;  %3893 = vst.msk [vmem:[#allocation2 + $0x8] sm:$0xff] %vm3891_vm7, %v3870_v38  ;;  %9444 = vmatprep.subr.bf16.mxu0 %v9523_v5 }
0x1393   :  { %2052 = vst.msk [vmem:[#allocation2 + $0x10] sm:$0xff] %vm2049_vm5, %v2030_v58  ;;  %v9785_v11 = vpop.eup %9784 }
0x1394   :  { %9427 = vmatmul.mubr.msk.bf16.vlgmr.msra.gmra.mxu1 %vm647_vm4, %v7156_v39  ;;  %v7150_v28 = vmul.f32 %v9785_v11, %v11512_v49 }
0x1395   :  { %9437 = vmatpush3.bf16.msra.mxu1 %v7501_v23  ;;  %v3874_v26 = vpop.permute.xlu1 %3873  ;;  %v2947_v27 = vpop.permute.xlu0 %2946  ;;  %9438 = vmatprep.mubr.msk.bf16.mxu1 %vm9827_vm1, %v11999_v60 }
0x1396   :  { %3895 = vst.msk [vmem:[#allocation2 + $0x18] sm:$0xff] %vm3891_vm7, %v3874_v26  ;;  %v7158_v50 = vpack.c.bf16 %v7150_v28, %v7150_v28  ;;  %9445 = vmatpush3.bf16.msra.mxu0 %v9523_v5 }
0x1397   :  { %2971 = vst.msk [vmem:[#allocation2] sm:$0xff] %vm2970_vm6, %v2947_v27 }
0x1399   :  { %v4791_v12 = vpop.permute.xlu1 %4790  ;;  %v2951_v62 = vpop.permute.xlu0 %2950 }
0x139a   :  { %4814 = vst.msk [vmem:[#allocation2 + $0x8] sm:$0xff] %vm4812_vm8, %v4791_v12 }
0x139b   :  { %2973 = vst.msk [vmem:[#allocation2 + $0x10] sm:$0xff] %vm2970_vm6, %v2951_v62 }
0x139c   :  { %9439 = vmatmul.mubr.msk.bf16.vlgmr.msra.gmra.mxu1 %vm647_vm4, %v7158_v50 }
0x139d   :  { %v4795_v47 = vpop.permute.xlu1 %4794  ;;  %v3868_v51 = vpop.permute.xlu0 %3867 }
0x139e   :  { %4816 = vst.msk [vmem:[#allocation2 + $0x18] sm:$0xff] %vm4812_vm8, %v4795_v47 }
0x139f   :  { %3892 = vst.msk [vmem:[#allocation2] sm:$0xff] %vm3891_vm7, %v3868_v51 }
0x13a1   :  { %v5712_v60 = vpop.permute.xlu1 %5711  ;;  %v3872_v49 = vpop.permute.xlu0 %3871 }
0x13a2   :  { %5735 = vst.msk [vmem:[#allocation2 + $0x8] sm:$0xff] %vm5733_vm9, %v5712_v60 }
0x13a3   :  { %3894 = vst.msk [vmem:[#allocation2 + $0x10] sm:$0xff] %vm3891_vm7, %v3872_v49 }
0x13a5   :  { %v5716_v2 = vpop.permute.xlu1 %5715  ;;  %v4789_v17 = vpop.permute.xlu0 %4788 }
0x13a6   :  { %5737 = vst.msk [vmem:[#allocation2 + $0x18] sm:$0xff] %vm5733_vm9, %v5716_v2 }
0x13a7   :  { %4813 = vst.msk [vmem:[#allocation2] sm:$0xff] %vm4812_vm8, %v4789_v17 }
0x13a9   :  { %v6633_v45 = vpop.permute.xlu1 %6632  ;;  %v4793_v20 = vpop.permute.xlu0 %4792 }
0x13aa   :  { %6656 = vst.msk [vmem:[#allocation2 + $0x8] sm:$0xff] %vm6654_vm10, %v6633_v45 }
0x13ab   :  { %4815 = vst.msk [vmem:[#allocation2 + $0x10] sm:$0xff] %vm4812_vm8, %v4793_v20 }
0x13ad   :  { %v6637_v61 = vpop.permute.xlu1 %6636  ;;  %v5710_v43 = vpop.permute.xlu0 %5709 }
0x13ae   :  { %6658 = vst.msk [vmem:[#allocation2 + $0x18] sm:$0xff] %vm6654_vm10, %v6637_v61 }
0x13af   :  { %5734 = vst.msk [vmem:[#allocation2] sm:$0xff] %vm5733_vm9, %v5710_v43 }
0x13b1   :  { %v2036_v30 = vpop.permute.xlu1 %2035  ;;  %v5714_v0 = vpop.permute.xlu0 %5713 }
0x13b2   :  { %2055 = vst.msk [vmem:[#allocation2 + $0x28] sm:$0xff] %vm2049_vm5, %v2036_v30 }
0x13b3   :  { %5736 = vst.msk [vmem:[#allocation2 + $0x10] sm:$0xff] %vm5733_vm9, %v5714_v0 }
0x13b5   :  { %v2040_v14 = vpop.permute.xlu1 %2039  ;;  %v6631_v32 = vpop.permute.xlu0 %6630 }
0x13b6   :  { %2057 = vst.msk [vmem:[#allocation2 + $0x38] sm:$0xff] %vm2049_vm5, %v2040_v14 }
0x13b7   :  { %6655 = vst.msk [vmem:[#allocation2] sm:$0xff] %vm6654_vm10, %v6631_v32 }
0x13b9   :  { %v2957_v57 = vpop.permute.xlu1 %2956  ;;  %v6635_v19 = vpop.permute.xlu0 %6634 }
0x13ba   :  { %2976 = vst.msk [vmem:[#allocation2 + $0x28] sm:$0xff] %vm2970_vm6, %v2957_v57 }
0x13bb   :  { %6657 = vst.msk [vmem:[#allocation2 + $0x10] sm:$0xff] %vm6654_vm10, %v6635_v19 }
0x13bd   :  { %v2961_v41 = vpop.permute.xlu1 %2960  ;;  %v2034_v52 = vpop.permute.xlu0 %2033 }
0x13be   :  { %2978 = vst.msk [vmem:[#allocation2 + $0x38] sm:$0xff] %vm2970_vm6, %v2961_v41 }
0x13bf   :  { %2054 = vst.msk [vmem:[#allocation2 + $0x20] sm:$0xff] %vm2049_vm5, %v2034_v52 }
0x13c1   :  { %v3878_v46 = vpop.permute.xlu1 %3877  ;;  %v2038_v56 = vpop.permute.xlu0 %2037 }
0x13c2   :  { %3897 = vst.msk [vmem:[#allocation2 + $0x28] sm:$0xff] %vm3891_vm7, %v3878_v46 }
0x13c3   :  { %2056 = vst.msk [vmem:[#allocation2 + $0x30] sm:$0xff] %vm2049_vm5, %v2038_v56 }
0x13c5   :  { %v3882_v44 = vpop.permute.xlu1 %3881  ;;  %v2955_v59 = vpop.permute.xlu0 %2954 }
0x13c6   :  { %3899 = vst.msk [vmem:[#allocation2 + $0x38] sm:$0xff] %vm3891_vm7, %v3882_v44 }
0x13c7   :  { %2975 = vst.msk [vmem:[#allocation2 + $0x20] sm:$0xff] %vm2970_vm6, %v2955_v59 }
0x13c9   :  { %v4799_v6 = vpop.permute.xlu1 %4798  ;;  %v2959_v21 = vpop.permute.xlu0 %2958 }
0x13ca   :  { %4818 = vst.msk [vmem:[#allocation2 + $0x28] sm:$0xff] %vm4812_vm8, %v4799_v6 }
0x13cb   :  { %2977 = vst.msk [vmem:[#allocation2 + $0x30] sm:$0xff] %vm2970_vm6, %v2959_v21 }
0x13cd   :  { %v4803_v63 = vpop.permute.xlu1 %4802  ;;  %v3876_v1 = vpop.permute.xlu0 %3875 }
0x13ce   :  { %4820 = vst.msk [vmem:[#allocation2 + $0x38] sm:$0xff] %vm4812_vm8, %v4803_v63 }
0x13cf   :  { %3896 = vst.msk [vmem:[#allocation2 + $0x20] sm:$0xff] %vm3891_vm7, %v3876_v1 }
0x13d1   :  { %v5720_v10 = vpop.permute.xlu1 %5719  ;;  %v3880_v53 = vpop.permute.xlu0 %3879 }
0x13d2   :  { %5739 = vst.msk [vmem:[#allocation2 + $0x28] sm:$0xff] %vm5733_vm9, %v5720_v10 }
0x13d3   :  { %3898 = vst.msk [vmem:[#allocation2 + $0x30] sm:$0xff] %vm3891_vm7, %v3880_v53  ;;  %v11731_v53 = vld [vmem:[%s11979_s8] sm:$0x3f] }
0x13d5   :  { %v5724_v9 = vpop.permute.xlu1 %5723  ;;  %v4797_v25 = vpop.permute.xlu0 %4796 }
0x13d6   :  { %5741 = vst.msk [vmem:[#allocation2 + $0x38] sm:$0xff] %vm5733_vm9, %v5724_v9  ;;  %v12024_v9 = vld [vmem:[#allocation4_spill] sm:$0xff] }
0x13d7   :  { %4817 = vst.msk [vmem:[#allocation2 + $0x20] sm:$0xff] %vm4812_vm8, %v4797_v25  ;;  %v7603_v25 = vrot.slane %v11731_v53, %v12024_v9  ;;  %v9525_v9 = vld [vmem:[%s11980_s5] sm:$0xff]  }
0x13d9   :  { %v6641_v4 = vpop.permute.xlu1 %6640  ;;  %v4801_v42 = vpop.permute.xlu0 %4800 }
0x13da   :  { %6660 = vst.msk [vmem:[#allocation2 + $0x28] sm:$0xff] %vm6654_vm10, %v6641_v4 }
0x13db   :  { %4819 = vst.msk [vmem:[#allocation2 + $0x30] sm:$0xff] %vm4812_vm8, %v4801_v42 }
0x13dd   :  { %v6645_v31 = vpop.permute.xlu1 %6644  ;;  %v5718_v13 = vpop.permute.xlu0 %5717 }
0x13de   :  { %6662 = vst.msk [vmem:[#allocation2 + $0x38] sm:$0xff] %vm6654_vm10, %v6645_v31 }
0x13df   :  { %5738 = vst.msk [vmem:[#allocation2 + $0x20] sm:$0xff] %vm5733_vm9, %v5718_v13 }
0x13e1   :  { %v5722_v55 = vpop.permute.xlu0 %5721 }
0x13e2   :  { %5740 = vst.msk [vmem:[#allocation2 + $0x30] sm:$0xff] %vm5733_vm9, %v5722_v55 }
0x13e5   :  { %v6639_v3 = vpop.permute.xlu0 %6638 }
0x13e6   :  { %6659 = vst.msk [vmem:[#allocation2 + $0x20] sm:$0xff] %vm6654_vm10, %v6639_v3  ;;  %v9818_v3 = vld [vmem:[%s11975_s0] sm:$0xff] }
0x13e9   :  { %v6643_v15 = vpop.permute.xlu0 %6642 }
0x13ea   :  { %6661 = vst.msk [vmem:[#allocation2 + $0x30] sm:$0xff] %vm6654_vm10, %v6643_v15 }
0x140b   :  { %v7201_v54 = vpop.f32.mrf.mxu0 }
0x140c   :  { %7551 = vrot.lane.b32.xlu0 %v7201_v54, %s9858_s14 }
0x140d   :  { %v9398_v16 = vpop.f32.mrf.mxu0 }
0x140e   :  { %v9819_v16 = vld [vmem:[%s11975_s0 + $0x10] sm:$0xff] }
0x140f   :  { %v7204_v34 = vpop.f32.mrf.mxu0 }
0x1411   :  { %v9399_v8 = vpop.f32.mrf.mxu0 }
0x1413   :  { %v7297_v37 = vpop.f32.mrf.mxu0 }
0x1414   :  { %7555 = vrot.lane.b32.xlu0 %v7297_v37, %s9858_s14 }
0x1415   :  { %v9410_v40 = vpop.f32.mrf.mxu0 }
0x1416   :  { %v9820_v40 = vld [vmem:[%s11975_s0 + $0x8] sm:$0xff] }
0x1417   :  { %v7249_v18 = vpop.f32.mrf.mxu1  ;;  %v7300_v29 = vpop.f32.mrf.mxu0 }
0x1418   :  { %7553 = vrot.lane.b32.xlu1 %v7249_v18, %s9858_s14  ;;  %v9821_v18 = vld [vmem:[%s11975_s0 + $0x18] sm:$0xff] }
0x1419   :  { %v9404_v33 = vpop.f32.mrf.mxu1  ;;  %v9411_v24 = vpop.f32.mrf.mxu0 }
0x141b   :  { %v7252_v35 = vpop.f32.mrf.mxu1 }
0x141d   :  { %v9405_v36 = vpop.f32.mrf.mxu1 }
0x141f   :  { %v7345_v48 = vpop.f32.mrf.mxu1 }
0x1420   :  { %7557 = vrot.lane.b32.xlu1 %v7345_v48, %s9858_s14 }
0x1421   :  { %v9416_v7 = vpop.f32.mrf.mxu1 }
0x1423   :  { %v7348_v38 = vpop.f32.mrf.mxu1 }
0x1425   :  { %v9417_v58 = vpop.f32.mrf.mxu1 }
0x1448   :  { %v7393_v39 = vpop.f32.mrf.mxu0 }
0x1449   :  { %7559 = vrot.lane.b32.xlu0 %v7393_v39, %s9858_s14  ;;  %v9822_v39 = vld [vmem:[%s11975_s0 + $0x20] sm:$0xff] }
0x144a   :  { %v9422_v11 = vpop.f32.mrf.mxu0 }
0x144c   :  { %v7396_v23 = vpop.f32.mrf.mxu0 }
0x144e   :  { %v9423_v26 = vpop.f32.mrf.mxu0 }
0x144f   :  { %v9823_v26 = vld [vmem:[%s11975_s0 + $0x30] sm:$0xff] }
0x1450   :  { %v7489_v27 = vpop.f32.mrf.mxu0 }
0x1451   :  { %7563 = vrot.lane.b32.xlu0 %v7489_v27, %s9858_s14 }
0x1452   :  { %v9434_v28 = vpop.f32.mrf.mxu0 }
0x1454   :  { %v7441_v12 = vpop.f32.mrf.mxu1  ;;  %v7492_v62 = vpop.f32.mrf.mxu0 }
0x1455   :  { %7561 = vrot.lane.b32.xlu1 %v7441_v12, %s9858_s14 }
0x1456   :  { %v9428_v50 = vpop.f32.mrf.mxu1  ;;  %v9435_v47 = vpop.f32.mrf.mxu0 }
0x1457   :  { %v9824_v50 = vld [vmem:[%s11975_s0 + $0x28] sm:$0xff] }
0x1458   :  { %v7444_v51 = vpop.f32.mrf.mxu1 }
0x1459   :  { %v9825_v51 = vld [vmem:[%s11975_s0 + $0x38] sm:$0xff] }
0x145a   :  { %v9429_v60 = vpop.f32.mrf.mxu1 }
0x145c   :  { %v7537_v49 = vpop.f32.mrf.mxu1 }
0x145d   :  { %7565 = vrot.lane.b32.xlu1 %v7537_v49, %s9858_s14 }
0x145e   :  { %v9440_v2 = vpop.f32.mrf.mxu1 }
0x1460   :  { %v7540_v17 = vpop.f32.mrf.mxu1 }
0x1462   :  { %v9441_v45 = vpop.f32.mrf.mxu1 }
0x147e   :  { %v7552_v20 = vpop.permute.xlu0 %7551 }
0x147f   :  { %7576 = vst.msk [vmem:[#allocation2] sm:$0xff] %vm7575_vm11, %v7552_v20 }
0x1486   :  { %v7556_v61 = vpop.permute.xlu0 %7555  ;;  %v7584_v0 = vld [vmem:[#allocation2] sm:$0xff] }
0x1487   :  { %7578 = vst.msk [vmem:[#allocation2 + $0x10] sm:$0xff] %vm7575_vm11, %v7556_v61 }
0x148a   :  { %v7554_v43 = vpop.permute.xlu1 %7553 }
0x148b   :  { %7577 = vst.msk [vmem:[#allocation2 + $0x8] sm:$0xff] %vm7575_vm11, %v7554_v43 }
0x148e   :  { %v7586_v57 = vld [vmem:[#allocation2 + $0x10] sm:$0xff] }
0x1492   :  { %v7558_v30 = vpop.permute.xlu1 %7557  ;;  %v7585_v14 = vld [vmem:[#allocation2 + $0x8] sm:$0xff] }
0x1493   :  { %7579 = vst.msk [vmem:[#allocation2 + $0x18] sm:$0xff] %vm7575_vm11, %v7558_v30  ;;  %v7592_v32 = vpack.c.bf16 %v7585_v14, %v7584_v0 }
0x1495   :  { %9446 = vmatprep.mubr.msk.bf16.mxu0 %vm120_vm0, %v7592_v32 }
0x149a   :  { %v7587_v19 = vld [vmem:[#allocation2 + $0x18] sm:$0xff] }
0x149b   :  { %v7593_v41 = vpack.c.bf16 %v7587_v19, %v7586_v57 }
0x149d   :  { %9447 = vmatmul.mubr.msk.bf16.vlgmr.msra.gmra.mxu0 %vm120_vm0, %v7593_v41 }
0x14bb   :  { %v7560_v52 = vpop.permute.xlu0 %7559 }
0x14bc   :  { %7580 = vst.msk [vmem:[#allocation2 + $0x20] sm:$0xff] %vm7575_vm11, %v7560_v52 }
0x14c3   :  { %v7564_v46 = vpop.permute.xlu0 %7563  ;;  %v7588_v59 = vld [vmem:[#allocation2 + $0x20] sm:$0xff] }
0x14c4   :  { %7582 = vst.msk [vmem:[#allocation2 + $0x30] sm:$0xff] %vm7575_vm11, %v7564_v46 }
0x14c7   :  { %v7562_v56 = vpop.permute.xlu1 %7561 }
0x14c8   :  { %7581 = vst.msk [vmem:[#allocation2 + $0x28] sm:$0xff] %vm7575_vm11, %v7562_v56 }
0x14cb   :  { %v7590_v63 = vld [vmem:[#allocation2 + $0x30] sm:$0xff] }
0x14cf   :  { %v7566_v44 = vpop.permute.xlu1 %7565  ;;  %v7589_v6 = vld [vmem:[#allocation2 + $0x28] sm:$0xff] }
0x14d0   :  { %7583 = vst.msk [vmem:[#allocation2 + $0x38] sm:$0xff] %vm7575_vm11, %v7566_v44  ;;  %v7594_v21 = vpack.c.bf16 %v7589_v6, %v7588_v59 }
0x14d2   :  { %9450 = vmatprep.mubr.msk.bf16.mxu0 %vm120_vm0, %v7594_v21 }
0x14d7   :  { %v7591_v1 = vld [vmem:[#allocation2 + $0x38] sm:$0xff] }
0x14d8   :  { %v7595_v10 = vpack.c.bf16 %v7591_v1, %v7590_v63 }
0x14da   :  { %9451 = vmatmul.mubr.msk.bf16.gmra.mxu0 %vm120_vm0, %v7595_v10  ;;  %v9524_v10 = vld [vmem:[%s11980_s5 + $0x8] sm:$0xff]  }
0x14db   :  { %9454 = vmatprep.subr.bf16.mxu1 %v9524_v10 }
0x14dc   :  { %9455 = vmatpush3.bf16.msra.mxu1 %v9524_v10 }
0x14dd   :  { %9456 = vmatprep.subr.bf16.mxu1 %v9525_v9 }
0x14e0   :  { %9457 = vmatpush3.bf16.msra.mxu1 %v9525_v9 }
0x155d   :  { %v9448_v4 = vpop.f32.mrf.mxu0 }
0x155e   :  { %v7671_v31 = vadd.f32 %v9448_v4, %v7603_v25 }
0x155f   :  { %v7662_v42 = vpop.f32.mrf.mxu0 }
0x1560   :  { %v7663_v13 = vadd.f32 %v7662_v42, %v7603_v25  ;;  %v7695_v34 = vadd.f32 %v9819_v16, %v7671_v31 }
0x1561   :  { %v9449_v55 = vpop.f32.mrf.mxu0 }
0x1562   :  { %v7693_v15 = vadd.f32 %v9818_v3, %v7663_v13  ;;  %v7674_v8 = vadd.f32 %v9449_v55, %v7603_v25  ;;  %v7707_v24 = vsel %vm120_vm0, %v7695_v34, 0.0 }
0x1563   :  { %v7665_v54 = vpop.f32.mrf.mxu0 }
0x1564   :  { %v7666_v37 = vadd.f32 %v7665_v54, %v7603_v25  ;;  %v7701_v22 = vsel %vm120_vm0, %v7693_v15, 0.0  ;;  %v7696_v29 = vadd.f32 %v9821_v18, %v7674_v8 }
0x1565   :  { %7702 = vadd.xlane.f32.xlu0 %v7701_v22 }
0x1566   :  { %v7694_v5 = vadd.f32 %v9820_v40, %v7666_v37  ;;  %v7710_v35 = vsel %vm120_vm0, %v7696_v29, 0.0 }
0x1568   :  { %v7704_v33 = vsel %vm120_vm0, %v7694_v5, 0.0 }
0x1569   :  { %7705 = vadd.xlane.f32.xlu1 %v7704_v33  ;;  %7708 = vadd.xlane.f32.xlu0 %v7707_v24 }
0x156d   :  { %7711 = vadd.xlane.f32.xlu0 %v7710_v35  ;;  %v9526_v35 = vld [vmem:[%s11981_s7 + $0x18] sm:$0xff]  }
0x156e   :  { %9466 = vmatprep.subr.bf16.mxu0 %v9526_v35 }
0x156f   :  { %9467 = vmatpush3.bf16.msra.mxu0 %v9526_v35 }
0x159a   :  { %v9452_v36 = vpop.f32.mrf.mxu0 }
0x159b   :  { %v7687_v7 = vadd.f32 %v9452_v36, %v7603_v25 }
0x159c   :  { %v7678_v48 = vpop.f32.mrf.mxu0 }
0x159d   :  { %v7679_v38 = vadd.f32 %v7678_v48, %v7603_v25  ;;  %v7699_v27 = vadd.f32 %v9823_v26, %v7687_v7 }
0x159e   :  { %v9453_v58 = vpop.f32.mrf.mxu0 }
0x159f   :  { %v7697_v11 = vadd.f32 %v9822_v39, %v7679_v38  ;;  %v7690_v28 = vadd.f32 %v9453_v58, %v7603_v25  ;;  %v7719_v2 = vsel %vm120_vm0, %v7699_v27, 0.0 }
0x15a0   :  { %v7681_v23 = vpop.f32.mrf.mxu0 }
0x15a1   :  { %v7682_v12 = vadd.f32 %v7681_v23, %v7603_v25  ;;  %v7713_v62 = vsel %vm120_vm0, %v7697_v11, 0.0  ;;  %v7700_v60 = vadd.f32 %v9825_v51, %v7690_v28 }
0x15a2   :  { %7714 = vadd.xlane.f32.xlu1 %v7713_v62  ;;  %v12025_v62 = vld [vmem:[#allocation3_spill] sm:$0xff] }
0x15a3   :  { %v7698_v47 = vadd.f32 %v9824_v50, %v7682_v12  ;;  %v7722_v17 = vsel %vm120_vm0, %v7700_v60, 0.0  ;;  %v7808_v50 = vsub.s32 1, %v12025_v62 }
0x15a5   :  { %v7716_v49 = vsel %vm120_vm0, %v7698_v47, 0.0  ;;  %v7809_v51 = vrot.slane %v11731_v53, %v7808_v50 }
0x15a6   :  { %7717 = vadd.xlane.f32.xlu0 %v7716_v49  ;;  %7720 = vadd.xlane.f32.xlu1 %v7719_v2  ;;  %v7820_v49 = vsub.s32 2, %v12025_v62 }
0x15aa   :  { %7723 = vadd.xlane.f32.xlu0 %v7722_v17 }
0x15ee   :  { %v7703_v45 = vpop.xlane.xlu0 %7702 }
0x15ef   :  { %v7726_v20 = vmul.f32 0.03125, %v7703_v45 }
0x15f1   :  { %v11767_v61 = vsub.f32 %v7693_v15, %v7726_v20 }
0x15f2   :  { %v7706_v43 = vpop.xlane.xlu1 %7705  ;;  %v7709_v30 = vpop.xlane.xlu0 %7708 }
0x15f3   :  { %v7727_v0 = vmul.f32 0.03125, %v7706_v43  ;;  %v7728_v14 = vmul.f32 0.03125, %v7709_v30  ;;  %v7742_v32 = vmul.f32 %v11767_v61, %v11767_v61  ;;  %v7821_v30 = vrot.slane %v11731_v53, %v7820_v49 }
0x15f5   :  { %v11771_v57 = vsub.f32 %v7694_v5, %v7727_v0  ;;  %v11773_v19 = vsub.f32 %v7695_v34, %v7728_v14  ;;  %v7750_v41 = vsel %vm120_vm0, %v7742_v32, 0.0 }
0x15f6   :  { %7751 = vadd.xlane.f32.xlu1 %v7750_v41  ;;  %v7712_v52 = vpop.xlane.xlu0 %7711 }
0x15f7   :  { %v7729_v46 = vmul.f32 0.03125, %v7712_v52  ;;  %v7743_v56 = vmul.f32 %v11771_v57, %v11771_v57  ;;  %v7744_v44 = vmul.f32 %v11773_v19, %v11773_v19 }
0x15f9   :  { %v11780_v59 = vsub.f32 %v7696_v29, %v7729_v46  ;;  %v7753_v6 = vsel %vm120_vm0, %v7743_v56, 0.0  ;;  %v7756_v21 = vsel %vm120_vm0, %v7744_v44, 0.0 }
0x15fa   :  { %7754 = vadd.xlane.f32.xlu0 %v7753_v6  ;;  %7757 = vadd.xlane.f32.xlu1 %v7756_v21 }
0x15fb   :  { %v7745_v63 = vmul.f32 %v11780_v59, %v11780_v59 }
0x15fd   :  { %v7759_v1 = vsel %vm120_vm0, %v7745_v63, 0.0 }
0x15fe   :  { %7760 = vadd.xlane.f32.xlu0 %v7759_v1 }
0x162b   :  { %v7715_v25 = vpop.xlane.xlu1 %7714 }
0x162c   :  { %v7730_v4 = vmul.f32 0.03125, %v7715_v25 }
0x162e   :  { %v11793_v42 = vsub.f32 %v7697_v11, %v7730_v4 }
0x162f   :  { %v7721_v31 = vpop.xlane.xlu1 %7720  ;;  %v7718_v13 = vpop.xlane.xlu0 %7717 }
0x1630   :  { %v7732_v55 = vmul.f32 0.03125, %v7721_v31  ;;  %v7731_v3 = vmul.f32 0.03125, %v7718_v13  ;;  %v7746_v15 = vmul.f32 %v11793_v42, %v11793_v42 }
0x1632   :  { %v11797_v54 = vsub.f32 %v7699_v27, %v7732_v55  ;;  %v11799_v16 = vsub.f32 %v7698_v47, %v7731_v3  ;;  %v7762_v34 = vsel %vm120_vm0, %v7746_v15, 0.0 }
0x1633   :  { %7763 = vadd.xlane.f32.xlu1 %v7762_v34  ;;  %v7724_v8 = vpop.xlane.xlu0 %7723 }
0x1634   :  { %v7733_v37 = vmul.f32 0.03125, %v7724_v8  ;;  %v7748_v22 = vmul.f32 %v11797_v54, %v11797_v54  ;;  %v7747_v40 = vmul.f32 %v11799_v16, %v11799_v16 }
0x1636   :  { %v11806_v5 = vsub.f32 %v7700_v60, %v7733_v37  ;;  %v7768_v18 = vsel %vm120_vm0, %v7748_v22, 0.0  ;;  %v7765_v29 = vsel %vm120_vm0, %v7747_v40, 0.0 }
0x1637   :  { %7769 = vadd.xlane.f32.xlu1 %v7768_v18  ;;  %7766 = vadd.xlane.f32.xlu0 %v7765_v29 }
0x1638   :  { %v7749_v33 = vmul.f32 %v11806_v5, %v11806_v5 }
0x163a   :  { %v7771_v24 = vsel %vm120_vm0, %v7749_v33, 0.0 }
0x163b   :  { %7772 = vadd.xlane.f32.xlu0 %v7771_v24 }
0x167f   :  { %v7752_v36 = vpop.xlane.xlu1 %7751 }
0x1680   :  { %v7774_v48 = vmul.f32 0.03125, %v7752_v36 }
0x1682   :  { %v7782_v7 = vadd.f32 1e-05, %v7774_v48 }
0x1683   :  { %v7758_v38 = vpop.xlane.xlu1 %7757  ;;  %v7755_v58 = vpop.xlane.xlu0 %7754 }
0x1684   :  { %9786 = vrsqrt.f32 %v7782_v7  ;;  %v7776_v39 = vmul.f32 0.03125, %v7758_v38  ;;  %v7775_v11 = vmul.f32 0.03125, %v7755_v58  ;;  %v9529_v58 = vld [vmem:[%s11981_s7] sm:$0xff]  }
0x1686   :  { %v7784_v23 = vadd.f32 1e-05, %v7776_v39  ;;  %v7783_v26 = vadd.f32 1e-05, %v7775_v11 }
0x1687   :  { %v7761_v27 = vpop.xlane.xlu0 %7760 }
0x1688   :  { %9788 = vrsqrt.f32 %v7784_v23  ;;  %v7777_v28 = vmul.f32 0.03125, %v7761_v27  ;;  %v8357_v23 = vld [vmem:[%s11982_s6] ss:$0 sm:$0xff] }
0x1689   :  { %9790 = vrsqrt.f32 %v7783_v26 }
0x168a   :  { %v7785_v12 = vadd.f32 1e-05, %v7777_v28 }
0x168c   :  { %9792 = vrsqrt.f32 %v7785_v12 }
0x1691   :  { %v9787_v47 = vpop.eup %9786 }
0x1692   :  { %v7798_v60 = vmul.f32 %v9787_v47, %v11767_v61 }
0x1694   :  { %v7810_v43 = vmul.f32 %v7809_v51, %v7798_v60 }
0x1695   :  { %v9789_v2 = vpop.eup %9788 }
0x1696   :  { %v9791_v17 = vpop.eup %9790  ;;  %v7800_v45 = vmul.f32 %v9789_v2, %v11773_v19  ;;  %v11824_v52 = vadd.f32 %v7821_v30, %v7810_v43 }
0x1697   :  { %v7799_v20 = vmul.f32 %v9791_v17, %v11771_v57 }
0x1698   :  { %v7812_v32 = vmul.f32 %v7809_v51, %v7800_v45 }
0x1699   :  { %v9793_v0 = vpop.eup %9792  ;;  %v7811_v14 = vmul.f32 %v7809_v51, %v7799_v20 }
0x169a   :  { %v7801_v41 = vmul.f32 %v9793_v0, %v11780_v59  ;;  %v11830_v44 = vadd.f32 %v7821_v30, %v7812_v32 }
0x169b   :  { %v11826_v46 = vadd.f32 %v7821_v30, %v7811_v14 }
0x169c   :  { %v7813_v61 = vmul.f32 %v7809_v51, %v7801_v41 }
0x169d   :  { %v7830_v56 = vpack.c.bf16 %v11826_v46, %v11824_v52 }
0x169e   :  { %v11832_v19 = vadd.f32 %v7821_v30, %v7813_v61 }
0x169f   :  { %9458 = vmatprep.mubr.msk.bf16.mxu1 %vm120_vm0, %v7830_v56 }
0x16a0   :  { %v7831_v57 = vpack.c.bf16 %v11832_v19, %v11830_v44 }
0x16a2   :  { %9459 = vmatmul.mubr.msk.bf16.vlgmr.msra.gmra.mxu1 %vm120_vm0, %v7831_v57 }
0x16bc   :  { %v7764_v59 = vpop.xlane.xlu1 %7763 }
0x16bd   :  { %v7778_v6 = vmul.f32 0.03125, %v7764_v59 }
0x16bf   :  { %v7786_v21 = vadd.f32 1e-05, %v7778_v6 }
0x16c0   :  { %v7770_v63 = vpop.xlane.xlu1 %7769  ;;  %v7767_v1 = vpop.xlane.xlu0 %7766 }
0x16c1   :  { %9794 = vrsqrt.f32 %v7786_v21  ;;  %v7780_v10 = vmul.f32 0.03125, %v7770_v63  ;;  %v7779_v9 = vmul.f32 0.03125, %v7767_v1  ;;  %v7956_v1 = vsub.s32 3, %v12025_v62 }
0x16c3   :  { %v7788_v25 = vadd.f32 1e-05, %v7780_v10  ;;  %v7787_v4 = vadd.f32 1e-05, %v7779_v9  ;;  %v7957_v10 = vrot.slane %v11731_v53, %v7956_v1 }
0x16c4   :  { %v7773_v31 = vpop.xlane.xlu0 %7772 }
0x16c5   :  { %9796 = vrsqrt.f32 %v7788_v25  ;;  %v7781_v13 = vmul.f32 0.03125, %v7773_v31 }
0x16c6   :  { %9798 = vrsqrt.f32 %v7787_v4 }
0x16c7   :  { %v7789_v55 = vadd.f32 1e-05, %v7781_v13 }
0x16c9   :  { %9800 = vrsqrt.f32 %v7789_v55 }
0x16ce   :  { %v9795_v3 = vpop.eup %9794 }
0x16cf   :  { %v7802_v15 = vmul.f32 %v9795_v3, %v11793_v42 }
0x16d1   :  { %v7814_v40 = vmul.f32 %v7809_v51, %v7802_v15 }
0x16d2   :  { %v9797_v34 = vpop.eup %9796 }
0x16d3   :  { %v9799_v8 = vpop.eup %9798  ;;  %v7804_v37 = vmul.f32 %v9797_v34, %v11797_v54  ;;  %v11844_v36 = vadd.f32 %v7821_v30, %v7814_v40 }
0x16d4   :  { %v7803_v22 = vmul.f32 %v9799_v8, %v11799_v16  ;;  %v9527_v16 = vld [vmem:[%s11981_s7 + $0x10] sm:$0xff]  }
0x16d5   :  { %v7816_v18 = vmul.f32 %v7809_v51, %v7804_v37  ;;  %9468 = vmatprep.subr.bf16.mxu0 %v9527_v16 }
0x16d6   :  { %v9801_v29 = vpop.eup %9800  ;;  %v7815_v33 = vmul.f32 %v7809_v51, %v7803_v22  ;;  %9469 = vmatpush3.bf16.msra.mxu0 %v9527_v16 }
0x16d7   :  { %v7805_v24 = vmul.f32 %v9801_v29, %v11806_v5  ;;  %v11842_v35 = vadd.f32 %v7821_v30, %v7816_v18  ;;  %v9528_v5 = vld [vmem:[%s11981_s7 + $0x8] sm:$0xff]  }
0x16d8   :  { %v11846_v48 = vadd.f32 %v7821_v30, %v7815_v33  ;;  %9470 = vmatprep.subr.bf16.mxu0 %v9528_v5 }
0x16d9   :  { %v7817_v7 = vmul.f32 %v7809_v51, %v7805_v24 }
0x16da   :  { %v7832_v42 = vpack.c.bf16 %v11846_v48, %v11844_v36  ;;  %9471 = vmatpush3.bf16.msra.mxu0 %v9528_v5 }
0x16db   :  { %v11850_v38 = vadd.f32 %v7821_v30, %v7817_v7  ;;  %9472 = vmatprep.subr.bf16.mxu0 %v9529_v58 }
0x16dc   :  { %9462 = vmatprep.mubr.msk.bf16.mxu1 %vm120_vm0, %v7832_v42 }
0x16dd   :  { %v7833_v54 = vpack.c.bf16 %v11850_v38, %v11842_v35 }
0x16de   :  { %9473 = vmatpush3.bf16.msra.mxu0 %v9529_v58 }
0x16df   :  { %9463 = vmatmul.mubr.msk.bf16.gmra.mxu1 %vm120_vm0, %v7833_v54 }
0x1762   :  { %v9460_v39 = vpop.f32.mrf.mxu1 }
0x1763   :  { %v7912_v12 = vadd.f32 %v9460_v39, %v8357_v23 }
0x1764   :  { %v7903_v11 = vpop.f32.mrf.mxu1 }
0x1765   :  { %v7904_v27 = vadd.f32 %v8357_v23, %v7903_v11  ;;  %v7936_v2 = vmax.f32 %v7912_v12, 0.0 }
0x1766   :  { %v9461_v26 = vpop.f32.mrf.mxu1 }
0x1767   :  { %v7915_v28 = vadd.f32 %v9461_v26, %v8357_v23  ;;  %v7934_v60 = vmax.f32 %v7904_v27, 0.0 }
0x1768   :  { %v7906_v50 = vpop.f32.mrf.mxu1 }
0x1769   :  { %v7907_v47 = vadd.f32 %v8357_v23, %v7906_v50  ;;  %v7937_v51 = vmax.f32 %v7915_v28, 0.0 }
0x176b   :  { %v7935_v49 = vmax.f32 %v7907_v47, 0.0  ;;  %v7943_v45 = vpack.c.bf16 %v7937_v51, %v7936_v2 }
0x176d   :  { %v7942_v17 = vpack.c.bf16 %v7935_v49, %v7934_v60 }
0x176f   :  { %9474 = vmatprep.mubr.msk.bf16.mxu0 %vm7982_vm12, %v7942_v17 }
0x1770   :  { %9475 = vmatmul.mubr.msk.bf16.vlgmr.msra.gmra.mxu0 %vm7982_vm12, %v7943_v45 }
0x179f   :  { %v9464_v20 = vpop.f32.mrf.mxu1 }
0x17a0   :  { %v7928_v32 = vadd.f32 %v9464_v20, %v8357_v23 }
0x17a1   :  { %v7919_v43 = vpop.f32.mrf.mxu1 }
0x17a2   :  { %v7920_v0 = vadd.f32 %v8357_v23, %v7919_v43  ;;  %v7940_v6 = vmax.f32 %v7928_v32, 0.0 }
0x17a3   :  { %v9465_v30 = vpop.f32.mrf.mxu1 }
0x17a4   :  { %v7931_v14 = vadd.f32 %v9465_v30, %v8357_v23  ;;  %v7938_v57 = vmax.f32 %v7920_v0, 0.0 }
0x17a5   :  { %v7922_v41 = vpop.f32.mrf.mxu1 }
0x17a6   :  { %v7923_v61 = vadd.f32 %v8357_v23, %v7922_v41  ;;  %v7941_v56 = vmax.f32 %v7931_v14, 0.0 }
0x17a8   :  { %v7939_v59 = vmax.f32 %v7923_v61, 0.0  ;;  %v7945_v63 = vpack.c.bf16 %v7941_v56, %v7940_v6 }
0x17aa   :  { %v7944_v21 = vpack.c.bf16 %v7939_v59, %v7938_v57 }
0x17ac   :  { %9478 = vmatprep.mubr.msk.bf16.mxu0 %vm7982_vm12, %v7944_v21 }
0x17ad   :  { %9479 = vmatmul.mubr.msk.bf16.gmra.mxu0 %vm7982_vm12, %v7945_v63 }
0x1830   :  { %v9476_v9 = vpop.f32.mrf.mxu0 }
0x1831   :  { %v8038_v25 = vadd.f32 %v9476_v9, %v7957_v10 }
0x1832   :  { %v8029_v4 = vpop.f32.mrf.mxu0 }
0x1833   :  { %v8062_v31 = vadd.f32 %v8038_v25, %v11830_v44  ;;  %v8030_v13 = vadd.f32 %v8029_v4, %v7957_v10 }
0x1834   :  { %v9477_v55 = vpop.f32.mrf.mxu0 }
0x1835   :  { %v8060_v3 = vadd.f32 %v8030_v13, %v11824_v52  ;;  %v8041_v15 = vadd.f32 %v9477_v55, %v7957_v10  ;;  %v8074_v34 = vsel %vm120_vm0, %v8062_v31, 0.0 }
0x1836   :  { %8075 = vadd.xlane.f32.xlu1 %v8074_v34  ;;  %v8032_v8 = vpop.f32.mrf.mxu0 }
0x1837   :  { %v8063_v37 = vadd.f32 %v8041_v15, %v11832_v19  ;;  %v8033_v22 = vadd.f32 %v8032_v8, %v7957_v10  ;;  %v8068_v29 = vsel %vm120_vm0, %v8060_v3, 0.0 }
0x1839   :  { %v8061_v40 = vadd.f32 %v8033_v22, %v11826_v46  ;;  %v8077_v18 = vsel %vm120_vm0, %v8063_v37, 0.0 }
0x183a   :  { %8078 = vadd.xlane.f32.xlu0 %v8077_v18  ;;  %8069 = vadd.xlane.f32.xlu1 %v8068_v29 }
0x183b   :  { %v8071_v44 = vsel %vm120_vm0, %v8061_v40, 0.0 }
0x183e   :  { %8072 = vadd.xlane.f32.xlu0 %v8071_v44 }
0x186d   :  { %v9480_v52 = vpop.f32.mrf.mxu0 }
0x186e   :  { %v8054_v24 = vadd.f32 %v9480_v52, %v7957_v10 }
0x186f   :  { %v8045_v33 = vpop.f32.mrf.mxu0 }
0x1870   :  { %v8046_v7 = vadd.f32 %v8045_v33, %v7957_v10  ;;  %v8066_v16 = vadd.f32 %v8054_v24, %v11842_v35 }
0x1871   :  { %v9481_v42 = vpop.f32.mrf.mxu0 }
0x1872   :  { %v8064_v54 = vadd.f32 %v8046_v7, %v11844_v36  ;;  %v8057_v46 = vadd.f32 %v9481_v42, %v7957_v10  ;;  %v8086_v26 = vsel %vm120_vm0, %v8066_v16, 0.0 }
0x1873   :  { %v8048_v19 = vpop.f32.mrf.mxu0 }
0x1874   :  { %v8049_v5 = vadd.f32 %v8048_v19, %v7957_v10  ;;  %v8080_v58 = vsel %vm120_vm0, %v8064_v54, 0.0  ;;  %v8067_v11 = vadd.f32 %v8057_v46, %v11850_v38  ;;  %v8174_v19 = vsub.s32 4, %v12025_v62 }
0x1875   :  { %8081 = vadd.xlane.f32.xlu1 %v8080_v58 }
0x1876   :  { %v8065_v39 = vadd.f32 %v8049_v5, %v11846_v48  ;;  %v8089_v36 = vsel %vm120_vm0, %v8067_v11, 0.0  ;;  %v8175_v46 = vrot.slane %v11731_v53, %v8174_v19 }
0x1878   :  { %v8083_v23 = vsel %vm120_vm0, %v8065_v39, 0.0 }
0x1879   :  { %8084 = vadd.xlane.f32.xlu0 %v8083_v23  ;;  %8087 = vadd.xlane.f32.xlu1 %v8086_v26 }
0x187d   :  { %8090 = vadd.xlane.f32.xlu0 %v8089_v36 }
0x18bf   :  { %v8076_v27 = vpop.xlane.xlu1 %8075 }
0x18c0   :  { %v8094_v35 = vmul.f32 0.03125, %v8076_v27 }
0x18c2   :  { %v11890_v28 = vsub.f32 %v8062_v31, %v8094_v35 }
0x18c3   :  { %v8070_v12 = vpop.xlane.xlu1 %8069  ;;  %v8079_v50 = vpop.xlane.xlu0 %8078 }
0x18c4   :  { %v8092_v47 = vmul.f32 0.03125, %v8070_v12  ;;  %v8095_v51 = vmul.f32 0.03125, %v8079_v50  ;;  %v8110_v48 = vmul.f32 %v11890_v28, %v11890_v28 }
0x18c6   :  { %v11894_v38 = vsub.f32 %v8060_v3, %v8092_v47  ;;  %v11896_v60 = vsub.f32 %v8063_v37, %v8095_v51  ;;  %v8122_v49 = vsel %vm120_vm0, %v8110_v48, 0.0 }
0x18c7   :  { %8123 = vadd.xlane.f32.xlu1 %v8122_v49  ;;  %v8073_v2 = vpop.xlane.xlu0 %8072 }
0x18c8   :  { %v8093_v17 = vmul.f32 0.03125, %v8073_v2  ;;  %v8108_v45 = vmul.f32 %v11894_v38, %v11894_v38  ;;  %v8111_v20 = vmul.f32 %v11896_v60, %v11896_v60 }
0x18ca   :  { %v11903_v43 = vsub.f32 %v8061_v40, %v8093_v17  ;;  %v8116_v30 = vsel %vm120_vm0, %v8108_v45, 0.0  ;;  %v8125_v0 = vsel %vm120_vm0, %v8111_v20, 0.0 }
0x18cb   :  { %8117 = vadd.xlane.f32.xlu1 %v8116_v30  ;;  %8126 = vadd.xlane.f32.xlu0 %v8125_v0 }
0x18cc   :  { %v8109_v14 = vmul.f32 %v11903_v43, %v11903_v43 }
0x18ce   :  { %v8119_v32 = vsel %vm120_vm0, %v8109_v14, 0.0 }
0x18cf   :  { %8120 = vadd.xlane.f32.xlu0 %v8119_v32 }
0x18fe   :  { %v8082_v41 = vpop.xlane.xlu1 %8081 }
0x18ff   :  { %v8096_v61 = vmul.f32 0.03125, %v8082_v41 }
0x1901   :  { %v11910_v56 = vsub.f32 %v8064_v54, %v8096_v61 }
0x1902   :  { %v8088_v57 = vpop.xlane.xlu1 %8087  ;;  %v8085_v59 = vpop.xlane.xlu0 %8084 }
0x1903   :  { %v8098_v6 = vmul.f32 0.03125, %v8088_v57  ;;  %v8097_v21 = vmul.f32 0.03125, %v8085_v59  ;;  %v8112_v63 = vmul.f32 %v11910_v56, %v11910_v56 }
0x1905   :  { %v11914_v1 = vsub.f32 %v8066_v16, %v8098_v6  ;;  %v11916_v10 = vsub.f32 %v8065_v39, %v8097_v21  ;;  %v8128_v9 = vsel %vm120_vm0, %v8112_v63, 0.0  ;;  %v8186_v16 = vsub.s32 5, %v12025_v62 }
0x1906   :  { %8129 = vadd.xlane.f32.xlu1 %v8128_v9  ;;  %v8091_v25 = vpop.xlane.xlu0 %8090 }
0x1907   :  { %v8099_v4 = vmul.f32 0.03125, %v8091_v25  ;;  %v8114_v31 = vmul.f32 %v11914_v1, %v11914_v1  ;;  %v8113_v13 = vmul.f32 %v11916_v10, %v11916_v10  ;;  %v8187_v58 = vrot.slane %v11731_v53, %v8186_v16 }
0x1909   :  { %v11923_v55 = vsub.f32 %v8067_v11, %v8099_v4  ;;  %v8134_v3 = vsel %vm120_vm0, %v8114_v31, 0.0  ;;  %v8131_v15 = vsel %vm120_vm0, %v8113_v13, 0.0 }
0x190a   :  { %8135 = vadd.xlane.f32.xlu1 %v8134_v3  ;;  %8132 = vadd.xlane.f32.xlu0 %v8131_v15 }
0x190b   :  { %v8115_v34 = vmul.f32 %v11923_v55, %v11923_v55 }
0x190d   :  { %v8137_v8 = vsel %vm120_vm0, %v8115_v34, 0.0 }
0x190e   :  { %8138 = vadd.xlane.f32.xlu0 %v8137_v8 }
0x1950   :  { %v8124_v37 = vpop.xlane.xlu1 %8123 }
0x1951   :  { %v8142_v22 = vmul.f32 0.03125, %v8124_v37 }
0x1953   :  { %v8150_v40 = vadd.f32 1e-05, %v8142_v22 }
0x1954   :  { %v8118_v18 = vpop.xlane.xlu1 %8117  ;;  %v8127_v29 = vpop.xlane.xlu0 %8126 }
0x1955   :  { %9802 = vrsqrt.f32 %v8150_v40  ;;  %v8140_v44 = vmul.f32 0.03125, %v8118_v18  ;;  %v8143_v52 = vmul.f32 0.03125, %v8127_v29 }
0x1957   :  { %v8148_v33 = vadd.f32 1e-05, %v8140_v44  ;;  %v8151_v24 = vadd.f32 1e-05, %v8143_v52 }
0x1958   :  { %v8121_v7 = vpop.xlane.xlu0 %8120 }
0x1959   :  { %9804 = vrsqrt.f32 %v8148_v33  ;;  %v8141_v42 = vmul.f32 0.03125, %v8121_v7 }
0x195a   :  { %9806 = vrsqrt.f32 %v8151_v24 }
0x195b   :  { %v8149_v54 = vadd.f32 1e-05, %v8141_v42 }
0x195d   :  { %9808 = vrsqrt.f32 %v8149_v54 }
0x1962   :  { %v9803_v5 = vpop.eup %9802 }
0x1963   :  { %v8166_v39 = vmul.f32 %v9803_v5, %v11890_v28 }
0x1965   :  { %v8178_v11 = vmul.f32 %v8175_v46, %v8166_v39 }
0x1966   :  { %v9805_v23 = vpop.eup %9804 }
0x1967   :  { %v9807_v26 = vpop.eup %9806  ;;  %v8190_v36 = vadd.f32 %v8187_v58, %v8178_v11  ;;  %v8164_v27 = vmul.f32 %v9805_v23, %v11894_v38 }
0x1968   :  { %v8167_v35 = vmul.f32 %v9807_v26, %v11896_v60 }
0x1969   :  { %8198 = vst.msk [vmem:[%s11983_s9 + $0x10] sm:$0xff] %vm120_vm0, %v8190_v36  ;;  %v8176_v62 = vmul.f32 %v8175_v46, %v8164_v27 }
0x196a   :  { %v9809_v12 = vpop.eup %9808  ;;  %v8179_v50 = vmul.f32 %v8175_v46, %v8167_v35 }
0x196b   :  { %v8188_v47 = vadd.f32 %v8187_v58, %v8176_v62  ;;  %v8165_v53 = vmul.f32 %v9809_v12, %v11903_v43 }
0x196c   :  { %v8191_v28 = vadd.f32 %v8187_v58, %v8179_v50 }
0x196d   :  { %8196 = vst.msk [vmem:[%s11983_s9] sm:$0xff] %vm120_vm0, %v8188_v47  ;;  %v8177_v51 = vmul.f32 %v8175_v46, %v8165_v53 }
0x196e   :  { %8199 = vst.msk [vmem:[%s11983_s9 + $0x18] sm:$0xff] %vm120_vm0, %v8191_v28 }
0x196f   :  { %v8189_v48 = vadd.f32 %v8187_v58, %v8177_v51 }
0x1971   :  { %8197 = vst.msk [vmem:[%s11983_s9 + $0x8] sm:$0xff] %vm120_vm0, %v8189_v48 }
0x198f   :  { %v8130_v38 = vpop.xlane.xlu1 %8129 }
0x1990   :  { %v8144_v60 = vmul.f32 0.03125, %v8130_v38 }
0x1992   :  { %v8152_v49 = vadd.f32 1e-05, %v8144_v60 }
0x1993   :  { %v8136_v2 = vpop.xlane.xlu1 %8135  ;;  %v8133_v17 = vpop.xlane.xlu0 %8132 }
0x1994   :  { %9810 = vrsqrt.f32 %v8152_v49  ;;  %v8146_v45 = vmul.f32 0.03125, %v8136_v2  ;;  %v8145_v20 = vmul.f32 0.03125, %v8133_v17 }
0x1996   :  { %v8154_v43 = vadd.f32 1e-05, %v8146_v45  ;;  %v8153_v30 = vadd.f32 1e-05, %v8145_v20 }
0x1997   :  { %v8139_v0 = vpop.xlane.xlu0 %8138 }
0x1998   :  { %9812 = vrsqrt.f32 %v8154_v43  ;;  %v8147_v14 = vmul.f32 0.03125, %v8139_v0 }
0x1999   :  { %9814 = vrsqrt.f32 %v8153_v30 }
0x199a   :  { %v8155_v32 = vadd.f32 1e-05, %v8147_v14 }
0x199c   :  { %9816 = vrsqrt.f32 %v8155_v32 }
0x19a1   :  { %v9811_v41 = vpop.eup %9810 }
0x19a2   :  { %v8168_v61 = vmul.f32 %v9811_v41, %v11910_v56 }
0x19a4   :  { %v8180_v57 = vmul.f32 %v8175_v46, %v8168_v61 }
0x19a5   :  { %v9813_v59 = vpop.eup %9812 }
0x19a6   :  { %v9815_v6 = vpop.eup %9814  ;;  %v8192_v21 = vadd.f32 %v8187_v58, %v8180_v57  ;;  %v8170_v63 = vmul.f32 %v9813_v59, %v11914_v1 }
0x19a7   :  { %v8169_v9 = vmul.f32 %v9815_v6, %v11916_v10 }
0x19a8   :  { %8200 = vst.msk [vmem:[%s11983_s9 + $0x20] sm:$0xff] %vm120_vm0, %v8192_v21  ;;  %v8182_v25 = vmul.f32 %v8175_v46, %v8170_v63 }
0x19a9   :  { %v9817_v4 = vpop.eup %9816  ;;  %v8181_v31 = vmul.f32 %v8175_v46, %v8169_v9 }
0x19aa   :  { %v8194_v13 = vadd.f32 %v8187_v58, %v8182_v25  ;;  %v8171_v3 = vmul.f32 %v9817_v4, %v11923_v55 }
0x19ab   :  { %v8193_v56 = vadd.f32 %v8187_v58, %v8181_v31 }
0x19ac   :  { %8202 = vst.msk [vmem:[%s11983_s9 + $0x30] sm:$0xff] %vm120_vm0, %v8194_v13  ;;  %v8183_v1 = vmul.f32 %v8175_v46, %v8171_v3 }
0x19ad   :  { %8201 = vst.msk [vmem:[%s11983_s9 + $0x28] sm:$0xff] %vm120_vm0, %v8193_v56 }
0x19ae   :  { %v8195_v10 = vadd.f32 %v8187_v58, %v8183_v1 }
0x19b0   :  { %8203 = vst.msk [vmem:[%s11983_s9 + $0x38] sm:$0xff] %vm120_vm0, %v8195_v10 }

</bundles_post_ra>
